<compile_context>
chip_gen: v7x
topology: tpu7x:2x2x1
jax: 0.10.0
libtpu: 0.0.40
codegen_flags: <defaults>
</compile_context>

<pallas_src>
import functools

import jax
import jax.numpy as jnp
from jax import lax
from jax.experimental import pallas as pl
from jax.experimental.pallas import tpu as pltpu


# ---------------------------------------------------------------------------
# Pallas kernels
# ---------------------------------------------------------------------------
def _mm_bias_kernel(x_ref, w_ref, b_ref, o_ref, *, relu):
    """out = act(x @ w + b); bf16 operands, f32 accumulation."""
    acc = jnp.dot(x_ref[...], w_ref[...], preferred_element_type=jnp.float32)
    out = acc + b_ref[...]
    if relu:
        out = jnp.maximum(out, 0.0)
    o_ref[...] = out.astype(o_ref.dtype)


def _mm_bias_res_kernel(x_ref, w_ref, b_ref, r_ref, o_ref):
    """out = relu(x @ w + b + residual); fused conv3 epilogue (residual f32)."""
    acc = jnp.dot(x_ref[...], w_ref[...], preferred_element_type=jnp.float32)
    out = acc + b_ref[...] + r_ref[...].astype(jnp.float32)
    o_ref[...] = jnp.maximum(out, 0.0).astype(o_ref.dtype)


def _mm_bias_dual_kernel(x_ref, wcat_ref, bcat_ref, o1_ref, osc_ref):
    """Fused conv1(+relu) and 1x1 downsample shortcut, one concatenated RHS."""
    n1 = o1_ref.shape[1]
    acc = jnp.dot(x_ref[...], wcat_ref[...], preferred_element_type=jnp.float32)
    acc = acc + bcat_ref[...]
    o1_ref[...] = jnp.maximum(acc[:, :n1], 0.0).astype(o1_ref.dtype)
    osc_ref[...] = acc[:, n1:].astype(osc_ref.dtype)


def _conv3x3_kernel(xp_ref, w_ref, b_ref, o_ref, acc_ref, *, stride, tr, Wo):
    """3x3 conv (+BN+ReLU) over one row band, 9 shifted-window matmuls.

    xp_ref : (1, H+2, W+2, C)  halo-padded image, VMEM-resident across bands
    w_ref  : (9, C, P)         per-tap, BN-scale-folded weights (bf16)
    b_ref  : (1, P)            folded BN bias (f32)
    o_ref  : (1, tr, Wo, P)    output row band
    acc_ref: (tr*Wo, P) f32    VMEM scratch accumulator
    """
    C = xp_ref.shape[3]
    P = w_ref.shape[2]
    r = pl.program_id(1)
    row0 = pl.multiple_of(r * (tr * stride), tr * stride)
    rows_in = (tr - 1) * stride + 1
    cols_in = (Wo - 1) * stride + 1
    for t in range(9):
        kh, kw = t // 3, t % 3
        win = xp_ref[0, pl.ds(row0 + kh, rows_in), pl.ds(kw, cols_in), :]
        if stride > 1:
            win = win[::stride, ::stride, :]
        contrib = jnp.dot(win.reshape(tr * Wo, C), w_ref[t],
                          preferred_element_type=jnp.float32)
        if t == 0:
            acc_ref[...] = contrib
        else:
            acc_ref[...] += contrib
    out = jnp.maximum(acc_ref[...] + b_ref[...], 0.0)
    o_ref[0] = out.reshape(tr, Wo, P).astype(o_ref.dtype)


# ---------------------------------------------------------------------------
# pallas_call wrappers
# ---------------------------------------------------------------------------
def _pick_tm(M, cap=512):
    """Largest multiple-of-8 divisor of M (<= cap); else one full block.

    For ResNet sizes M = N*56*56 this yields 448 (vs 64 under a pow2 rule);
    no jnp.pad of activations is ever required."""
    start = (min(cap, M) // 8) * 8
    for t in range(start, 7, -8):
        if M % t == 0:
            return t
    return M


def _pick_band(Ho, cap=8):
    """Rows per 3x3-conv band: largest divisor of Ho that is <= cap."""
    for t in range(min(cap, Ho), 0, -1):
        if Ho % t == 0:
            return t
    return Ho


def conv1x1_bn_act(x2d, w, bias, residual=None, relu=True,
                   out_dtype=jnp.bfloat16):
    """act((x2d @ w) + bias [+ residual]); w already has BN scale folded in."""
    M, K = x2d.shape
    N = w.shape[1]
    tm = _pick_tm(M)
    b2 = bias.reshape(1, N).astype(jnp.float32)

    in_specs = [
        pl.BlockSpec((tm, K), lambda i: (i, 0)),   # activation tile (bf16)
        pl.BlockSpec((K, N), lambda i: (0, 0)),    # full scale-folded weight
        pl.BlockSpec((1, N), lambda i: (0, 0)),    # folded BN bias (f32)
    ]
    args = [x2d, w, b2]
    if residual is not None:
        kernel = _mm_bias_res_kernel
        in_specs.append(pl.BlockSpec((tm, N), lambda i: (i, 0)))
        args.append(residual)
    else:
        kernel = functools.partial(_mm_bias_kernel, relu=relu)

    return pl.pallas_call(
        kernel,
        out_shape=jax.ShapeDtypeStruct((M, N), out_dtype),
        grid=(M // tm,),
        in_specs=in_specs,
        out_specs=pl.BlockSpec((tm, N), lambda i: (i, 0)),
        compiler_params=pltpu.CompilerParams(dimension_semantics=("parallel",)),
    )(*args)


def conv1x1_bn_dual(x2d, w1, b1, wsc, bsc, out_dtype=jnp.bfloat16,
                    res_dtype=jnp.float32):
    """Fused conv1+bn1+relu and downsample-conv+bn over shared x tiles.

    One concatenated (K, N1+N2) weight => single MXU RHS pass per tile.
    Shortcut output stays f32 (residual precision)."""
    M, K = x2d.shape
    N1, N2 = w1.shape[1], wsc.shape[1]
    tm = _pick_tm(M)
    wcat = jnp.concatenate([w1, wsc], axis=1)
    bcat = jnp.concatenate([b1, bsc]).reshape(1, N1 + N2).astype(jnp.float32)

    return pl.pallas_call(
        _mm_bias_dual_kernel,
        out_shape=(jax.ShapeDtypeStruct((M, N1), out_dtype),
                   jax.ShapeDtypeStruct((M, N2), res_dtype)),
        grid=(M // tm,),
        in_specs=[pl.BlockSpec((tm, K), lambda i: (i, 0)),
                  pl.BlockSpec((K, N1 + N2), lambda i: (0, 0)),
                  pl.BlockSpec((1, N1 + N2), lambda i: (0, 0))],
        out_specs=(pl.BlockSpec((tm, N1), lambda i: (i, 0)),
                   pl.BlockSpec((tm, N2), lambda i: (i, 0))),
        compiler_params=pltpu.CompilerParams(dimension_semantics=("parallel",)),
    )(x2d, wcat, bcat)


def conv3x3_bn_relu(xp, w_taps, bias, stride, Ho, Wo, out_dtype=jnp.bfloat16):
    """3x3 conv (+BN+ReLU) from the halo-padded NHWC activation.

    Grid (N, Ho//tr): the padded image block index is constant over the band
    axis (one DMA per image), each band uses a small f32 scratch accumulator."""
    N, Hp, Wp, C = xp.shape
    P = w_taps.shape[2]
    tr = _pick_band(Ho)
    nb = Ho // tr
    b2 = bias.reshape(1, P).astype(jnp.float32)
    kernel = functools.partial(_conv3x3_kernel, stride=stride, tr=tr, Wo=Wo)
    return pl.pallas_call(
        kernel,
        out_shape=jax.ShapeDtypeStruct((N, Ho, Wo, P), out_dtype),
        grid=(N, nb),
        in_specs=[pl.BlockSpec((1, Hp, Wp, C), lambda n, r: (n, 0, 0, 0)),
                  pl.BlockSpec((9, C, P), lambda n, r: (0, 0, 0)),
                  pl.BlockSpec((1, P), lambda n, r: (0, 0))],
        out_specs=pl.BlockSpec((1, tr, Wo, P), lambda n, r: (n, r, 0, 0)),
        scratch_shapes=[pltpu.VMEM((tr * Wo, P), jnp.float32)],
        compiler_params=pltpu.CompilerParams(
            dimension_semantics=("parallel", "parallel")),
    )(xp, w_taps, b2)


# ---------------------------------------------------------------------------
# BN folding helper
# ---------------------------------------------------------------------------
def _bn_fold(g, b, m, v, eps=1e-5):
    s = g / jnp.sqrt(v + eps)
    return s, b - m * s


# ---------------------------------------------------------------------------
# Bottleneck forward (Pallas) and pure-JAX reference
# ---------------------------------------------------------------------------
def bottleneck_pallas(x_nchw, p, stride=1):
    N, Cin, H, W = x_nchw.shape
    planes = p['w1'].shape[0]
    exp_planes = p['w3'].shape[0]
    Ho = (H - 1) // stride + 1
    Wo = (W - 1) // stride + 1

    s1, b1 = _bn_fold(p['g1'], p['b1'], p['m1'], p['v1'])
    s2, b2 = _bn_fold(p['g2'], p['b2'], p['m2'], p['v2'])
    s3, b3 = _bn_fold(p['g3'], p['b3'], p['m3'], p['v3'])

    # BN scale folded into weights, then cast to bf16 for the MXU.
    w1m = (p['w1'][:, :, 0, 0].T * s1[None, :]).astype(jnp.bfloat16)       # (Cin, planes)
    w3m = (p['w3'][:, :, 0, 0].T * s3[None, :]).astype(jnp.bfloat16)       # (planes, exp)
    w2t = (jnp.transpose(p['w2'], (2, 3, 1, 0)).reshape(9, planes, planes)
           * s2[None, None, :]).astype(jnp.bfloat16)                       # (9, planes, planes)

    # conv1 (1x1) + bn1 + relu, and the 1x1 downsample shortcut (if any).
    if 'wsc' in p:
        # Projection shortcut: no f32 copy of x needed -> cast before transpose.
        x_bf = jnp.transpose(x_nchw.astype(jnp.bfloat16), (0, 2, 3, 1))    # NHWC bf16
        x2d = x_bf.reshape(-1, Cin)
        ssc, bsc = _bn_fold(p['gsc'], p['bsc'], p['msc'], p['vsc'])
        wscm = (p['wsc'][:, :, 0, 0].T * ssc[None, :]).astype(jnp.bfloat16)
        if stride == 1:
            out1_2d, sc2d = conv1x1_bn_dual(x2d, w1m, b1, wscm, bsc)       # sc2d f32
        else:
            out1_2d = conv1x1_bn_act(x2d, w1m, b1, relu=True)
            xs = x_bf[:, ::stride, ::stride, :]                            # (N,Ho,Wo,Cin)
            sc2d = conv1x1_bn_act(xs.reshape(-1, Cin), wscm, bsc,
                                  relu=False, out_dtype=jnp.float32)
    else:
        assert stride == 1 and Cin == exp_planes, "identity shortcut invalid"
        x_f32 = jnp.transpose(x_nchw, (0, 2, 3, 1))                        # NHWC f32
        x_bf = x_f32.astype(jnp.bfloat16)
        x2d = x_bf.reshape(-1, Cin)
        out1_2d = conv1x1_bn_act(x2d, w1m, b1, relu=True)
        sc2d = x_f32.reshape(-1, Cin)                                      # f32 residual

    # conv2 (3x3, stride, pad=1) + bn2 + relu — row-band tiled 9-tap reduction.
    out1 = out1_2d.reshape(N, H, W, planes)
    xp = jnp.pad(out1, ((0, 0), (1, 1), (1, 1), (0, 0)))                   # halo only
    out2 = conv3x3_bn_relu(xp, w2t, b2, stride, Ho, Wo)                    # (N,Ho,Wo,planes)

    # conv3 (1x1) + bn3 + f32 residual add + relu, fused; f32 block output.
    out3 = conv1x1_bn_act(out2.reshape(-1, planes), w3m, b3,
                          residual=sc2d, relu=True, out_dtype=jnp.float32)
    out = out3.reshape(N, Ho, Wo, exp_planes)
    return jnp.transpose(out, (0, 3, 1, 2))                                # back to NCHW


def bottleneck_ref(x, p, stride=1):
    def conv(x, w, stride=1, pad=0):
        return lax.conv_general_dilated(
            x, w, (stride, stride), [(pad, pad), (pad, pad)],
            dimension_numbers=('NCHW', 'OIHW', 'NCHW'))

    def bn(x, g, b, m, v, eps=1e-5):
        g, b, m, v = [a[None, :, None, None] for a in (g, b, m, v)]
        return (x - m) / jnp.sqrt(v + eps) * g + b

    out = jax.nn.relu(bn(conv(x, p['w1']), p['g1'], p['b1'], p['m1'], p['v1']))
    out = jax.nn.relu(bn(conv(out, p['w2'], stride, 1),
                         p['g2'], p['b2'], p['m2'], p['v2']))
    out = bn(conv(out, p['w3']), p['g3'], p['b3'], p['m3'], p['v3'])
    if 'wsc' in p:
        sc = bn(conv(x, p['wsc'], stride), p['gsc'], p['bsc'], p['msc'], p['vsc'])
    else:
        sc = x
    return jax.nn.relu(out + sc)


# ---------------------------------------------------------------------------
# Deterministic parameter init (shapes from Bottleneck.__init__)
# ---------------------------------------------------------------------------
def init_params(key, in_planes, planes, stride):
    exp = 4 * planes
    ks = list(jax.random.split(key, 8))

    def wconv(k, shape):
        return 0.1 * jax.random.normal(k, shape, jnp.float32)

    def bn_params(k, c):
        k1, k2, k3, k4 = jax.random.split(k, 4)
        return (jax.random.uniform(k1, (c,), jnp.float32, 0.5, 1.5),
                0.1 * jax.random.normal(k2, (c,), jnp.float32),
                0.1 * jax.random.normal(k3, (c,), jnp.float32),
                jax.random.uniform(k4, (c,), jnp.float32, 0.5, 1.5))

    p = {}
    p['w1'] = wconv(ks[0], (planes, in_planes, 1, 1))
    p['g1'], p['b1'], p['m1'], p['v1'] = bn_params(ks[1], planes)
    p['w2'] = wconv(ks[2], (planes, planes, 3, 3))
    p['g2'], p['b2'], p['m2'], p['v2'] = bn_params(ks[3], planes)
    p['w3'] = wconv(ks[4], (exp, planes, 1, 1))
    p['g3'], p['b3'], p['m3'], p['v3'] = bn_params(ks[5], exp)
    if stride != 1 or in_planes != exp:
        p['wsc'] = wconv(ks[6], (exp, in_planes, 1, 1))
        p['gsc'], p['bsc'], p['msc'], p['vsc'] = bn_params(ks[7], exp)
    return p


if __name__ == "__main__":
    key = jax.random.PRNGKey(0)
    N, H, W = 2, 16, 16
    # (name, in_planes, planes, stride): exercise projection (fused dual kernel),
    # strided projection (strided 3x3 + strided shortcut) and identity paths.
    configs = [
        ("proj_stride1", 4, 4, 1),
        ("proj_stride2", 8, 4, 2),
        ("identity",     16, 4, 1),
    ]
    fwd = jax.jit(bottleneck_pallas, static_argnames=("stride",))
    for name, in_planes, planes, stride in configs:
        key, kx, kp = jax.random.split(key, 3)
        x = jax.random.normal(kx, (N, in_planes, H, W), jnp.float32)
        params = init_params(kp, in_planes, planes, stride)

        out = jax.block_until_ready(fwd(x, params, stride=stride))
        ref = bottleneck_ref(x, params, stride)

        Ho = (H - 1) // stride + 1
        assert out.shape == ref.shape == (N, 4 * planes, Ho, Ho), (name, out.shape)
        max_err = float(jnp.max(jnp.abs(out - ref)))
        # bf16 matmul operands (f32 accumulation, f32 residual) vs f32 reference.
        assert jnp.allclose(out, ref, rtol=5e-2, atol=5e-2), (name, max_err)
    print("KERNEL_OK")
</pallas_src>

<mosaic_0001>
module attributes {stable_mosaic.version = 11 : i64} {
  func.func @_mm_bias_dual_kernel(%arg0: i32, %arg1: memref<512x4xbf16, #tpu.memory_space<vmem>>, %arg2: memref<4x20xbf16, #tpu.memory_space<vmem>>, %arg3: memref<1x20xf32, #tpu.memory_space<vmem>>, %arg4: memref<512x4xbf16, #tpu.memory_space<vmem>>, %arg5: memref<512x16xf32, #tpu.memory_space<vmem>>) attributes {dimension_semantics = [#tpu.dimension_semantics<parallel>], iteration_bounds = array<i64: 1>, scalar_prefetch = 0 : i64, scratch_operands = 0 : i64, tpu.core_type = #tpu.core_type<tc>, window_params = [{transform_indices = @transform_0, window_bounds = array<i64: 512, 4>}, {pipeline_mode = #tpu.pipeline_mode<synchronous>, transform_indices = @transform_1, window_bounds = array<i64: 4, 20>}, {pipeline_mode = #tpu.pipeline_mode<synchronous>, transform_indices = @transform_2, window_bounds = array<i64: 1, 20>}, {transform_indices = @transform_3, window_bounds = array<i64: 512, 4>}, {transform_indices = @transform_4, window_bounds = array<i64: 512, 16>}]} {
    %c0 = arith.constant 0 : index
    %c0_0 = arith.constant 0 : index
    %0 = vector.load %arg1[%c0, %c0_0] : memref<512x4xbf16, #tpu.memory_space<vmem>>, vector<512x4xbf16>
    %c0_1 = arith.constant 0 : index
    %c0_2 = arith.constant 0 : index
    %1 = vector.load %arg2[%c0_1, %c0_2] : memref<4x20xbf16, #tpu.memory_space<vmem>>, vector<4x20xbf16>
    %cst = arith.constant dense<0.000000e+00> : vector<512x20xf32>
    %2 = tpu.matmul %0, %1, %cst {dimension_numbers = #tpu.dot_dimension_numbers<[1], [0], [0], [1], [0, 0, 1, 1], [], []>} : vector<512x4xbf16>, vector<4x20xbf16>, vector<512x20xf32> -> vector<512x20xf32>
    %c0_3 = arith.constant 0 : index
    %c0_4 = arith.constant 0 : index
    %3 = vector.load %arg3[%c0_3, %c0_4] : memref<1x20xf32, #tpu.memory_space<vmem>>, vector<1x20xf32>
    %4 = vector.broadcast %3 : vector<1x20xf32> to vector<512x20xf32>
    %5 = arith.addf %2, %4 : vector<512x20xf32>
    %6 = vector.extract_strided_slice %5 {offsets = [0, 0], sizes = [512, 4], strides = [1, 1]} : vector<512x20xf32> to vector<512x4xf32>
    %cst_5 = arith.constant 0.000000e+00 : f32
    %7 = vector.broadcast %cst_5 : f32 to vector<512x4xf32>
    %8 = arith.maximumf %6, %7 : vector<512x4xf32>
    %9 = arith.truncf %8 : vector<512x4xf32> to vector<512x4xbf16>
    %c0_6 = arith.constant 0 : index
    %c0_7 = arith.constant 0 : index
    %10 = vector.load %arg4[%c0_6, %c0_7] : memref<512x4xbf16, #tpu.memory_space<vmem>>, vector<512x4xbf16>
    tpu.vector_store %arg4[%c0_6, %c0_7], %9 {strides = array<i32>} : memref<512x4xbf16, #tpu.memory_space<vmem>>, vector<512x4xbf16>,
    %11 = vector.extract_strided_slice %5 {offsets = [0, 4], sizes = [512, 16], strides = [1, 1]} : vector<512x20xf32> to vector<512x16xf32>
    %c0_8 = arith.constant 0 : index
    %c0_9 = arith.constant 0 : index
    %12 = vector.load %arg5[%c0_8, %c0_9] : memref<512x16xf32, #tpu.memory_space<vmem>>, vector<512x16xf32>
    tpu.vector_store %arg5[%c0_8, %c0_9], %11 {strides = array<i32>} : memref<512x16xf32, #tpu.memory_space<vmem>>, vector<512x16xf32>,
    return
  }
  func.func @transform_0(%arg0: i32) -> (i32, i32) {
    %c0_i32 = arith.constant 0 : i32
    %c0_i32_0 = arith.constant 0 : i32
    return %arg0, %c0_i32 : i32, i32
  }
  func.func @transform_1(%arg0: i32) -> (i32, i32) {
    %c0_i32 = arith.constant 0 : i32
    %c0_i32_0 = arith.constant 0 : i32
    %c0_i32_1 = arith.constant 0 : i32
    return %c0_i32, %c0_i32_0 : i32, i32
  }
  func.func @transform_2(%arg0: i32) -> (i32, i32) {
    %c0_i32 = arith.constant 0 : i32
    %c0_i32_0 = arith.constant 0 : i32
    %c0_i32_1 = arith.constant 0 : i32
    return %c0_i32, %c0_i32_0 : i32, i32
  }
  func.func @transform_3(%arg0: i32) -> (i32, i32) {
    %c0_i32 = arith.constant 0 : i32
    %c0_i32_0 = arith.constant 0 : i32
    return %arg0, %c0_i32 : i32, i32
  }
  func.func @transform_4(%arg0: i32) -> (i32, i32) {
    %c0_i32 = arith.constant 0 : i32
    %c0_i32_0 = arith.constant 0 : i32
    return %arg0, %c0_i32 : i32, i32
  }
}

module attributes {stable_mosaic.version = 11 : i64} {
  func.func @_conv3x3_kernel(%arg0: i32, %arg1: i32, %arg2: memref<1x18x18x4xbf16, #tpu.memory_space<vmem>>, %arg3: memref<9x4x4xbf16, #tpu.memory_space<vmem>>, %arg4: memref<1x4xf32, #tpu.memory_space<vmem>>, %arg5: memref<1x8x16x4xbf16, #tpu.memory_space<vmem>>, %arg6: memref<128x4xf32, #tpu.memory_space<vmem>>) attributes {dimension_semantics = [#tpu.dimension_semantics<parallel>, #tpu.dimension_semantics<parallel>], iteration_bounds = array<i64: 2, 2>, scalar_prefetch = 0 : i64, scratch_operands = 1 : i64, tpu.core_type = #tpu.core_type<tc>, window_params = [{transform_indices = @transform_0, window_bounds = array<i64: 1, 18, 18, 4>}, {pipeline_mode = #tpu.pipeline_mode<synchronous>, transform_indices = @transform_1, window_bounds = array<i64: 9, 4, 4>}, {pipeline_mode = #tpu.pipeline_mode<synchronous>, transform_indices = @transform_2, window_bounds = array<i64: 1, 4>}, {transform_indices = @transform_3, window_bounds = array<i64: 1, 8, 16, 4>}]} {
    %c8_i32 = arith.constant 8 : i32
    %0 = arith.muli %arg1, %c8_i32 : i32
    %1 = tpu.assume_multiple %0, 8 : i32
    %c0_i32 = arith.constant 0 : i32
    %2 = arith.addi %1, %c0_i32 : i32
    %c0 = arith.constant 0 : index
    %3 = arith.index_cast %2 : i32 to index
    %c0_0 = arith.constant 0 : index
    %c0_1 = arith.constant 0 : index
    %4 = vector.load %arg2[%c0, %3, %c0_0, %c0_1] : memref<1x18x18x4xbf16, #tpu.memory_space<vmem>>, vector<1x8x16x4xbf16>
    %5 = vector.shape_cast %4 : vector<1x8x16x4xbf16> to vector<8x16x4xbf16>
    %6 = vector.shape_cast %5 : vector<8x16x4xbf16> to vector<128x4xbf16>
    %c0_2 = arith.constant 0 : index
    %c0_3 = arith.constant 0 : index
    %c0_4 = arith.constant 0 : index
    %7 = vector.load %arg3[%c0_2, %c0_3, %c0_4] : memref<9x4x4xbf16, #tpu.memory_space<vmem>>, vector<1x4x4xbf16>
    %8 = vector.shape_cast %7 : vector<1x4x4xbf16> to vector<4x4xbf16>
    %cst = arith.constant dense<0.000000e+00> : vector<128x4xf32>
    %9 = tpu.matmul %6, %8, %cst {dimension_numbers = #tpu.dot_dimension_numbers<[1], [0], [0], [1], [0, 0, 1, 1], [], []>} : vector<128x4xbf16>, vector<4x4xbf16>, vector<128x4xf32> -> vector<128x4xf32>
    %c0_5 = arith.constant 0 : index
    %c0_6 = arith.constant 0 : index
    %10 = vector.load %arg6[%c0_5, %c0_6] : memref<128x4xf32, #tpu.memory_space<vmem>>, vector<128x4xf32>
    tpu.vector_store %arg6[%c0_5, %c0_6], %9 {strides = array<i32>} : memref<128x4xf32, #tpu.memory_space<vmem>>, vector<128x4xf32>,
    %c0_i32_7 = arith.constant 0 : i32
    %11 = arith.addi %1, %c0_i32_7 : i32
    %c0_8 = arith.constant 0 : index
    %12 = arith.index_cast %11 : i32 to index
    %c1 = arith.constant 1 : index
    %c0_9 = arith.constant 0 : index
    %13 = vector.load %arg2[%c0_8, %12, %c1, %c0_9] : memref<1x18x18x4xbf16, #tpu.memory_space<vmem>>, vector<1x8x16x4xbf16>
    %14 = vector.shape_cast %13 : vector<1x8x16x4xbf16> to vector<8x16x4xbf16>
    %15 = vector.shape_cast %14 : vector<8x16x4xbf16> to vector<128x4xbf16>
    %c1_10 = arith.constant 1 : index
    %c0_11 = arith.constant 0 : index
    %c0_12 = arith.constant 0 : index
    %16 = vector.load %arg3[%c1_10, %c0_11, %c0_12] : memref<9x4x4xbf16, #tpu.memory_space<vmem>>, vector<1x4x4xbf16>
    %17 = vector.shape_cast %16 : vector<1x4x4xbf16> to vector<4x4xbf16>
    %cst_13 = arith.constant dense<0.000000e+00> : vector<128x4xf32>
    %18 = tpu.matmul %15, %17, %cst_13 {dimension_numbers = #tpu.dot_dimension_numbers<[1], [0], [0], [1], [0, 0, 1, 1], [], []>} : vector<128x4xbf16>, vector<4x4xbf16>, vector<128x4xf32> -> vector<128x4xf32>
    %c0_14 = arith.constant 0 : index
    %c0_15 = arith.constant 0 : index
    %19 = vector.load %arg6[%c0_14, %c0_15] : memref<128x4xf32, #tpu.memory_space<vmem>>, vector<128x4xf32>
    %20 = arith.addf %19, %18 : vector<128x4xf32>
    %c0_16 = arith.constant 0 : index
    %c0_17 = arith.constant 0 : index
    %21 = vector.load %arg6[%c0_16, %c0_17] : memref<128x4xf32, #tpu.memory_space<vmem>>, vector<128x4xf32>
    tpu.vector_store %arg6[%c0_16, %c0_17], %20 {strides = array<i32>} : memref<128x4xf32, #tpu.memory_space<vmem>>, vector<128x4xf32>,
    %c0_i32_18 = arith.constant 0 : i32
    %22 = arith.addi %1, %c0_i32_18 : i32
    %c0_19 = arith.constant 0 : index
    %23 = arith.index_cast %22 : i32 to index
    %c2 = arith.constant 2 : index
    %c0_20 = arith.constant 0 : index
    %24 = vector.load %arg2[%c0_19, %23, %c2, %c0_20] : memref<1x18x18x4xbf16, #tpu.memory_space<vmem>>, vector<1x8x16x4xbf16>
    %25 = vector.shape_cast %24 : vector<1x8x16x4xbf16> to vector<8x16x4xbf16>
    %26 = vector.shape_cast %25 : vector<8x16x4xbf16> to vector<128x4xbf16>
    %c2_21 = arith.constant 2 : index
    %c0_22 = arith.constant 0 : index
    %c0_23 = arith.constant 0 : index
    %27 = vector.load %arg3[%c2_21, %c0_22, %c0_23] : memref<9x4x4xbf16, #tpu.memory_space<vmem>>, vector<1x4x4xbf16>
    %28 = vector.shape_cast %27 : vector<1x4x4xbf16> to vector<4x4xbf16>
    %cst_24 = arith.constant dense<0.000000e+00> : vector<128x4xf32>
    %29 = tpu.matmul %26, %28, %cst_24 {dimension_numbers = #tpu.dot_dimension_numbers<[1], [0], [0], [1], [0, 0, 1, 1], [], []>} : vector<128x4xbf16>, vector<4x4xbf16>, vector<128x4xf32> -> vector<128x4xf32>
    %c0_25 = arith.constant 0 : index
    %c0_26 = arith.constant 0 : index
    %30 = vector.load %arg6[%c0_25, %c0_26] : memref<128x4xf32, #tpu.memory_space<vmem>>, vector<128x4xf32>
    %31 = arith.addf %30, %29 : vector<128x4xf32>
    %c0_27 = arith.constant 0 : index
    %c0_28 = arith.constant 0 : index
    %32 = vector.load %arg6[%c0_27, %c0_28] : memref<128x4xf32, #tpu.memory_space<vmem>>, vector<128x4xf32>
    tpu.vector_store %arg6[%c0_27, %c0_28], %31 {strides = array<i32>} : memref<128x4xf32, #tpu.memory_space<vmem>>, vector<128x4xf32>,
    %c1_i32 = arith.constant 1 : i32
    %33 = arith.addi %1, %c1_i32 : i32
    %c0_29 = arith.constant 0 : index
    %34 = arith.index_cast %33 : i32 to index
    %c0_30 = arith.constant 0 : index
    %c0_31 = arith.constant 0 : index
    %35 = vector.load %arg2[%c0_29, %34, %c0_30, %c0_31] : memref<1x18x18x4xbf16, #tpu.memory_space<vmem>>, vector<1x8x16x4xbf16>
    %36 = vector.shape_cast %35 : vector<1x8x16x4xbf16> to vector<8x16x4xbf16>
    %37 = vector.shape_cast %36 : vector<8x16x4xbf16> to vector<128x4xbf16>
    %c3 = arith.constant 3 : index
    %c0_32 = arith.constant 0 : index
    %c0_33 = arith.constant 0 : index
    %38 = vector.load %arg3[%c3, %c0_32, %c0_33] : memref<9x4x4xbf16, #tpu.memory_space<vmem>>, vector<1x4x4xbf16>
    %39 = vector.shape_cast %38 : vector<1x4x4xbf16> to vector<4x4xbf16>
    %cst_34 = arith.constant dense<0.000000e+00> : vector<128x4xf32>
    %40 = tpu.matmul %37, %39, %cst_34 {dimension_numbers = #tpu.dot_dimension_numbers<[1], [0], [0], [1], [0, 0, 1, 1], [], []>} : vector<128x4xbf16>, vector<4x4xbf16>, vector<128x4xf32> -> vector<128x4xf32>
    %c0_35 = arith.constant 0 : index
    %c0_36 = arith.constant 0 : index
    %41 = vector.load %arg6[%c0_35, %c0_36] : memref<128x4xf32, #tpu.memory_space<vmem>>, vector<128x4xf32>
    %42 = arith.addf %41, %40 : vector<128x4xf32>
    %c0_37 = arith.constant 0 : index
    %c0_38 = arith.constant 0 : index
    %43 = vector.load %arg6[%c0_37, %c0_38] : memref<128x4xf32, #tpu.memory_space<vmem>>, vector<128x4xf32>
    tpu.vector_store %arg6[%c0_37, %c0_38], %42 {strides = array<i32>} : memref<128x4xf32, #tpu.memory_space<vmem>>, vector<128x4xf32>,
    %c1_i32_39 = arith.constant 1 : i32
    %44 = arith.addi %1, %c1_i32_39 : i32
    %c0_40 = arith.constant 0 : index
    %45 = arith.index_cast %44 : i32 to index
    %c1_41 = arith.constant 1 : index
    %c0_42 = arith.constant 0 : index
    %46 = vector.load %arg2[%c0_40, %45, %c1_41, %c0_42] : memref<1x18x18x4xbf16, #tpu.memory_space<vmem>>, vector<1x8x16x4xbf16>
    %47 = vector.shape_cast %46 : vector<1x8x16x4xbf16> to vector<8x16x4xbf16>
    %48 = vector.shape_cast %47 : vector<8x16x4xbf16> to vector<128x4xbf16>
    %c4 = arith.constant 4 : index
    %c0_43 = arith.constant 0 : index
    %c0_44 = arith.constant 0 : index
    %49 = vector.load %arg3[%c4, %c0_43, %c0_44] : memref<9x4x4xbf16, #tpu.memory_space<vmem>>, vector<1x4x4xbf16>
    %50 = vector.shape_cast %49 : vector<1x4x4xbf16> to vector<4x4xbf16>
    %cst_45 = arith.constant dense<0.000000e+00> : vector<128x4xf32>
    %51 = tpu.matmul %48, %50, %cst_45 {dimension_numbers = #tpu.dot_dimension_numbers<[1], [0], [0], [1], [0, 0, 1, 1], [], []>} : vector<128x4xbf16>, vector<4x4xbf16>, vector<128x4xf32> -> vector<128x4xf32>
    %c0_46 = arith.constant 0 : index
    %c0_47 = arith.constant 0 : index
    %52 = vector.load %arg6[%c0_46, %c0_47] : memref<128x4xf32, #tpu.memory_space<vmem>>, vector<128x4xf32>
    %53 = arith.addf %52, %51 : vector<128x4xf32>
    %c0_48 = arith.constant 0 : index
    %c0_49 = arith.constant 0 : index
    %54 = vector.load %arg6[%c0_48, %c0_49] : memref<128x4xf32, #tpu.memory_space<vmem>>, vector<128x4xf32>
    tpu.vector_store %arg6[%c0_48, %c0_49], %53 {strides = array<i32>} : memref<128x4xf32, #tpu.memory_space<vmem>>, vector<128x4xf32>,
    %c1_i32_50 = arith.constant 1 : i32
    %55 = arith.addi %1, %c1_i32_50 : i32
    %c0_51 = arith.constant 0 : index
    %56 = arith.index_cast %55 : i32 to index
    %c2_52 = arith.constant 2 : index
    %c0_53 = arith.constant 0 : index
    %57 = vector.load %arg2[%c0_51, %56, %c2_52, %c0_53] : memref<1x18x18x4xbf16, #tpu.memory_space<vmem>>, vector<1x8x16x4xbf16>
    %58 = vector.shape_cast %57 : vector<1x8x16x4xbf16> to vector<8x16x4xbf16>
    %59 = vector.shape_cast %58 : vector<8x16x4xbf16> to vector<128x4xbf16>
    %c5 = arith.constant 5 : index
    %c0_54 = arith.constant 0 : index
    %c0_55 = arith.constant 0 : index
    %60 = vector.load %arg3[%c5, %c0_54, %c0_55] : memref<9x4x4xbf16, #tpu.memory_space<vmem>>, vector<1x4x4xbf16>
    %61 = vector.shape_cast %60 : vector<1x4x4xbf16> to vector<4x4xbf16>
    %cst_56 = arith.constant dense<0.000000e+00> : vector<128x4xf32>
    %62 = tpu.matmul %59, %61, %cst_56 {dimension_numbers = #tpu.dot_dimension_numbers<[1], [0], [0], [1], [0, 0, 1, 1], [], []>} : vector<128x4xbf16>, vector<4x4xbf16>, vector<128x4xf32> -> vector<128x4xf32>
    %c0_57 = arith.constant 0 : index
    %c0_58 = arith.constant 0 : index
    %63 = vector.load %arg6[%c0_57, %c0_58] : memref<128x4xf32, #tpu.memory_space<vmem>>, vector<128x4xf32>
    %64 = arith.addf %63, %62 : vector<128x4xf32>
    %c0_59 = arith.constant 0 : index
    %c0_60 = arith.constant 0 : index
    %65 = vector.load %arg6[%c0_59, %c0_60] : memref<128x4xf32, #tpu.memory_space<vmem>>, vector<128x4xf32>
    tpu.vector_store %arg6[%c0_59, %c0_60], %64 {strides = array<i32>} : memref<128x4xf32, #tpu.memory_space<vmem>>, vector<128x4xf32>,
    %c2_i32 = arith.constant 2 : i32
    %66 = arith.addi %1, %c2_i32 : i32
    %c0_61 = arith.constant 0 : index
    %67 = arith.index_cast %66 : i32 to index
    %c0_62 = arith.constant 0 : index
    %c0_63 = arith.constant 0 : index
    %68 = vector.load %arg2[%c0_61, %67, %c0_62, %c0_63] : memref<1x18x18x4xbf16, #tpu.memory_space<vmem>>, vector<1x8x16x4xbf16>
    %69 = vector.shape_cast %68 : vector<1x8x16x4xbf16> to vector<8x16x4xbf16>
    %70 = vector.shape_cast %69 : vector<8x16x4xbf16> to vector<128x4xbf16>
    %c6 = arith.constant 6 : index
    %c0_64 = arith.constant 0 : index
    %c0_65 = arith.constant 0 : index
    %71 = vector.load %arg3[%c6, %c0_64, %c0_65] : memref<9x4x4xbf16, #tpu.memory_space<vmem>>, vector<1x4x4xbf16>
    %72 = vector.shape_cast %71 : vector<1x4x4xbf16> to vector<4x4xbf16>
    %cst_66 = arith.constant dense<0.000000e+00> : vector<128x4xf32>
    %73 = tpu.matmul %70, %72, %cst_66 {dimension_numbers = #tpu.dot_dimension_numbers<[1], [0], [0], [1], [0, 0, 1, 1], [], []>} : vector<128x4xbf16>, vector<4x4xbf16>, vector<128x4xf32> -> vector<128x4xf32>
    %c0_67 = arith.constant 0 : index
    %c0_68 = arith.constant 0 : index
    %74 = vector.load %arg6[%c0_67, %c0_68] : memref<128x4xf32, #tpu.memory_space<vmem>>, vector<128x4xf32>
    %75 = arith.addf %74, %73 : vector<128x4xf32>
    %c0_69 = arith.constant 0 : index
    %c0_70 = arith.constant 0 : index
    %76 = vector.load %arg6[%c0_69, %c0_70] : memref<128x4xf32, #tpu.memory_space<vmem>>, vector<128x4xf32>
    tpu.vector_store %arg6[%c0_69, %c0_70], %75 {strides = array<i32>} : memref<128x4xf32, #tpu.memory_space<vmem>>, vector<128x4xf32>,
    %c2_i32_71 = arith.constant 2 : i32
    %77 = arith.addi %1, %c2_i32_71 : i32
    %c0_72 = arith.constant 0 : index
    %78 = arith.index_cast %77 : i32 to index
    %c1_73 = arith.constant 1 : index
    %c0_74 = arith.constant 0 : index
    %79 = vector.load %arg2[%c0_72, %78, %c1_73, %c0_74] : memref<1x18x18x4xbf16, #tpu.memory_space<vmem>>, vector<1x8x16x4xbf16>
    %80 = vector.shape_cast %79 : vector<1x8x16x4xbf16> to vector<8x16x4xbf16>
    %81 = vector.shape_cast %80 : vector<8x16x4xbf16> to vector<128x4xbf16>
    %c7 = arith.constant 7 : index
    %c0_75 = arith.constant 0 : index
    %c0_76 = arith.constant 0 : index
    %82 = vector.load %arg3[%c7, %c0_75, %c0_76] : memref<9x4x4xbf16, #tpu.memory_space<vmem>>, vector<1x4x4xbf16>
    %83 = vector.shape_cast %82 : vector<1x4x4xbf16> to vector<4x4xbf16>
    %cst_77 = arith.constant dense<0.000000e+00> : vector<128x4xf32>
    %84 = tpu.matmul %81, %83, %cst_77 {dimension_numbers = #tpu.dot_dimension_numbers<[1], [0], [0], [1], [0, 0, 1, 1], [], []>} : vector<128x4xbf16>, vector<4x4xbf16>, vector<128x4xf32> -> vector<128x4xf32>
    %c0_78 = arith.constant 0 : index
    %c0_79 = arith.constant 0 : index
    %85 = vector.load %arg6[%c0_78, %c0_79] : memref<128x4xf32, #tpu.memory_space<vmem>>, vector<128x4xf32>
    %86 = arith.addf %85, %84 : vector<128x4xf32>
    %c0_80 = arith.constant 0 : index
    %c0_81 = arith.constant 0 : index
    %87 = vector.load %arg6[%c0_80, %c0_81] : memref<128x4xf32, #tpu.memory_space<vmem>>, vector<128x4xf32>
    tpu.vector_store %arg6[%c0_80, %c0_81], %86 {strides = array<i32>} : memref<128x4xf32, #tpu.memory_space<vmem>>, vector<128x4xf32>,
    %c2_i32_82 = arith.constant 2 : i32
    %88 = arith.addi %1, %c2_i32_82 : i32
    %c0_83 = arith.constant 0 : index
    %89 = arith.index_cast %88 : i32 to index
    %c2_84 = arith.constant 2 : index
    %c0_85 = arith.constant 0 : index
    %90 = vector.load %arg2[%c0_83, %89, %c2_84, %c0_85] : memref<1x18x18x4xbf16, #tpu.memory_space<vmem>>, vector<1x8x16x4xbf16>
    %91 = vector.shape_cast %90 : vector<1x8x16x4xbf16> to vector<8x16x4xbf16>
    %92 = vector.shape_cast %91 : vector<8x16x4xbf16> to vector<128x4xbf16>
    %c8 = arith.constant 8 : index
    %c0_86 = arith.constant 0 : index
    %c0_87 = arith.constant 0 : index
    %93 = vector.load %arg3[%c8, %c0_86, %c0_87] : memref<9x4x4xbf16, #tpu.memory_space<vmem>>, vector<1x4x4xbf16>
    %94 = vector.shape_cast %93 : vector<1x4x4xbf16> to vector<4x4xbf16>
    %cst_88 = arith.constant dense<0.000000e+00> : vector<128x4xf32>
    %95 = tpu.matmul %92, %94, %cst_88 {dimension_numbers = #tpu.dot_dimension_numbers<[1], [0], [0], [1], [0, 0, 1, 1], [], []>} : vector<128x4xbf16>, vector<4x4xbf16>, vector<128x4xf32> -> vector<128x4xf32>
    %c0_89 = arith.constant 0 : index
    %c0_90 = arith.constant 0 : index
    %96 = vector.load %arg6[%c0_89, %c0_90] : memref<128x4xf32, #tpu.memory_space<vmem>>, vector<128x4xf32>
    %97 = arith.addf %96, %95 : vector<128x4xf32>
    %c0_91 = arith.constant 0 : index
    %c0_92 = arith.constant 0 : index
    %98 = vector.load %arg6[%c0_91, %c0_92] : memref<128x4xf32, #tpu.memory_space<vmem>>, vector<128x4xf32>
    tpu.vector_store %arg6[%c0_91, %c0_92], %97 {strides = array<i32>} : memref<128x4xf32, #tpu.memory_space<vmem>>, vector<128x4xf32>,
    %c0_93 = arith.constant 0 : index
    %c0_94 = arith.constant 0 : index
    %99 = vector.load %arg6[%c0_93, %c0_94] : memref<128x4xf32, #tpu.memory_space<vmem>>, vector<128x4xf32>
    %c0_95 = arith.constant 0 : index
    %c0_96 = arith.constant 0 : index
    %100 = vector.load %arg4[%c0_95, %c0_96] : memref<1x4xf32, #tpu.memory_space<vmem>>, vector<1x4xf32>
    %101 = vector.broadcast %100 : vector<1x4xf32> to vector<128x4xf32>
    %102 = arith.addf %99, %101 : vector<128x4xf32>
    %cst_97 = arith.constant 0.000000e+00 : f32
    %103 = vector.broadcast %cst_97 : f32 to vector<128x4xf32>
    %104 = arith.maximumf %102, %103 : vector<128x4xf32>
    %105 = vector.shape_cast %104 : vector<128x4xf32> to vector<8x16x4xf32>
    %106 = arith.truncf %105 : vector<8x16x4xf32> to vector<8x16x4xbf16>
    %c0_98 = arith.constant 0 : index
    %c0_99 = arith.constant 0 : index
    %c0_100 = arith.constant 0 : index
    %c0_101 = arith.constant 0 : index
    %107 = vector.load %arg5[%c0_98, %c0_99, %c0_100, %c0_101] : memref<1x8x16x4xbf16, #tpu.memory_space<vmem>>, vector<1x8x16x4xbf16>
    %108 = vector.shape_cast %107 : vector<1x8x16x4xbf16> to vector<8x16x4xbf16>
    %109 = vector.shape_cast %106 : vector<8x16x4xbf16> to vector<1x8x16x4xbf16>
    tpu.vector_store %arg5[%c0_98, %c0_99, %c0_100, %c0_101], %109 {strides = array<i32>} : memref<1x8x16x4xbf16, #tpu.memory_space<vmem>>, vector<1x8x16x4xbf16>,
    return
  }
  func.func @transform_0(%arg0: i32, %arg1: i32) -> (i32, i32, i32, i32) {
    %c0_i32 = arith.constant 0 : i32
    %c0_i32_0 = arith.constant 0 : i32
    %c0_i32_1 = arith.constant 0 : i32
    %c0_i32_2 = arith.constant 0 : i32
    return %arg0, %c0_i32, %c0_i32_0, %c0_i32_1 : i32, i32, i32, i32
  }
  func.func @transform_1(%arg0: i32, %arg1: i32) -> (i32, i32, i32) {
    %c0_i32 = arith.constant 0 : i32
    %c0_i32_0 = arith.constant 0 : i32
    %c0_i32_1 = arith.constant 0 : i32
    %c0_i32_2 = arith.constant 0 : i32
    return %c0_i32, %c0_i32_0, %c0_i32_1 : i32, i32, i32
  }
  func.func @transform_2(%arg0: i32, %arg1: i32) -> (i32, i32) {
    %c0_i32 = arith.constant 0 : i32
    %c0_i32_0 = arith.constant 0 : i32
    %c0_i32_1 = arith.constant 0 : i32
    return %c0_i32, %c0_i32_0 : i32, i32
  }
  func.func @transform_3(%arg0: i32, %arg1: i32) -> (i32, i32, i32, i32) {
    %c0_i32 = arith.constant 0 : i32
    %c0_i32_0 = arith.constant 0 : i32
    %c0_i32_1 = arith.constant 0 : i32
    return %arg0, %arg1, %c0_i32, %c0_i32_0 : i32, i32, i32, i32
  }
}

module attributes {stable_mosaic.version = 11 : i64} {
  func.func @_mm_bias_res_kernel(%arg0: i32, %arg1: memref<512x4xbf16, #tpu.memory_space<vmem>>, %arg2: memref<4x16xbf16, #tpu.memory_space<vmem>>, %arg3: memref<1x16xf32, #tpu.memory_space<vmem>>, %arg4: memref<512x16xf32, #tpu.memory_space<vmem>>, %arg5: memref<512x16xf32, #tpu.memory_space<vmem>>) attributes {dimension_semantics = [#tpu.dimension_semantics<parallel>], iteration_bounds = array<i64: 1>, scalar_prefetch = 0 : i64, scratch_operands = 0 : i64, tpu.core_type = #tpu.core_type<tc>, window_params = [{transform_indices = @transform_0, window_bounds = array<i64: 512, 4>}, {pipeline_mode = #tpu.pipeline_mode<synchronous>, transform_indices = @transform_1, window_bounds = array<i64: 4, 16>}, {pipeline_mode = #tpu.pipeline_mode<synchronous>, transform_indices = @transform_2, window_bounds = array<i64: 1, 16>}, {transform_indices = @transform_3, window_bounds = array<i64: 512, 16>}, {transform_indices = @transform_4, window_bounds = array<i64: 512, 16>}]} {
    %c0 = arith.constant 0 : index
    %c0_0 = arith.constant 0 : index
    %0 = vector.load %arg1[%c0, %c0_0] : memref<512x4xbf16, #tpu.memory_space<vmem>>, vector<512x4xbf16>
    %c0_1 = arith.constant 0 : index
    %c0_2 = arith.constant 0 : index
    %1 = vector.load %arg2[%c0_1, %c0_2] : memref<4x16xbf16, #tpu.memory_space<vmem>>, vector<4x16xbf16>
    %cst = arith.constant dense<0.000000e+00> : vector<512x16xf32>
    %2 = tpu.matmul %0, %1, %cst {dimension_numbers = #tpu.dot_dimension_numbers<[1], [0], [0], [1], [0, 0, 1, 1], [], []>} : vector<512x4xbf16>, vector<4x16xbf16>, vector<512x16xf32> -> vector<512x16xf32>
    %c0_3 = arith.constant 0 : index
    %c0_4 = arith.constant 0 : index
    %3 = vector.load %arg3[%c0_3, %c0_4] : memref<1x16xf32, #tpu.memory_space<vmem>>, vector<1x16xf32>
    %4 = vector.broadcast %3 : vector<1x16xf32> to vector<512x16xf32>
    %5 = arith.addf %2, %4 : vector<512x16xf32>
    %c0_5 = arith.constant 0 : index
    %c0_6 = arith.constant 0 : index
    %6 = vector.load %arg4[%c0_5, %c0_6] : memref<512x16xf32, #tpu.memory_space<vmem>>, vector<512x16xf32>
    %7 = arith.addf %5, %6 : vector<512x16xf32>
    %cst_7 = arith.constant 0.000000e+00 : f32
    %8 = vector.broadcast %cst_7 : f32 to vector<512x16xf32>
    %9 = arith.maximumf %7, %8 : vector<512x16xf32>
    %c0_8 = arith.constant 0 : index
    %c0_9 = arith.constant 0 : index
    %10 = vector.load %arg5[%c0_8, %c0_9] : memref<512x16xf32, #tpu.memory_space<vmem>>, vector<512x16xf32>
    tpu.vector_store %arg5[%c0_8, %c0_9], %9 {strides = array<i32>} : memref<512x16xf32, #tpu.memory_space<vmem>>, vector<512x16xf32>,
    return
  }
  func.func @transform_0(%arg0: i32) -> (i32, i32) {
    %c0_i32 = arith.constant 0 : i32
    %c0_i32_0 = arith.constant 0 : i32
    return %arg0, %c0_i32 : i32, i32
  }
  func.func @transform_1(%arg0: i32) -> (i32, i32) {
    %c0_i32 = arith.constant 0 : i32
    %c0_i32_0 = arith.constant 0 : i32
    %c0_i32_1 = arith.constant 0 : i32
    return %c0_i32, %c0_i32_0 : i32, i32
  }
  func.func @transform_2(%arg0: i32) -> (i32, i32) {
    %c0_i32 = arith.constant 0 : i32
    %c0_i32_0 = arith.constant 0 : i32
    %c0_i32_1 = arith.constant 0 : i32
    return %c0_i32, %c0_i32_0 : i32, i32
  }
  func.func @transform_3(%arg0: i32) -> (i32, i32) {
    %c0_i32 = arith.constant 0 : i32
    %c0_i32_0 = arith.constant 0 : i32
    return %arg0, %c0_i32 : i32, i32
  }
  func.func @transform_4(%arg0: i32) -> (i32, i32) {
    %c0_i32 = arith.constant 0 : i32
    %c0_i32_0 = arith.constant 0 : i32
    return %arg0, %c0_i32 : i32, i32
  }
}

</mosaic_0001>

<bundles_post_ra>
// kernel: bottleneck_pallas.5
= control target key start
LH: loop header
LB: loop body
LE: loop exit
PB: predicated region body
PF: predicated region fallthrough
CT: control target
= control target key end

     0   :  { %vm347_vm0 = vcmask 1041408   ;;  %vm250_vm1 = vcmask 31744   ;;  %vm832_vm2 = vcmask 130048   ;;  %s1774_s1 = inlined_call_operand.vmem [shape: bf16[4,16], index: 1, kind: input, shape index: {}]   ;;  %s1775_s0 = inlined_call_operand.vmem [shape: bf16[512,4], index: 0, kind: input, shape index: {}]   ;;  %s1776_s2 = inlined_call_operand.vmem [shape: f32[1,16], index: 2, kind: input, shape index: {}]   ;;  %s1777_s3 = inlined_call_operand.vmem [shape: f32[512,16], index: 3, kind: input, shape index: {}]   ;;  %s1778_s4 = inlined_call_operand.vmem [shape: f32[512,16], index: 4, kind: output, shape index: {}]  }
   0x1   :  { %v82_v0 = vld [vmem:[%s1774_s1] sm:$0x3]  ;;  %v1071_v4 = vld [vmem:[%s1775_s0 + $0x8] sm:$0xff]   ;;  %v1073_v6 = vld [vmem:[%s1775_s0 + $0x10] sm:$0xff]  }
   0x2   :  { %1067 = vmatprep.subr.msk.bf16.mxu0 %vm347_vm0, %v82_v0  ;;  %1068 = vmatprep.subr.msk.bf16.mxu1 %vm347_vm0, %v82_v0  ;;  %v349_v1 = vsel %vm347_vm0, %v82_v0, 0  ;;  %v1069_v2 = vld [vmem:[%s1775_s0] sm:$0xff]   ;;  %v1072_v5 = vld [vmem:[%s1775_s0 + $0x88] sm:$0xff]   ;;  %v1074_v7 = vld [vmem:[%s1775_s0 + $0x90] sm:$0xff]  }
   0x3   :  { %1000 = vmatpush3.bf16.msra.mxu0 %v349_v1  ;;  %1066 = vmatpush3.bf16.msra.mxu1 %v349_v1  ;;  %v1070_v3 = vld [vmem:[%s1775_s0 + $0x80] sm:$0xff]   ;;  %v1075_v8 = vld [vmem:[%s1775_s0 + $0x18] sm:$0xff]   ;;  %v1079_v12 = vld [vmem:[%s1775_s0 + $0x28] sm:$0xff]  }
   0x4   :  { %1001 = vmatprep.mubr.msk.bf16.mxu0 %vm250_vm1, %v1069_v2  ;;  %1033 = vmatprep.mubr.msk.bf16.mxu1 %vm250_vm1, %v1070_v3  ;;  %v1076_v9 = vld [vmem:[%s1775_s0 + $0x98] sm:$0xff]   ;;  %v1077_v10 = vld [vmem:[%s1775_s0 + $0x20] sm:$0xff]   ;;  %v1080_v13 = vld [vmem:[%s1775_s0 + $0xa8] sm:$0xff]  }
   0x5   :  { %v1078_v11 = vld [vmem:[%s1775_s0 + $0xa0] sm:$0xff]   ;;  %v1081_v14 = vld [vmem:[%s1775_s0 + $0x30] sm:$0xff]   ;;  %v1083_v16 = vld [vmem:[%s1775_s0 + $0x38] sm:$0xff]  }
   0x6   :  { %1002 = vmatmul.mubr.msk.bf16.vlgmr.msra.gmra.mrb[0].mxu0 %vm250_vm1, %v1071_v4  ;;  %1034 = vmatmul.mubr.msk.bf16.vlgmr.msra.gmra.mrb[0].mxu1 %vm250_vm1, %v1072_v5  ;;  %v1082_v15 = vld [vmem:[%s1775_s0 + $0xb0] sm:$0xff]   ;;  %v1084_v17 = vld [vmem:[%s1775_s0 + $0xb8] sm:$0xff]   ;;  %v1085_v18 = vld [vmem:[%s1775_s0 + $0x40] sm:$0xff]  }
   0x7   :  { %1005 = vmatprep.mubr.msk.bf16.mxu0 %vm250_vm1, %v1073_v6  ;;  %1037 = vmatprep.mubr.msk.bf16.mxu1 %vm250_vm1, %v1074_v7  ;;  %v1086_v19 = vld [vmem:[%s1775_s0 + $0xc0] sm:$0xff]   ;;  %v1087_v20 = vld [vmem:[%s1775_s0 + $0x48] sm:$0xff]   ;;  %v1089_v22 = vld [vmem:[%s1775_s0 + $0x50] sm:$0xff]  }
   0x8   :  { %v1088_v21 = vld [vmem:[%s1775_s0 + $0xc8] sm:$0xff]   ;;  %v1090_v23 = vld [vmem:[%s1775_s0 + $0xd0] sm:$0xff]   ;;  %v1091_v24 = vld [vmem:[%s1775_s0 + $0x58] sm:$0xff]  }
   0x9   :  { %v1092_v25 = vld [vmem:[%s1775_s0 + $0xd8] sm:$0xff]   ;;  %v1093_v26 = vld [vmem:[%s1775_s0 + $0x60] sm:$0xff]   ;;  %v1095_v28 = vld [vmem:[%s1775_s0 + $0x68] sm:$0xff]  }
   0xa   :  { %v1094_v27 = vld [vmem:[%s1775_s0 + $0xe0] sm:$0xff]   ;;  %v1096_v29 = vld [vmem:[%s1775_s0 + $0xe8] sm:$0xff]   ;;  %v1097_v30 = vld [vmem:[%s1775_s0 + $0x70] sm:$0xff]  }
   0xb   :  { %v1098_v31 = vld [vmem:[%s1775_s0 + $0xf0] sm:$0xff]   ;;  %v1099_v32 = vld [vmem:[%s1775_s0 + $0x78] sm:$0xff]   ;;  %v1260_v34 = vld [vmem:[%s1776_s2] ss:$0 sm:$0xff] }
   0xc   :  { %v1100_v33 = vld [vmem:[%s1775_s0 + $0xf8] sm:$0xff]   ;;  %v642_v36 = vld [vmem:[%s1777_s3 + $0x10] sm:$0xff]  ;;  %v640_v41 = vld [vmem:[%s1777_s3] sm:$0xff] }
   0xd   :  { %v674_v39 = vld [vmem:[%s1777_s3 + $0x110] sm:$0xff]  ;;  %v672_v45 = vld [vmem:[%s1777_s3 + $0x100] sm:$0xff]  ;;  %v643_v47 = vld [vmem:[%s1777_s3 + $0x18] sm:$0xff] }
   0xe   :  { %1006 = vmatmul.mubr.msk.bf16.gmra.mrb[4].mxu0 %vm250_vm1, %v1075_v8  ;;  %1038 = vmatmul.mubr.msk.bf16.gmra.mrb[4].mxu1 %vm250_vm1, %v1076_v9  ;;  %v675_v52 = vld [vmem:[%s1777_s3 + $0x118] sm:$0xff]  ;;  %v641_v54 = vld [vmem:[%s1777_s3 + $0x8] sm:$0xff] }
   0xf   :  { %1009 = vmatprep.mubr.msk.bf16.mxu0 %vm250_vm1, %v1077_v10  ;;  %1041 = vmatprep.mubr.msk.bf16.mxu1 %vm250_vm1, %v1078_v11  ;;  %v673_v60 = vld [vmem:[%s1777_s3 + $0x108] sm:$0xff]  ;;  %v646_v11 = vld [vmem:[%s1777_s3 + $0x30] sm:$0xff] }
  0x16   :  { %1010 = vmatmul.mubr.msk.bf16.gmra.mrb[8].mxu0 %vm250_vm1, %v1079_v12  ;;  %1042 = vmatmul.mubr.msk.bf16.gmra.mrb[8].mxu1 %vm250_vm1, %v1080_v13 }
  0x17   :  { %1013 = vmatprep.mubr.msk.bf16.mxu0 %vm250_vm1, %v1081_v14  ;;  %1045 = vmatprep.mubr.msk.bf16.mxu1 %vm250_vm1, %v1082_v15  ;;  %v678_v15 = vld [vmem:[%s1777_s3 + $0x130] sm:$0xff] }
  0x1e   :  { %1014 = vmatmul.mubr.msk.bf16.gmra.mrb[12].mxu0 %vm250_vm1, %v1083_v16  ;;  %1046 = vmatmul.mubr.msk.bf16.gmra.mrb[12].mxu1 %vm250_vm1, %v1084_v17  ;;  %v644_v17 = vld [vmem:[%s1777_s3 + $0x20] sm:$0xff] }
  0x1f   :  { %1017 = vmatprep.mubr.msk.bf16.mxu0 %vm250_vm1, %v1085_v18  ;;  %1049 = vmatprep.mubr.msk.bf16.mxu1 %vm250_vm1, %v1086_v19 }
  0x26   :  { %1018 = vmatmul.mubr.msk.bf16.gmra.mrb[16].mxu0 %vm250_vm1, %v1087_v20  ;;  %1050 = vmatmul.mubr.msk.bf16.gmra.mrb[16].mxu1 %vm250_vm1, %v1088_v21  ;;  %v676_v21 = vld [vmem:[%s1777_s3 + $0x120] sm:$0xff] }
  0x27   :  { %1021 = vmatprep.mubr.msk.bf16.mxu0 %vm250_vm1, %v1089_v22  ;;  %1053 = vmatprep.mubr.msk.bf16.mxu1 %vm250_vm1, %v1090_v23  ;;  %v647_v23 = vld [vmem:[%s1777_s3 + $0x38] sm:$0xff] }
  0x2e   :  { %1022 = vmatmul.mubr.msk.bf16.gmra.mrb[20].mxu0 %vm250_vm1, %v1091_v24  ;;  %1054 = vmatmul.mubr.msk.bf16.gmra.mrb[20].mxu1 %vm250_vm1, %v1092_v25 }
  0x2f   :  { %1025 = vmatprep.mubr.msk.bf16.mxu0 %vm250_vm1, %v1093_v26  ;;  %1057 = vmatprep.mubr.msk.bf16.mxu1 %vm250_vm1, %v1094_v27 }
  0x36   :  { %1026 = vmatmul.mubr.msk.bf16.gmra.mrb[24].mxu0 %vm250_vm1, %v1095_v28  ;;  %1058 = vmatmul.mubr.msk.bf16.gmra.mrb[24].mxu1 %vm250_vm1, %v1096_v29  ;;  %v679_v28 = vld [vmem:[%s1777_s3 + $0x138] sm:$0xff] }
  0x37   :  { %1029 = vmatprep.mubr.msk.bf16.mxu0 %vm250_vm1, %v1097_v30  ;;  %1061 = vmatprep.mubr.msk.bf16.mxu1 %vm250_vm1, %v1098_v31  ;;  %v645_v30 = vld [vmem:[%s1777_s3 + $0x28] sm:$0xff] }
  0x3e   :  { %1030 = vmatmul.mubr.msk.bf16.gmra.mrb[28].mxu0 %vm250_vm1, %v1099_v32  ;;  %1062 = vmatmul.mubr.msk.bf16.gmra.mrb[28].mxu1 %vm250_vm1, %v1100_v33 }
  0xd9   :  { %v1003_v35 = vpop.f32.mrb[0].mxu0  ;;  %v1035_v38 = vpop.f32.mrb[0].mxu1 }
  0xda   :  { %v394_v37 = vadd.f32 %v1003_v35, %v1260_v34  ;;  %v385_v40 = vpop.f32.mrb[1].mxu0  ;;  %v522_v42 = vadd.f32 %v1035_v38, %v1260_v34  ;;  %v513_v44 = vpop.f32.mrb[1].mxu1 }
  0xdb   :  { %v386_v43 = vadd.f32 %v1260_v34, %v385_v40  ;;  %v1004_v46 = vpop.f32.mrb[2].mxu0  ;;  %v514_v49 = vadd.f32 %v1260_v34, %v513_v44  ;;  %v1036_v51 = vpop.f32.mrb[2].mxu1 }
  0xdc   :  { %v706_v48 = vadd.f32 %v642_v36, %v394_v37  ;;  %v397_v50 = vadd.f32 %v1004_v46, %v1260_v34  ;;  %v388_v53 = vpop.f32.mrb[3].mxu0  ;;  %v738_v55 = vadd.f32 %v674_v39, %v522_v42  ;;  %v525_v57 = vadd.f32 %v1036_v51, %v1260_v34  ;;  %v516_v59 = vpop.f32.mrb[3].mxu1  ;;  %v677_v37 = vld [vmem:[%s1777_s3 + $0x128] sm:$0xff] }
  0xdd   :  { %v704_v56 = vadd.f32 %v640_v41, %v386_v43  ;;  %v389_v58 = vadd.f32 %v1260_v34, %v388_v53  ;;  %v736_v62 = vadd.f32 %v672_v45, %v514_v49  ;;  %v517_v0 = vadd.f32 %v1260_v34, %v516_v59 }
  0xde   :  { %v770_v61 = vmax.f32 %v706_v48, 0.0  ;;  %v707_v63 = vadd.f32 %v643_v47, %v397_v50  ;;  %v802_v1 = vmax.f32 %v738_v55, 0.0  ;;  %v739_v3 = vadd.f32 %v675_v52, %v525_v57  ;;  %v650_v52 = vld [vmem:[%s1777_s3 + $0x50] sm:$0xff] }
  0xdf   :  { %v768_v2 = vmax.f32 %v704_v56, 0.0  ;;  %v705_v4 = vadd.f32 %v641_v54, %v389_v58  ;;  %v800_v5 = vmax.f32 %v736_v62, 0.0  ;;  %v737_v7 = vadd.f32 %v673_v60, %v517_v0  ;;  %v682_v56 = vld [vmem:[%s1777_s3 + $0x150] sm:$0xff]  ;;  %v648_v58 = vld [vmem:[%s1777_s3 + $0x40] sm:$0xff]  ;;  %v651_v0 = vld [vmem:[%s1777_s3 + $0x58] sm:$0xff] }
  0xe0   :  { %835 = vst.msk [vmem:[%s1778_s4 + $0x10] sm:$0xff] %vm832_vm2, %v770_v61  ;;  %v771_v6 = vmax.f32 %v707_v63, 0.0  ;;  %867 = vst.msk [vmem:[%s1778_s4 + $0x110] sm:$0xff] %vm832_vm2, %v802_v1  ;;  %v803_v8 = vmax.f32 %v739_v3, 0.0  ;;  %v680_v62 = vld [vmem:[%s1777_s3 + $0x140] sm:$0xff] }
  0xe1   :  { %833 = vst.msk [vmem:[%s1778_s4] sm:$0xff] %vm832_vm2, %v768_v2  ;;  %v769_v9 = vmax.f32 %v705_v4, 0.0  ;;  %v1007_v10 = vpop.f32.mrb[4].mxu0  ;;  %865 = vst.msk [vmem:[%s1778_s4 + $0x100] sm:$0xff] %vm832_vm2, %v800_v5  ;;  %v801_v12 = vmax.f32 %v737_v7, 0.0  ;;  %v1039_v14 = vpop.f32.mrb[4].mxu1 }
  0xe2   :  { %836 = vst.msk [vmem:[%s1778_s4 + $0x18] sm:$0xff] %vm832_vm2, %v771_v6  ;;  %v410_v13 = vadd.f32 %v1007_v10, %v1260_v34  ;;  %v401_v16 = vpop.f32.mrb[5].mxu0  ;;  %868 = vst.msk [vmem:[%s1778_s4 + $0x118] sm:$0xff] %vm832_vm2, %v803_v8  ;;  %v538_v18 = vadd.f32 %v1039_v14, %v1260_v34  ;;  %v529_v20 = vpop.f32.mrb[5].mxu1  ;;  %v683_v5 = vld [vmem:[%s1777_s3 + $0x158] sm:$0xff]  ;;  %v649_v7 = vld [vmem:[%s1777_s3 + $0x48] sm:$0xff] }
  0xe3   :  { %834 = vst.msk [vmem:[%s1778_s4 + $0x8] sm:$0xff] %vm832_vm2, %v769_v9  ;;  %v402_v19 = vadd.f32 %v1260_v34, %v401_v16  ;;  %v1008_v22 = vpop.f32.mrb[6].mxu0  ;;  %866 = vst.msk [vmem:[%s1778_s4 + $0x108] sm:$0xff] %vm832_vm2, %v801_v12  ;;  %v530_v25 = vadd.f32 %v1260_v34, %v529_v20  ;;  %v1040_v27 = vpop.f32.mrb[6].mxu1 }
  0xe4   :  { %v710_v24 = vadd.f32 %v646_v11, %v410_v13  ;;  %v413_v26 = vadd.f32 %v1008_v22, %v1260_v34  ;;  %v404_v29 = vpop.f32.mrb[7].mxu0  ;;  %v742_v31 = vadd.f32 %v678_v15, %v538_v18  ;;  %v541_v33 = vadd.f32 %v1040_v27, %v1260_v34  ;;  %v532_v36 = vpop.f32.mrb[7].mxu1  ;;  %v681_v13 = vld [vmem:[%s1777_s3 + $0x148] sm:$0xff] }
  0xe5   :  { %v708_v32 = vadd.f32 %v644_v17, %v402_v19  ;;  %v405_v35 = vadd.f32 %v1260_v34, %v404_v29  ;;  %v740_v39 = vadd.f32 %v676_v21, %v530_v25  ;;  %v533_v41 = vadd.f32 %v1260_v34, %v532_v36 }
  0xe6   :  { %v774_v38 = vmax.f32 %v710_v24, 0.0  ;;  %v711_v40 = vadd.f32 %v647_v23, %v413_v26  ;;  %v806_v42 = vmax.f32 %v742_v31, 0.0  ;;  %v743_v44 = vadd.f32 %v679_v28, %v541_v33  ;;  %v654_v28 = vld [vmem:[%s1777_s3 + $0x70] sm:$0xff] }
  0xe7   :  { %v772_v43 = vmax.f32 %v708_v32, 0.0  ;;  %v709_v45 = vadd.f32 %v645_v30, %v405_v35  ;;  %v804_v46 = vmax.f32 %v740_v39, 0.0  ;;  %v741_v48 = vadd.f32 %v677_v37, %v533_v41  ;;  %v686_v32 = vld [vmem:[%s1777_s3 + $0x170] sm:$0xff]  ;;  %v652_v35 = vld [vmem:[%s1777_s3 + $0x60] sm:$0xff]  ;;  %v655_v41 = vld [vmem:[%s1777_s3 + $0x78] sm:$0xff] }
  0xe8   :  { %839 = vst.msk [vmem:[%s1778_s4 + $0x30] sm:$0xff] %vm832_vm2, %v774_v38  ;;  %v775_v47 = vmax.f32 %v711_v40, 0.0  ;;  %871 = vst.msk [vmem:[%s1778_s4 + $0x130] sm:$0xff] %vm832_vm2, %v806_v42  ;;  %v807_v49 = vmax.f32 %v743_v44, 0.0  ;;  %v684_v39 = vld [vmem:[%s1777_s3 + $0x160] sm:$0xff] }
  0xe9   :  { %837 = vst.msk [vmem:[%s1778_s4 + $0x20] sm:$0xff] %vm832_vm2, %v772_v43  ;;  %v773_v50 = vmax.f32 %v709_v45, 0.0  ;;  %v1011_v51 = vpop.f32.mrb[8].mxu0  ;;  %869 = vst.msk [vmem:[%s1778_s4 + $0x120] sm:$0xff] %vm832_vm2, %v804_v46  ;;  %v805_v53 = vmax.f32 %v741_v48, 0.0  ;;  %v1043_v55 = vpop.f32.mrb[8].mxu1 }
  0xea   :  { %840 = vst.msk [vmem:[%s1778_s4 + $0x38] sm:$0xff] %vm832_vm2, %v775_v47  ;;  %v426_v54 = vadd.f32 %v1011_v51, %v1260_v34  ;;  %v417_v57 = vpop.f32.mrb[9].mxu0  ;;  %872 = vst.msk [vmem:[%s1778_s4 + $0x138] sm:$0xff] %vm832_vm2, %v807_v49  ;;  %v554_v59 = vadd.f32 %v1043_v55, %v1260_v34  ;;  %v545_v61 = vpop.f32.mrb[9].mxu1  ;;  %v687_v46 = vld [vmem:[%s1777_s3 + $0x178] sm:$0xff]  ;;  %v653_v48 = vld [vmem:[%s1777_s3 + $0x68] sm:$0xff] }
  0xeb   :  { %838 = vst.msk [vmem:[%s1778_s4 + $0x28] sm:$0xff] %vm832_vm2, %v773_v50  ;;  %v418_v60 = vadd.f32 %v1260_v34, %v417_v57  ;;  %v1012_v63 = vpop.f32.mrb[10].mxu0  ;;  %870 = vst.msk [vmem:[%s1778_s4 + $0x128] sm:$0xff] %vm832_vm2, %v805_v53  ;;  %v546_v2 = vadd.f32 %v1260_v34, %v545_v61  ;;  %v1044_v4 = vpop.f32.mrb[10].mxu1 }
  0xec   :  { %v714_v1 = vadd.f32 %v650_v52, %v426_v54  ;;  %v429_v3 = vadd.f32 %v1012_v63, %v1260_v34  ;;  %v420_v6 = vpop.f32.mrb[11].mxu0  ;;  %v746_v8 = vadd.f32 %v682_v56, %v554_v59  ;;  %v557_v10 = vadd.f32 %v1044_v4, %v1260_v34  ;;  %v548_v12 = vpop.f32.mrb[11].mxu1  ;;  %v685_v54 = vld [vmem:[%s1777_s3 + $0x168] sm:$0xff] }
  0xed   :  { %v712_v9 = vadd.f32 %v648_v58, %v418_v60  ;;  %v421_v11 = vadd.f32 %v1260_v34, %v420_v6  ;;  %v744_v15 = vadd.f32 %v680_v62, %v546_v2  ;;  %v549_v17 = vadd.f32 %v1260_v34, %v548_v12 }
  0xee   :  { %v778_v14 = vmax.f32 %v714_v1, 0.0  ;;  %v715_v16 = vadd.f32 %v651_v0, %v429_v3  ;;  %v810_v18 = vmax.f32 %v746_v8, 0.0  ;;  %v747_v20 = vadd.f32 %v683_v5, %v557_v10  ;;  %v658_v5 = vld [vmem:[%s1777_s3 + $0x90] sm:$0xff] }
  0xef   :  { %v776_v19 = vmax.f32 %v712_v9, 0.0  ;;  %v713_v21 = vadd.f32 %v649_v7, %v421_v11  ;;  %v808_v22 = vmax.f32 %v744_v15, 0.0  ;;  %v745_v24 = vadd.f32 %v681_v13, %v549_v17  ;;  %v690_v9 = vld [vmem:[%s1777_s3 + $0x190] sm:$0xff]  ;;  %v656_v11 = vld [vmem:[%s1777_s3 + $0x80] sm:$0xff]  ;;  %v659_v17 = vld [vmem:[%s1777_s3 + $0x98] sm:$0xff] }
  0xf0   :  { %843 = vst.msk [vmem:[%s1778_s4 + $0x50] sm:$0xff] %vm832_vm2, %v778_v14  ;;  %v779_v23 = vmax.f32 %v715_v16, 0.0  ;;  %875 = vst.msk [vmem:[%s1778_s4 + $0x150] sm:$0xff] %vm832_vm2, %v810_v18  ;;  %v811_v25 = vmax.f32 %v747_v20, 0.0  ;;  %v688_v15 = vld [vmem:[%s1777_s3 + $0x180] sm:$0xff] }
  0xf1   :  { %841 = vst.msk [vmem:[%s1778_s4 + $0x40] sm:$0xff] %vm832_vm2, %v776_v19  ;;  %v777_v26 = vmax.f32 %v713_v21, 0.0  ;;  %v1015_v27 = vpop.f32.mrb[12].mxu0  ;;  %873 = vst.msk [vmem:[%s1778_s4 + $0x140] sm:$0xff] %vm832_vm2, %v808_v22  ;;  %v809_v29 = vmax.f32 %v745_v24, 0.0  ;;  %v1047_v31 = vpop.f32.mrb[12].mxu1 }
  0xf2   :  { %844 = vst.msk [vmem:[%s1778_s4 + $0x58] sm:$0xff] %vm832_vm2, %v779_v23  ;;  %v442_v30 = vadd.f32 %v1015_v27, %v1260_v34  ;;  %v433_v33 = vpop.f32.mrb[13].mxu0  ;;  %876 = vst.msk [vmem:[%s1778_s4 + $0x158] sm:$0xff] %vm832_vm2, %v811_v25  ;;  %v570_v36 = vadd.f32 %v1047_v31, %v1260_v34  ;;  %v561_v38 = vpop.f32.mrb[13].mxu1  ;;  %v691_v22 = vld [vmem:[%s1777_s3 + $0x198] sm:$0xff]  ;;  %v657_v24 = vld [vmem:[%s1777_s3 + $0x88] sm:$0xff] }
  0xf3   :  { %842 = vst.msk [vmem:[%s1778_s4 + $0x48] sm:$0xff] %vm832_vm2, %v777_v26  ;;  %v434_v37 = vadd.f32 %v1260_v34, %v433_v33  ;;  %v1016_v40 = vpop.f32.mrb[14].mxu0  ;;  %874 = vst.msk [vmem:[%s1778_s4 + $0x148] sm:$0xff] %vm832_vm2, %v809_v29  ;;  %v562_v43 = vadd.f32 %v1260_v34, %v561_v38  ;;  %v1048_v45 = vpop.f32.mrb[14].mxu1 }
  0xf4   :  { %v718_v42 = vadd.f32 %v654_v28, %v442_v30  ;;  %v445_v44 = vadd.f32 %v1016_v40, %v1260_v34  ;;  %v436_v47 = vpop.f32.mrb[15].mxu0  ;;  %v750_v49 = vadd.f32 %v686_v32, %v570_v36  ;;  %v573_v51 = vadd.f32 %v1048_v45, %v1260_v34  ;;  %v564_v53 = vpop.f32.mrb[15].mxu1  ;;  %v689_v30 = vld [vmem:[%s1777_s3 + $0x188] sm:$0xff] }
  0xf5   :  { %v716_v50 = vadd.f32 %v652_v35, %v434_v37  ;;  %v437_v52 = vadd.f32 %v1260_v34, %v436_v47  ;;  %v748_v56 = vadd.f32 %v684_v39, %v562_v43  ;;  %v565_v58 = vadd.f32 %v1260_v34, %v564_v53 }
  0xf6   :  { %v782_v55 = vmax.f32 %v718_v42, 0.0  ;;  %v719_v57 = vadd.f32 %v655_v41, %v445_v44  ;;  %v814_v59 = vmax.f32 %v750_v49, 0.0  ;;  %v751_v61 = vadd.f32 %v687_v46, %v573_v51  ;;  %v662_v46 = vld [vmem:[%s1777_s3 + $0xb0] sm:$0xff] }
  0xf7   :  { %v780_v60 = vmax.f32 %v716_v50, 0.0  ;;  %v717_v62 = vadd.f32 %v653_v48, %v437_v52  ;;  %v812_v63 = vmax.f32 %v748_v56, 0.0  ;;  %v749_v1 = vadd.f32 %v685_v54, %v565_v58  ;;  %v694_v50 = vld [vmem:[%s1777_s3 + $0x1b0] sm:$0xff]  ;;  %v660_v52 = vld [vmem:[%s1777_s3 + $0xa0] sm:$0xff]  ;;  %v663_v58 = vld [vmem:[%s1777_s3 + $0xb8] sm:$0xff] }
  0xf8   :  { %847 = vst.msk [vmem:[%s1778_s4 + $0x70] sm:$0xff] %vm832_vm2, %v782_v55  ;;  %v783_v0 = vmax.f32 %v719_v57, 0.0  ;;  %879 = vst.msk [vmem:[%s1778_s4 + $0x170] sm:$0xff] %vm832_vm2, %v814_v59  ;;  %v815_v2 = vmax.f32 %v751_v61, 0.0  ;;  %v692_v56 = vld [vmem:[%s1777_s3 + $0x1a0] sm:$0xff] }
  0xf9   :  { %845 = vst.msk [vmem:[%s1778_s4 + $0x60] sm:$0xff] %vm832_vm2, %v780_v60  ;;  %v781_v3 = vmax.f32 %v717_v62, 0.0  ;;  %v1019_v4 = vpop.f32.mrb[16].mxu0  ;;  %877 = vst.msk [vmem:[%s1778_s4 + $0x160] sm:$0xff] %vm832_vm2, %v812_v63  ;;  %v813_v6 = vmax.f32 %v749_v1, 0.0  ;;  %v1051_v8 = vpop.f32.mrb[16].mxu1 }
  0xfa   :  { %848 = vst.msk [vmem:[%s1778_s4 + $0x78] sm:$0xff] %vm832_vm2, %v783_v0  ;;  %v458_v7 = vadd.f32 %v1019_v4, %v1260_v34  ;;  %v449_v10 = vpop.f32.mrb[17].mxu0  ;;  %880 = vst.msk [vmem:[%s1778_s4 + $0x178] sm:$0xff] %vm832_vm2, %v815_v2  ;;  %v586_v12 = vadd.f32 %v1051_v8, %v1260_v34  ;;  %v577_v14 = vpop.f32.mrb[17].mxu1  ;;  %v695_v63 = vld [vmem:[%s1777_s3 + $0x1b8] sm:$0xff]  ;;  %v661_v1 = vld [vmem:[%s1777_s3 + $0xa8] sm:$0xff] }
  0xfb   :  { %846 = vst.msk [vmem:[%s1778_s4 + $0x68] sm:$0xff] %vm832_vm2, %v781_v3  ;;  %v450_v13 = vadd.f32 %v1260_v34, %v449_v10  ;;  %v1020_v16 = vpop.f32.mrb[18].mxu0  ;;  %878 = vst.msk [vmem:[%s1778_s4 + $0x168] sm:$0xff] %vm832_vm2, %v813_v6  ;;  %v578_v19 = vadd.f32 %v1260_v34, %v577_v14  ;;  %v1052_v21 = vpop.f32.mrb[18].mxu1 }
  0xfc   :  { %v722_v18 = vadd.f32 %v658_v5, %v458_v7  ;;  %v461_v20 = vadd.f32 %v1020_v16, %v1260_v34  ;;  %v452_v23 = vpop.f32.mrb[19].mxu0  ;;  %v754_v25 = vadd.f32 %v690_v9, %v586_v12  ;;  %v589_v27 = vadd.f32 %v1052_v21, %v1260_v34  ;;  %v580_v29 = vpop.f32.mrb[19].mxu1  ;;  %v693_v7 = vld [vmem:[%s1777_s3 + $0x1a8] sm:$0xff] }
  0xfd   :  { %v720_v26 = vadd.f32 %v656_v11, %v450_v13  ;;  %v453_v28 = vadd.f32 %v1260_v34, %v452_v23  ;;  %v752_v32 = vadd.f32 %v688_v15, %v578_v19  ;;  %v581_v35 = vadd.f32 %v1260_v34, %v580_v29 }
  0xfe   :  { %v786_v31 = vmax.f32 %v722_v18, 0.0  ;;  %v723_v33 = vadd.f32 %v659_v17, %v461_v20  ;;  %v818_v36 = vmax.f32 %v754_v25, 0.0  ;;  %v755_v38 = vadd.f32 %v691_v22, %v589_v27  ;;  %v666_v22 = vld [vmem:[%s1777_s3 + $0xd0] sm:$0xff] }
  0xff   :  { %v784_v37 = vmax.f32 %v720_v26, 0.0  ;;  %v721_v39 = vadd.f32 %v657_v24, %v453_v28  ;;  %v816_v40 = vmax.f32 %v752_v32, 0.0  ;;  %v753_v42 = vadd.f32 %v689_v30, %v581_v35  ;;  %v698_v26 = vld [vmem:[%s1777_s3 + $0x1d0] sm:$0xff]  ;;  %v664_v28 = vld [vmem:[%s1777_s3 + $0xc0] sm:$0xff]  ;;  %v667_v35 = vld [vmem:[%s1777_s3 + $0xd8] sm:$0xff] }
 0x100   :  { %851 = vst.msk [vmem:[%s1778_s4 + $0x90] sm:$0xff] %vm832_vm2, %v786_v31  ;;  %v787_v41 = vmax.f32 %v723_v33, 0.0  ;;  %883 = vst.msk [vmem:[%s1778_s4 + $0x190] sm:$0xff] %vm832_vm2, %v818_v36  ;;  %v819_v43 = vmax.f32 %v755_v38, 0.0  ;;  %v696_v32 = vld [vmem:[%s1777_s3 + $0x1c0] sm:$0xff] }
 0x101   :  { %849 = vst.msk [vmem:[%s1778_s4 + $0x80] sm:$0xff] %vm832_vm2, %v784_v37  ;;  %v785_v44 = vmax.f32 %v721_v39, 0.0  ;;  %v1023_v45 = vpop.f32.mrb[20].mxu0  ;;  %881 = vst.msk [vmem:[%s1778_s4 + $0x180] sm:$0xff] %vm832_vm2, %v816_v40  ;;  %v817_v47 = vmax.f32 %v753_v42, 0.0  ;;  %v1055_v49 = vpop.f32.mrb[20].mxu1 }
 0x102   :  { %852 = vst.msk [vmem:[%s1778_s4 + $0x98] sm:$0xff] %vm832_vm2, %v787_v41  ;;  %v474_v48 = vadd.f32 %v1023_v45, %v1260_v34  ;;  %v465_v51 = vpop.f32.mrb[21].mxu0  ;;  %884 = vst.msk [vmem:[%s1778_s4 + $0x198] sm:$0xff] %vm832_vm2, %v819_v43  ;;  %v602_v53 = vadd.f32 %v1055_v49, %v1260_v34  ;;  %v593_v55 = vpop.f32.mrb[21].mxu1  ;;  %v699_v40 = vld [vmem:[%s1777_s3 + $0x1d8] sm:$0xff]  ;;  %v665_v42 = vld [vmem:[%s1777_s3 + $0xc8] sm:$0xff] }
 0x103   :  { %850 = vst.msk [vmem:[%s1778_s4 + $0x88] sm:$0xff] %vm832_vm2, %v785_v44  ;;  %v466_v54 = vadd.f32 %v1260_v34, %v465_v51  ;;  %v1024_v57 = vpop.f32.mrb[22].mxu0  ;;  %882 = vst.msk [vmem:[%s1778_s4 + $0x188] sm:$0xff] %vm832_vm2, %v817_v47  ;;  %v594_v60 = vadd.f32 %v1260_v34, %v593_v55  ;;  %v1056_v62 = vpop.f32.mrb[22].mxu1 }
 0x104   :  { %v726_v59 = vadd.f32 %v662_v46, %v474_v48  ;;  %v477_v61 = vadd.f32 %v1024_v57, %v1260_v34  ;;  %v468_v0 = vpop.f32.mrb[23].mxu0  ;;  %v758_v2 = vadd.f32 %v694_v50, %v602_v53  ;;  %v605_v4 = vadd.f32 %v1056_v62, %v1260_v34  ;;  %v596_v6 = vpop.f32.mrb[23].mxu1  ;;  %v697_v48 = vld [vmem:[%s1777_s3 + $0x1c8] sm:$0xff] }
 0x105   :  { %v724_v3 = vadd.f32 %v660_v52, %v466_v54  ;;  %v469_v5 = vadd.f32 %v1260_v34, %v468_v0  ;;  %v756_v9 = vadd.f32 %v692_v56, %v594_v60  ;;  %v597_v11 = vadd.f32 %v1260_v34, %v596_v6 }
 0x106   :  { %v790_v8 = vmax.f32 %v726_v59, 0.0  ;;  %v727_v10 = vadd.f32 %v663_v58, %v477_v61  ;;  %v822_v12 = vmax.f32 %v758_v2, 0.0  ;;  %v759_v14 = vadd.f32 %v695_v63, %v605_v4  ;;  %v670_v63 = vld [vmem:[%s1777_s3 + $0xf0] sm:$0xff] }
 0x107   :  { %v788_v13 = vmax.f32 %v724_v3, 0.0  ;;  %v725_v15 = vadd.f32 %v661_v1, %v469_v5  ;;  %v820_v16 = vmax.f32 %v756_v9, 0.0  ;;  %v757_v18 = vadd.f32 %v693_v7, %v597_v11  ;;  %v702_v3 = vld [vmem:[%s1777_s3 + $0x1f0] sm:$0xff]  ;;  %v668_v5 = vld [vmem:[%s1777_s3 + $0xe0] sm:$0xff]  ;;  %v671_v11 = vld [vmem:[%s1777_s3 + $0xf8] sm:$0xff] }
 0x108   :  { %855 = vst.msk [vmem:[%s1778_s4 + $0xb0] sm:$0xff] %vm832_vm2, %v790_v8  ;;  %v791_v17 = vmax.f32 %v727_v10, 0.0  ;;  %887 = vst.msk [vmem:[%s1778_s4 + $0x1b0] sm:$0xff] %vm832_vm2, %v822_v12  ;;  %v823_v19 = vmax.f32 %v759_v14, 0.0  ;;  %v700_v9 = vld [vmem:[%s1777_s3 + $0x1e0] sm:$0xff] }
 0x109   :  { %853 = vst.msk [vmem:[%s1778_s4 + $0xa0] sm:$0xff] %vm832_vm2, %v788_v13  ;;  %v789_v20 = vmax.f32 %v725_v15, 0.0  ;;  %v1027_v21 = vpop.f32.mrb[24].mxu0  ;;  %885 = vst.msk [vmem:[%s1778_s4 + $0x1a0] sm:$0xff] %vm832_vm2, %v820_v16  ;;  %v821_v23 = vmax.f32 %v757_v18, 0.0  ;;  %v1059_v25 = vpop.f32.mrb[24].mxu1 }
 0x10a   :  { %856 = vst.msk [vmem:[%s1778_s4 + $0xb8] sm:$0xff] %vm832_vm2, %v791_v17  ;;  %v490_v24 = vadd.f32 %v1027_v21, %v1260_v34  ;;  %v481_v27 = vpop.f32.mrb[25].mxu0  ;;  %888 = vst.msk [vmem:[%s1778_s4 + $0x1b8] sm:$0xff] %vm832_vm2, %v823_v19  ;;  %v618_v29 = vadd.f32 %v1059_v25, %v1260_v34  ;;  %v609_v31 = vpop.f32.mrb[25].mxu1  ;;  %v703_v16 = vld [vmem:[%s1777_s3 + $0x1f8] sm:$0xff]  ;;  %v669_v18 = vld [vmem:[%s1777_s3 + $0xe8] sm:$0xff] }
 0x10b   :  { %854 = vst.msk [vmem:[%s1778_s4 + $0xa8] sm:$0xff] %vm832_vm2, %v789_v20  ;;  %v482_v30 = vadd.f32 %v1260_v34, %v481_v27  ;;  %v1028_v33 = vpop.f32.mrb[26].mxu0  ;;  %886 = vst.msk [vmem:[%s1778_s4 + $0x1a8] sm:$0xff] %vm832_vm2, %v821_v23  ;;  %v610_v37 = vadd.f32 %v1260_v34, %v609_v31  ;;  %v1060_v39 = vpop.f32.mrb[26].mxu1 }
 0x10c   :  { %v730_v36 = vadd.f32 %v666_v22, %v490_v24  ;;  %v493_v38 = vadd.f32 %v1028_v33, %v1260_v34  ;;  %v484_v41 = vpop.f32.mrb[27].mxu0  ;;  %v762_v43 = vadd.f32 %v698_v26, %v618_v29  ;;  %v621_v45 = vadd.f32 %v1060_v39, %v1260_v34  ;;  %v612_v47 = vpop.f32.mrb[27].mxu1  ;;  %v701_v24 = vld [vmem:[%s1777_s3 + $0x1e8] sm:$0xff] }
 0x10d   :  { %v728_v44 = vadd.f32 %v664_v28, %v482_v30  ;;  %v485_v46 = vadd.f32 %v1260_v34, %v484_v41  ;;  %v760_v50 = vadd.f32 %v696_v32, %v610_v37  ;;  %v613_v52 = vadd.f32 %v1260_v34, %v612_v47 }
 0x10e   :  { %v794_v49 = vmax.f32 %v730_v36, 0.0  ;;  %v731_v51 = vadd.f32 %v667_v35, %v493_v38  ;;  %v826_v53 = vmax.f32 %v762_v43, 0.0  ;;  %v763_v55 = vadd.f32 %v699_v40, %v621_v45 }
 0x10f   :  { %v792_v54 = vmax.f32 %v728_v44, 0.0  ;;  %v729_v56 = vadd.f32 %v665_v42, %v485_v46  ;;  %v824_v57 = vmax.f32 %v760_v50, 0.0  ;;  %v761_v59 = vadd.f32 %v697_v48, %v613_v52 }
 0x110   :  { %859 = vst.msk [vmem:[%s1778_s4 + $0xd0] sm:$0xff] %vm832_vm2, %v794_v49  ;;  %v795_v58 = vmax.f32 %v731_v51, 0.0  ;;  %891 = vst.msk [vmem:[%s1778_s4 + $0x1d0] sm:$0xff] %vm832_vm2, %v826_v53  ;;  %v827_v60 = vmax.f32 %v763_v55, 0.0 }
 0x111   :  { %857 = vst.msk [vmem:[%s1778_s4 + $0xc0] sm:$0xff] %vm832_vm2, %v792_v54  ;;  %v793_v61 = vmax.f32 %v729_v56, 0.0  ;;  %v1031_v62 = vpop.f32.mrb[28].mxu0  ;;  %889 = vst.msk [vmem:[%s1778_s4 + $0x1c0] sm:$0xff] %vm832_vm2, %v824_v57  ;;  %v825_v0 = vmax.f32 %v761_v59, 0.0  ;;  %v1063_v2 = vpop.f32.mrb[28].mxu1 }
 0x112   :  { %860 = vst.msk [vmem:[%s1778_s4 + $0xd8] sm:$0xff] %vm832_vm2, %v795_v58  ;;  %v506_v1 = vadd.f32 %v1031_v62, %v1260_v34  ;;  %v497_v4 = vpop.f32.mrb[29].mxu0  ;;  %892 = vst.msk [vmem:[%s1778_s4 + $0x1d8] sm:$0xff] %vm832_vm2, %v827_v60  ;;  %v634_v6 = vadd.f32 %v1063_v2, %v1260_v34  ;;  %v625_v8 = vpop.f32.mrb[29].mxu1 }
 0x113   :  { %858 = vst.msk [vmem:[%s1778_s4 + $0xc8] sm:$0xff] %vm832_vm2, %v793_v61  ;;  %v498_v7 = vadd.f32 %v1260_v34, %v497_v4  ;;  %v1032_v10 = vpop.f32.mrb[30].mxu0  ;;  %890 = vst.msk [vmem:[%s1778_s4 + $0x1c8] sm:$0xff] %vm832_vm2, %v825_v0  ;;  %v626_v13 = vadd.f32 %v1260_v34, %v625_v8  ;;  %v1064_v15 = vpop.f32.mrb[30].mxu1 }
 0x114   :  { %v734_v12 = vadd.f32 %v670_v63, %v506_v1  ;;  %v509_v14 = vadd.f32 %v1032_v10, %v1260_v34  ;;  %v500_v17 = vpop.f32.mrb[31].mxu0  ;;  %v766_v19 = vadd.f32 %v702_v3, %v634_v6  ;;  %v637_v21 = vadd.f32 %v1064_v15, %v1260_v34  ;;  %v628_v23 = vpop.f32.mrb[31].mxu1 }
 0x115   :  { %v732_v20 = vadd.f32 %v668_v5, %v498_v7  ;;  %v501_v22 = vadd.f32 %v1260_v34, %v500_v17  ;;  %v764_v26 = vadd.f32 %v700_v9, %v626_v13  ;;  %v629_v28 = vadd.f32 %v1260_v34, %v628_v23 }
 0x116   :  { %v798_v25 = vmax.f32 %v734_v12, 0.0  ;;  %v735_v27 = vadd.f32 %v671_v11, %v509_v14  ;;  %v830_v29 = vmax.f32 %v766_v19, 0.0  ;;  %v767_v31 = vadd.f32 %v703_v16, %v637_v21 }
 0x117   :  { %v796_v30 = vmax.f32 %v732_v20, 0.0  ;;  %v733_v32 = vadd.f32 %v669_v18, %v501_v22  ;;  %v828_v33 = vmax.f32 %v764_v26, 0.0  ;;  %v765_v36 = vadd.f32 %v701_v24, %v629_v28 }
 0x118   :  { %863 = vst.msk [vmem:[%s1778_s4 + $0xf0] sm:$0xff] %vm832_vm2, %v798_v25  ;;  %v799_v35 = vmax.f32 %v735_v27, 0.0  ;;  %895 = vst.msk [vmem:[%s1778_s4 + $0x1f0] sm:$0xff] %vm832_vm2, %v830_v29  ;;  %v831_v34 = vmax.f32 %v767_v31, 0.0 }
 0x119   :  { %861 = vst.msk [vmem:[%s1778_s4 + $0xe0] sm:$0xff] %vm832_vm2, %v796_v30  ;;  %v797_v37 = vmax.f32 %v733_v32, 0.0  ;;  %893 = vst.msk [vmem:[%s1778_s4 + $0x1e0] sm:$0xff] %vm832_vm2, %v828_v33  ;;  %v829_v38 = vmax.f32 %v765_v36, 0.0 }
 0x11a   :  { %864 = vst.msk [vmem:[%s1778_s4 + $0xf8] sm:$0xff] %vm832_vm2, %v799_v35  ;;  %896 = vst.msk [vmem:[%s1778_s4 + $0x1f8] sm:$0xff] %vm832_vm2, %v831_v34 }
 0x11b   :  { %862 = vst.msk [vmem:[%s1778_s4 + $0xe8] sm:$0xff] %vm832_vm2, %v797_v37  ;;  %894 = vst.msk [vmem:[%s1778_s4 + $0x1e8] sm:$0xff] %vm832_vm2, %v829_v38 }

// kernel: bottleneck_pallas.3
= control target key start
LH: loop header
LB: loop body
LE: loop exit
PB: predicated region body
PF: predicated region fallthrough
CT: control target
= control target key end

     0   :  { %vm346_vm0 = vcmask 1041408   ;;  %vm249_vm1 = vcmask 31744   ;;  %vm959_vm2 = vcmask 27648   ;;  %vm1280_vm3 = vcmask 130048   ;;  %s2684_s1 = inlined_call_operand.vmem [shape: bf16[4,20], index: 1, kind: input, shape index: {}]   ;;  %s2685_s0 = inlined_call_operand.vmem [shape: bf16[512,4], index: 0, kind: input, shape index: {}]   ;;  %s2686_s2 = inlined_call_operand.vmem [shape: f32[1,20], index: 2, kind: input, shape index: {}]   ;;  %s2687_s3 = inlined_call_operand.vmem [shape: bf16[512,4], index: 3, kind: output, shape index: {0}]   ;;  %s2688_s4 = inlined_call_operand.vmem [shape: f32[512,16], index: 4, kind: output, shape index: {1}]  }
   0x1   :  { %v81_v0 = vld [vmem:[%s2684_s1] sm:$0x3]  ;;  %v1652_v4 = vld [vmem:[%s2685_s0 + $0x8] sm:$0xff]   ;;  %v1654_v6 = vld [vmem:[%s2685_s0 + $0x10] sm:$0xff]  }
   0x2   :  { %1647 = vmatprep.subr.msk.bf16.mxu0 %vm346_vm0, %v81_v0  ;;  %1648 = vmatprep.subr.msk.bf16.mxu1 %vm346_vm0, %v81_v0  ;;  %v348_v1 = vsel %vm346_vm0, %v81_v0, 0  ;;  %v1650_v2 = vld [vmem:[%s2685_s0] sm:$0xff]   ;;  %v1653_v5 = vld [vmem:[%s2685_s0 + $0x88] sm:$0xff]   ;;  %v1656_v7 = vld [vmem:[%s2685_s0 + $0x90] sm:$0xff]  }
   0x3   :  { %1580 = vmatpush3.bf16.msra.mxu0 %v348_v1  ;;  %1646 = vmatpush3.bf16.msra.mxu1 %v348_v1  ;;  %v1651_v3 = vld [vmem:[%s2685_s0 + $0x80] sm:$0xff]   ;;  %v1655_v8 = vld [vmem:[%s2685_s0 + $0x18] sm:$0xff]   ;;  %v1659_v12 = vld [vmem:[%s2685_s0 + $0x28] sm:$0xff]  }
   0x4   :  { %1581 = vmatprep.mubr.msk.bf16.mxu0 %vm249_vm1, %v1650_v2  ;;  %1613 = vmatprep.mubr.msk.bf16.mxu1 %vm249_vm1, %v1651_v3  ;;  %v1657_v9 = vld [vmem:[%s2685_s0 + $0x98] sm:$0xff]   ;;  %v1658_v10 = vld [vmem:[%s2685_s0 + $0x20] sm:$0xff]   ;;  %v1661_v13 = vld [vmem:[%s2685_s0 + $0xa8] sm:$0xff]  }
   0x5   :  { %v1660_v11 = vld [vmem:[%s2685_s0 + $0xa0] sm:$0xff]   ;;  %v1662_v14 = vld [vmem:[%s2685_s0 + $0x30] sm:$0xff]   ;;  %v1663_v16 = vld [vmem:[%s2685_s0 + $0x38] sm:$0xff]  }
   0x6   :  { %1582 = vmatmul.mubr.msk.bf16.vlgmr.msra.gmra.mrb[0].mxu0 %vm249_vm1, %v1652_v4  ;;  %1614 = vmatmul.mubr.msk.bf16.vlgmr.msra.gmra.mrb[0].mxu1 %vm249_vm1, %v1653_v5  ;;  %v1664_v15 = vld [vmem:[%s2685_s0 + $0xb0] sm:$0xff]   ;;  %v1665_v17 = vld [vmem:[%s2685_s0 + $0xb8] sm:$0xff]   ;;  %v1666_v18 = vld [vmem:[%s2685_s0 + $0x40] sm:$0xff]  }
   0x7   :  { %1585 = vmatprep.mubr.msk.bf16.mxu0 %vm249_vm1, %v1654_v6  ;;  %1617 = vmatprep.mubr.msk.bf16.mxu1 %vm249_vm1, %v1656_v7  ;;  %v1668_v19 = vld [vmem:[%s2685_s0 + $0xc0] sm:$0xff]   ;;  %v1667_v20 = vld [vmem:[%s2685_s0 + $0x48] sm:$0xff]   ;;  %v1670_v22 = vld [vmem:[%s2685_s0 + $0x50] sm:$0xff]  }
   0x8   :  { %v1669_v21 = vld [vmem:[%s2685_s0 + $0xc8] sm:$0xff]   ;;  %v1672_v23 = vld [vmem:[%s2685_s0 + $0xd0] sm:$0xff]   ;;  %v1671_v24 = vld [vmem:[%s2685_s0 + $0x58] sm:$0xff]  }
   0x9   :  { %v1673_v25 = vld [vmem:[%s2685_s0 + $0xd8] sm:$0xff]   ;;  %v1674_v26 = vld [vmem:[%s2685_s0 + $0x60] sm:$0xff]   ;;  %v1675_v28 = vld [vmem:[%s2685_s0 + $0x68] sm:$0xff]  }
   0xa   :  { %v1676_v27 = vld [vmem:[%s2685_s0 + $0xe0] sm:$0xff]   ;;  %v1677_v29 = vld [vmem:[%s2685_s0 + $0xe8] sm:$0xff]   ;;  %v1678_v30 = vld [vmem:[%s2685_s0 + $0x70] sm:$0xff]  }
   0xb   :  { %v1680_v31 = vld [vmem:[%s2685_s0 + $0xf0] sm:$0xff]   ;;  %v1679_v32 = vld [vmem:[%s2685_s0 + $0x78] sm:$0xff]   ;;  %v1842_v34 = vld [vmem:[%s2686_s2] ss:$0 sm:$0xff] }
   0xc   :  { %v1681_v33 = vld [vmem:[%s2685_s0 + $0xf8] sm:$0xff]   ;;  %s1682_s0 = smov 124  }
   0xe   :  { %1586 = vmatmul.mubr.msk.bf16.gmra.mrb[4].mxu0 %vm249_vm1, %v1655_v8  ;;  %1618 = vmatmul.mubr.msk.bf16.gmra.mrb[4].mxu1 %vm249_vm1, %v1657_v9 }
   0xf   :  { %1589 = vmatprep.mubr.msk.bf16.mxu0 %vm249_vm1, %v1658_v10  ;;  %1621 = vmatprep.mubr.msk.bf16.mxu1 %vm249_vm1, %v1660_v11 }
  0x16   :  { %1590 = vmatmul.mubr.msk.bf16.gmra.mrb[8].mxu0 %vm249_vm1, %v1659_v12  ;;  %1622 = vmatmul.mubr.msk.bf16.gmra.mrb[8].mxu1 %vm249_vm1, %v1661_v13 }
  0x17   :  { %1593 = vmatprep.mubr.msk.bf16.mxu0 %vm249_vm1, %v1662_v14  ;;  %1625 = vmatprep.mubr.msk.bf16.mxu1 %vm249_vm1, %v1664_v15 }
  0x1e   :  { %1594 = vmatmul.mubr.msk.bf16.gmra.mrb[12].mxu0 %vm249_vm1, %v1663_v16  ;;  %1626 = vmatmul.mubr.msk.bf16.gmra.mrb[12].mxu1 %vm249_vm1, %v1665_v17 }
  0x1f   :  { %1597 = vmatprep.mubr.msk.bf16.mxu0 %vm249_vm1, %v1666_v18  ;;  %1629 = vmatprep.mubr.msk.bf16.mxu1 %vm249_vm1, %v1668_v19 }
  0x26   :  { %1598 = vmatmul.mubr.msk.bf16.gmra.mrb[16].mxu0 %vm249_vm1, %v1667_v20  ;;  %1630 = vmatmul.mubr.msk.bf16.gmra.mrb[16].mxu1 %vm249_vm1, %v1669_v21 }
  0x27   :  { %1601 = vmatprep.mubr.msk.bf16.mxu0 %vm249_vm1, %v1670_v22  ;;  %1633 = vmatprep.mubr.msk.bf16.mxu1 %vm249_vm1, %v1672_v23 }
  0x2e   :  { %1602 = vmatmul.mubr.msk.bf16.gmra.mrb[20].mxu0 %vm249_vm1, %v1671_v24  ;;  %1634 = vmatmul.mubr.msk.bf16.gmra.mrb[20].mxu1 %vm249_vm1, %v1673_v25 }
  0x2f   :  { %1605 = vmatprep.mubr.msk.bf16.mxu0 %vm249_vm1, %v1674_v26  ;;  %1637 = vmatprep.mubr.msk.bf16.mxu1 %vm249_vm1, %v1676_v27 }
  0x36   :  { %1606 = vmatmul.mubr.msk.bf16.gmra.mrb[24].mxu0 %vm249_vm1, %v1675_v28  ;;  %1638 = vmatmul.mubr.msk.bf16.gmra.mrb[24].mxu1 %vm249_vm1, %v1677_v29 }
  0x37   :  { %1609 = vmatprep.mubr.msk.bf16.mxu0 %vm249_vm1, %v1678_v30  ;;  %1641 = vmatprep.mubr.msk.bf16.mxu1 %vm249_vm1, %v1680_v31 }
  0x3e   :  { %1610 = vmatmul.mubr.msk.bf16.gmra.mrb[28].mxu0 %vm249_vm1, %v1679_v32  ;;  %1642 = vmatmul.mubr.msk.bf16.gmra.mrb[28].mxu1 %vm249_vm1, %v1681_v33 }
  0xd9   :  { %v1583_v35 = vpop.f32.mrb[0].mxu0  ;;  %v1615_v37 = vpop.f32.mrb[0].mxu1 }
  0xda   :  { %v393_v36 = vadd.f32 %v1583_v35, %v1842_v34  ;;  %v384_v38 = vpop.f32.mrb[1].mxu0  ;;  %v521_v39 = vadd.f32 %v1615_v37, %v1842_v34  ;;  %v512_v41 = vpop.f32.mrb[1].mxu1 }
  0xdb   :  { %v385_v40 = vadd.f32 %v1842_v34, %v384_v38  ;;  %v1584_v42 = vpop.f32.mrb[2].mxu0  ;;  %v513_v44 = vadd.f32 %v1842_v34, %v512_v41  ;;  %v1616_v46 = vpop.f32.mrb[2].mxu1 }
  0xdc   :  { %v641_v43 = vmax.f32 %v393_v36, 0.0  ;;  %v396_v45 = vadd.f32 %v1584_v42, %v1842_v34  ;;  %1092 = vrot.lane.b32.xlu1 %v393_v36, %s1682_s0  ;;  %v387_v47 = vpop.f32.mrb[3].mxu0  ;;  %v673_v48 = vmax.f32 %v521_v39, 0.0  ;;  %v524_v50 = vadd.f32 %v1616_v46, %v1842_v34  ;;  %1156 = vrot.lane.b32.xlu0 %v521_v39, %s1682_s0  ;;  %v515_v51 = vpop.f32.mrb[3].mxu1 }
  0xdd   :  { %v639_v49 = vmax.f32 %v385_v40, 0.0  ;;  %v388_v52 = vadd.f32 %v1842_v34, %v387_v47  ;;  %v671_v54 = vmax.f32 %v513_v44, 0.0  ;;  %v516_v56 = vadd.f32 %v1842_v34, %v515_v51 }
  0xde   :  { %v1484_v53 = vpack.c.bf16 %v641_v43, %v641_v43  ;;  %v642_v55 = vmax.f32 %v396_v45, 0.0  ;;  %v1516_v57 = vpack.c.bf16 %v673_v48, %v673_v48  ;;  %v674_v59 = vmax.f32 %v524_v50, 0.0 }
  0xdf   :  { %v1482_v58 = vpack.c.bf16 %v639_v49, %v639_v49  ;;  %v640_v60 = vmax.f32 %v388_v52, 0.0  ;;  %v1514_v61 = vpack.c.bf16 %v671_v54, %v671_v54  ;;  %v672_v63 = vmax.f32 %v516_v56, 0.0 }
  0xe0   :  { %962 = vst.msk [vmem:[%s2687_s3 + $0x8] sm:$0xf] %vm959_vm2, %v1484_v53  ;;  %v1485_v62 = vpack.c.bf16 %v642_v55, %v642_v55  ;;  %1094 = vrot.lane.b32.xlu1 %v396_v45, %s1682_s0  ;;  %994 = vst.msk [vmem:[%s2687_s3 + $0x88] sm:$0xf] %vm959_vm2, %v1516_v57  ;;  %v1517_v0 = vpack.c.bf16 %v674_v59, %v674_v59  ;;  %1088 = vrot.lane.b32.xlu0 %v385_v40, %s1682_s0 }
  0xe1   :  { %960 = vst.msk [vmem:[%s2687_s3] sm:$0xf] %vm959_vm2, %v1482_v58  ;;  %v1483_v1 = vpack.c.bf16 %v640_v60, %v640_v60  ;;  %v1587_v2 = vpop.f32.mrb[4].mxu0  ;;  %992 = vst.msk [vmem:[%s2687_s3 + $0x80] sm:$0xf] %vm959_vm2, %v1514_v61  ;;  %v1515_v3 = vpack.c.bf16 %v672_v63, %v672_v63  ;;  %v1619_v6 = vpop.f32.mrb[4].mxu1 }
  0xe2   :  { %963 = vst.msk [vmem:[%s2687_s3 + $0xc] sm:$0xf] %vm959_vm2, %v1485_v62  ;;  %v409_v4 = vadd.f32 %v1587_v2, %v1842_v34  ;;  %v400_v5 = vpop.f32.mrb[5].mxu0  ;;  %995 = vst.msk [vmem:[%s2687_s3 + $0x8c] sm:$0xf] %vm959_vm2, %v1517_v0  ;;  %v1889_v9 = vadd.f32 %v1619_v6, %v1842_v34  ;;  %v528_v10 = vpop.f32.mrb[5].mxu1 }
  0xe3   :  { %961 = vst.msk [vmem:[%s2687_s3 + $0x4] sm:$0xf] %vm959_vm2, %v1483_v1  ;;  %v1886_v7 = vadd.f32 %v1842_v34, %v400_v5  ;;  %v1588_v8 = vpop.f32.mrb[6].mxu0  ;;  %993 = vst.msk [vmem:[%s2687_s3 + $0x84] sm:$0xf] %vm959_vm2, %v1515_v3  ;;  %v1898_v14 = vadd.f32 %v1842_v34, %v528_v10  ;;  %v1620_v15 = vpop.f32.mrb[6].mxu1 }
  0xe4   :  { %1158 = vrot.lane.b32.xlu1 %v524_v50, %s1682_s0  ;;  %v645_v11 = vmax.f32 %v409_v4, 0.0  ;;  %v412_v12 = vadd.f32 %v1588_v8, %v1842_v34  ;;  %v403_v13 = vpop.f32.mrb[7].mxu0  ;;  %1152 = vrot.lane.b32.xlu0 %v513_v44, %s1682_s0  ;;  %v677_v18 = vmax.f32 %v1889_v9, 0.0  ;;  %v540_v19 = vadd.f32 %v1620_v15, %v1842_v34  ;;  %v531_v20 = vpop.f32.mrb[7].mxu1 }
  0xe5   :  { %v643_v16 = vmax.f32 %v1886_v7, 0.0  ;;  %v1903_v17 = vadd.f32 %v1842_v34, %v403_v13  ;;  %v675_v23 = vmax.f32 %v1898_v14, 0.0  ;;  %v1909_v24 = vadd.f32 %v1842_v34, %v531_v20 }
  0xe6   :  { %v1488_v21 = vpack.c.bf16 %v645_v11, %v645_v11  ;;  %v646_v22 = vmax.f32 %v412_v12, 0.0  ;;  %v1520_v27 = vpack.c.bf16 %v677_v18, %v677_v18  ;;  %v678_v28 = vmax.f32 %v540_v19, 0.0 }
  0xe7   :  { %v1486_v25 = vpack.c.bf16 %v643_v16, %v643_v16  ;;  %v644_v26 = vmax.f32 %v1903_v17, 0.0  ;;  %v1518_v30 = vpack.c.bf16 %v675_v23, %v675_v23  ;;  %v676_v31 = vmax.f32 %v1909_v24, 0.0 }
  0xe8   :  { %966 = vst.msk [vmem:[%s2687_s3 + $0x18] sm:$0xf] %vm959_vm2, %v1488_v21  ;;  %v1489_v29 = vpack.c.bf16 %v646_v22, %v646_v22  ;;  %1154 = vrot.lane.b32.xlu1 %v516_v56, %s1682_s0  ;;  %998 = vst.msk [vmem:[%s2687_s3 + $0x98] sm:$0xf] %vm959_vm2, %v1520_v27  ;;  %1090 = vrot.lane.b32.xlu0 %v388_v52, %s1682_s0  ;;  %v1521_v33 = vpack.c.bf16 %v678_v28, %v678_v28 }
  0xe9   :  { %964 = vst.msk [vmem:[%s2687_s3 + $0x10] sm:$0xf] %vm959_vm2, %v1486_v25  ;;  %v1487_v32 = vpack.c.bf16 %v644_v26, %v644_v26  ;;  %v1591_v35 = vpop.f32.mrb[8].mxu0  ;;  %996 = vst.msk [vmem:[%s2687_s3 + $0x90] sm:$0xf] %vm959_vm2, %v1518_v30  ;;  %v1519_v36 = vpack.c.bf16 %v676_v31, %v676_v31  ;;  %v1623_v39 = vpop.f32.mrb[8].mxu1 }
  0xea   :  { %967 = vst.msk [vmem:[%s2687_s3 + $0x1c] sm:$0xf] %vm959_vm2, %v1489_v29  ;;  %v1936_v37 = vadd.f32 %v1591_v35, %v1842_v34  ;;  %v416_v38 = vpop.f32.mrb[9].mxu0  ;;  %999 = vst.msk [vmem:[%s2687_s3 + $0x9c] sm:$0xf] %vm959_vm2, %v1521_v33  ;;  %v1950_v42 = vadd.f32 %v1623_v39, %v1842_v34  ;;  %v544_v43 = vpop.f32.mrb[9].mxu1 }
  0xeb   :  { %965 = vst.msk [vmem:[%s2687_s3 + $0x14] sm:$0xf] %vm959_vm2, %v1487_v32  ;;  %v1947_v40 = vadd.f32 %v1842_v34, %v416_v38  ;;  %v1592_v41 = vpop.f32.mrb[10].mxu0  ;;  %997 = vst.msk [vmem:[%s2687_s3 + $0x94] sm:$0xf] %vm959_vm2, %v1519_v36  ;;  %v1962_v47 = vadd.f32 %v1842_v34, %v544_v43  ;;  %v1624_v48 = vpop.f32.mrb[10].mxu1 }
  0xec   :  { %1102 = vrot.lane.b32.xlu1 %v412_v12, %s1682_s0  ;;  %v649_v44 = vmax.f32 %v1936_v37, 0.0  ;;  %v1959_v45 = vadd.f32 %v1592_v41, %v1842_v34  ;;  %v419_v46 = vpop.f32.mrb[11].mxu0  ;;  %1100 = vrot.lane.b32.xlu0 %v409_v4, %s1682_s0  ;;  %v681_v51 = vmax.f32 %v1950_v42, 0.0  ;;  %v1971_v52 = vadd.f32 %v1624_v48, %v1842_v34  ;;  %v547_v53 = vpop.f32.mrb[11].mxu1 }
  0xed   :  { %v647_v49 = vmax.f32 %v1947_v40, 0.0  ;;  %v1967_v50 = vadd.f32 %v1842_v34, %v419_v46  ;;  %v679_v56 = vmax.f32 %v1962_v47, 0.0  ;;  %v1976_v57 = vadd.f32 %v1842_v34, %v547_v53 }
  0xee   :  { %v1492_v54 = vpack.c.bf16 %v649_v44, %v649_v44  ;;  %v650_v55 = vmax.f32 %v1959_v45, 0.0  ;;  %v1524_v60 = vpack.c.bf16 %v681_v51, %v681_v51  ;;  %v682_v61 = vmax.f32 %v1971_v52, 0.0 }
  0xef   :  { %v1490_v58 = vpack.c.bf16 %v647_v49, %v647_v49  ;;  %v648_v59 = vmax.f32 %v1967_v50, 0.0  ;;  %v1522_v63 = vpack.c.bf16 %v679_v56, %v679_v56  ;;  %v680_v0 = vmax.f32 %v1976_v57, 0.0 }
  0xf0   :  { %1166 = vrot.lane.b32.xlu1 %v540_v19, %s1682_s0  ;;  %970 = vst.msk [vmem:[%s2687_s3 + $0x28] sm:$0xf] %vm959_vm2, %v1492_v54  ;;  %v1493_v62 = vpack.c.bf16 %v650_v55, %v650_v55  ;;  %1164 = vrot.lane.b32.xlu0 %v1889_v9, %s1682_s0  ;;  %1002 = vst.msk [vmem:[%s2687_s3 + $0xa8] sm:$0xf] %vm959_vm2, %v1524_v60  ;;  %v1525_v2 = vpack.c.bf16 %v682_v61, %v682_v61 }
  0xf1   :  { %968 = vst.msk [vmem:[%s2687_s3 + $0x20] sm:$0xf] %vm959_vm2, %v1490_v58  ;;  %v1491_v1 = vpack.c.bf16 %v648_v59, %v648_v59  ;;  %v1595_v3 = vpop.f32.mrb[12].mxu0  ;;  %1000 = vst.msk [vmem:[%s2687_s3 + $0xa0] sm:$0xf] %vm959_vm2, %v1522_v63  ;;  %v1523_v4 = vpack.c.bf16 %v680_v0, %v680_v0  ;;  %v1627_v8 = vpop.f32.mrb[12].mxu1 }
  0xf2   :  { %971 = vst.msk [vmem:[%s2687_s3 + $0x2c] sm:$0xf] %vm959_vm2, %v1493_v62  ;;  %v2005_v5 = vadd.f32 %v1595_v3, %v1842_v34  ;;  %v432_v6 = vpop.f32.mrb[13].mxu0  ;;  %1003 = vst.msk [vmem:[%s2687_s3 + $0xac] sm:$0xf] %vm959_vm2, %v1525_v2  ;;  %v2019_v11 = vadd.f32 %v1627_v8, %v1842_v34  ;;  %v560_v12 = vpop.f32.mrb[13].mxu1 }
  0xf3   :  { %969 = vst.msk [vmem:[%s2687_s3 + $0x24] sm:$0xf] %vm959_vm2, %v1491_v1  ;;  %v2016_v9 = vadd.f32 %v1842_v34, %v432_v6  ;;  %v1596_v10 = vpop.f32.mrb[14].mxu0  ;;  %1001 = vst.msk [vmem:[%s2687_s3 + $0xa4] sm:$0xf] %vm959_vm2, %v1523_v4  ;;  %v2032_v18 = vadd.f32 %v1842_v34, %v560_v12  ;;  %v1628_v19 = vpop.f32.mrb[14].mxu1 }
  0xf4   :  { %1098 = vrot.lane.b32.xlu1 %v1903_v17, %s1682_s0  ;;  %v653_v13 = vmax.f32 %v2005_v5, 0.0  ;;  %v2029_v15 = vadd.f32 %v1596_v10, %v1842_v34  ;;  %v435_v16 = vpop.f32.mrb[15].mxu0  ;;  %1096 = vrot.lane.b32.xlu0 %v1886_v7, %s1682_s0  ;;  %v685_v21 = vmax.f32 %v2019_v11, 0.0  ;;  %v2042_v22 = vadd.f32 %v1628_v19, %v1842_v34  ;;  %v563_v23 = vpop.f32.mrb[15].mxu1 }
  0xf5   :  { %v651_v17 = vmax.f32 %v2016_v9, 0.0  ;;  %v2038_v20 = vadd.f32 %v1842_v34, %v435_v16  ;;  %v683_v27 = vmax.f32 %v2032_v18, 0.0  ;;  %v2047_v28 = vadd.f32 %v1842_v34, %v563_v23 }
  0xf6   :  { %v1496_v25 = vpack.c.bf16 %v653_v13, %v653_v13  ;;  %v654_v26 = vmax.f32 %v2029_v15, 0.0  ;;  %v1528_v30 = vpack.c.bf16 %v685_v21, %v685_v21  ;;  %v686_v31 = vmax.f32 %v2042_v22, 0.0 }
  0xf7   :  { %v1494_v7 = vpack.c.bf16 %v651_v17, %v651_v17  ;;  %v652_v29 = vmax.f32 %v2038_v20, 0.0  ;;  %v1526_v33 = vpack.c.bf16 %v683_v27, %v683_v27  ;;  %v684_v35 = vmax.f32 %v2047_v28, 0.0 }
  0xf8   :  { %1162 = vrot.lane.b32.xlu1 %v1909_v24, %s1682_s0  ;;  %974 = vst.msk [vmem:[%s2687_s3 + $0x38] sm:$0xf] %vm959_vm2, %v1496_v25  ;;  %v1497_v32 = vpack.c.bf16 %v654_v26, %v654_v26  ;;  %1160 = vrot.lane.b32.xlu0 %v1898_v14, %s1682_s0  ;;  %1006 = vst.msk [vmem:[%s2687_s3 + $0xb8] sm:$0xf] %vm959_vm2, %v1528_v30  ;;  %v1529_v24 = vpack.c.bf16 %v686_v31, %v686_v31 }
  0xf9   :  { %972 = vst.msk [vmem:[%s2687_s3 + $0x30] sm:$0xf] %vm959_vm2, %v1494_v7  ;;  %v1495_v36 = vpack.c.bf16 %v652_v29, %v652_v29  ;;  %v1599_v38 = vpop.f32.mrb[16].mxu0  ;;  %1004 = vst.msk [vmem:[%s2687_s3 + $0xb0] sm:$0xf] %vm959_vm2, %v1526_v33  ;;  %v1527_v14 = vpack.c.bf16 %v684_v35, %v684_v35  ;;  %v1631_v43 = vpop.f32.mrb[16].mxu1 }
  0xfa   :  { %975 = vst.msk [vmem:[%s2687_s3 + $0x3c] sm:$0xf] %vm959_vm2, %v1497_v32  ;;  %v2077_v39 = vadd.f32 %v1599_v38, %v1842_v34  ;;  %v448_v41 = vpop.f32.mrb[17].mxu0  ;;  %1007 = vst.msk [vmem:[%s2687_s3 + $0xbc] sm:$0xf] %vm959_vm2, %v1529_v24  ;;  %v2091_v48 = vadd.f32 %v1631_v43, %v1842_v34  ;;  %v576_v49 = vpop.f32.mrb[17].mxu1 }
  0xfb   :  { %973 = vst.msk [vmem:[%s2687_s3 + $0x34] sm:$0xf] %vm959_vm2, %v1495_v36  ;;  %v2088_v44 = vadd.f32 %v1842_v34, %v448_v41  ;;  %v1600_v46 = vpop.f32.mrb[18].mxu0  ;;  %1005 = vst.msk [vmem:[%s2687_s3 + $0xb4] sm:$0xf] %vm959_vm2, %v1527_v14  ;;  %v2104_v55 = vadd.f32 %v1842_v34, %v576_v49  ;;  %v1632_v56 = vpop.f32.mrb[18].mxu1 }
  0xfc   :  { %1110 = vrot.lane.b32.xlu1 %v1959_v45, %s1682_s0  ;;  %v657_v51 = vmax.f32 %v2077_v39, 0.0  ;;  %v2101_v53 = vadd.f32 %v1600_v46, %v1842_v34  ;;  %v451_v54 = vpop.f32.mrb[19].mxu0  ;;  %1108 = vrot.lane.b32.xlu0 %v1936_v37, %s1682_s0  ;;  %v689_v59 = vmax.f32 %v2091_v48, 0.0  ;;  %v2114_v60 = vadd.f32 %v1632_v56, %v1842_v34  ;;  %v579_v61 = vpop.f32.mrb[19].mxu1 }
  0xfd   :  { %v655_v45 = vmax.f32 %v2088_v44, 0.0  ;;  %v2110_v58 = vadd.f32 %v1842_v34, %v451_v54  ;;  %v687_v0 = vmax.f32 %v2104_v55, 0.0  ;;  %v2119_v1 = vadd.f32 %v1842_v34, %v579_v61 }
  0xfe   :  { %v1500_v62 = vpack.c.bf16 %v657_v51, %v657_v51  ;;  %v658_v63 = vmax.f32 %v2101_v53, 0.0  ;;  %v1532_v3 = vpack.c.bf16 %v689_v59, %v689_v59  ;;  %v690_v4 = vmax.f32 %v2114_v60, 0.0 }
  0xff   :  { %v1498_v37 = vpack.c.bf16 %v655_v45, %v655_v45  ;;  %v656_v2 = vmax.f32 %v2110_v58, 0.0  ;;  %v1530_v8 = vpack.c.bf16 %v687_v0, %v687_v0  ;;  %v688_v10 = vmax.f32 %v2119_v1, 0.0 }
 0x100   :  { %1174 = vrot.lane.b32.xlu1 %v1971_v52, %s1682_s0  ;;  %978 = vst.msk [vmem:[%s2687_s3 + $0x48] sm:$0xf] %vm959_vm2, %v1500_v62  ;;  %v1501_v6 = vpack.c.bf16 %v658_v63, %v658_v63  ;;  %1172 = vrot.lane.b32.xlu0 %v1950_v42, %s1682_s0  ;;  %1010 = vst.msk [vmem:[%s2687_s3 + $0xc8] sm:$0xf] %vm959_vm2, %v1532_v3  ;;  %v1533_v52 = vpack.c.bf16 %v690_v4, %v690_v4 }
 0x101   :  { %976 = vst.msk [vmem:[%s2687_s3 + $0x40] sm:$0xf] %vm959_vm2, %v1498_v37  ;;  %v1499_v12 = vpack.c.bf16 %v656_v2, %v656_v2  ;;  %v1603_v13 = vpop.f32.mrb[20].mxu0  ;;  %1008 = vst.msk [vmem:[%s2687_s3 + $0xc0] sm:$0xf] %vm959_vm2, %v1530_v8  ;;  %v1531_v42 = vpack.c.bf16 %v688_v10, %v688_v10  ;;  %v1635_v17 = vpop.f32.mrb[20].mxu1 }
 0x102   :  { %979 = vst.msk [vmem:[%s2687_s3 + $0x4c] sm:$0xf] %vm959_vm2, %v1501_v6  ;;  %v2149_v16 = vadd.f32 %v1603_v13, %v1842_v34  ;;  %v464_v19 = vpop.f32.mrb[21].mxu0  ;;  %1011 = vst.msk [vmem:[%s2687_s3 + $0xcc] sm:$0xf] %vm959_vm2, %v1533_v52  ;;  %v2163_v25 = vadd.f32 %v1635_v17, %v1842_v34  ;;  %v592_v26 = vpop.f32.mrb[21].mxu1 }
 0x103   :  { %977 = vst.msk [vmem:[%s2687_s3 + $0x44] sm:$0xf] %vm959_vm2, %v1499_v12  ;;  %v2160_v21 = vadd.f32 %v1842_v34, %v464_v19  ;;  %v1604_v23 = vpop.f32.mrb[22].mxu0  ;;  %1009 = vst.msk [vmem:[%s2687_s3 + $0xc4] sm:$0xf] %vm959_vm2, %v1531_v42  ;;  %v2176_v30 = vadd.f32 %v1842_v34, %v592_v26  ;;  %v1636_v31 = vpop.f32.mrb[22].mxu1 }
 0x104   :  { %1106 = vrot.lane.b32.xlu1 %v1967_v50, %s1682_s0  ;;  %v661_v27 = vmax.f32 %v2149_v16, 0.0  ;;  %v2173_v7 = vadd.f32 %v1604_v23, %v1842_v34  ;;  %v467_v29 = vpop.f32.mrb[23].mxu0  ;;  %1104 = vrot.lane.b32.xlu0 %v1947_v40, %s1682_s0  ;;  %v693_v33 = vmax.f32 %v2163_v25, 0.0  ;;  %v2186_v35 = vadd.f32 %v1636_v31, %v1842_v34  ;;  %v595_v36 = vpop.f32.mrb[23].mxu1 }
 0x105   :  { %v659_v50 = vmax.f32 %v2160_v21, 0.0  ;;  %v2182_v32 = vadd.f32 %v1842_v34, %v467_v29  ;;  %v691_v14 = vmax.f32 %v2176_v30, 0.0  ;;  %v2191_v41 = vadd.f32 %v1842_v34, %v595_v36 }
 0x106   :  { %v1504_v24 = vpack.c.bf16 %v661_v27, %v661_v27  ;;  %v662_v38 = vmax.f32 %v2173_v7, 0.0  ;;  %v1536_v46 = vpack.c.bf16 %v693_v33, %v693_v33  ;;  %v694_v49 = vmax.f32 %v2186_v35, 0.0 }
 0x107   :  { %v1502_v40 = vpack.c.bf16 %v659_v50, %v659_v50  ;;  %v660_v43 = vmax.f32 %v2182_v32, 0.0  ;;  %v1534_v54 = vpack.c.bf16 %v691_v14, %v691_v14  ;;  %v692_v56 = vmax.f32 %v2191_v41, 0.0 }
 0x108   :  { %1170 = vrot.lane.b32.xlu1 %v1976_v57, %s1682_s0  ;;  %982 = vst.msk [vmem:[%s2687_s3 + $0x58] sm:$0xf] %vm959_vm2, %v1504_v24  ;;  %v1505_v51 = vpack.c.bf16 %v662_v38, %v662_v38  ;;  %1168 = vrot.lane.b32.xlu0 %v1962_v47, %s1682_s0  ;;  %1014 = vst.msk [vmem:[%s2687_s3 + $0xd8] sm:$0xf] %vm959_vm2, %v1536_v46  ;;  %v1537_v57 = vpack.c.bf16 %v694_v49, %v694_v49 }
 0x109   :  { %980 = vst.msk [vmem:[%s2687_s3 + $0x50] sm:$0xf] %vm959_vm2, %v1502_v40  ;;  %v1503_v45 = vpack.c.bf16 %v660_v43, %v660_v43  ;;  %v1607_v59 = vpop.f32.mrb[24].mxu0  ;;  %1012 = vst.msk [vmem:[%s2687_s3 + $0xd0] sm:$0xf] %vm959_vm2, %v1534_v54  ;;  %v1535_v47 = vpack.c.bf16 %v692_v56, %v692_v56  ;;  %v1639_v63 = vpop.f32.mrb[24].mxu1 }
 0x10a   :  { %983 = vst.msk [vmem:[%s2687_s3 + $0x5c] sm:$0xf] %vm959_vm2, %v1505_v51  ;;  %v2221_v61 = vadd.f32 %v1607_v59, %v1842_v34  ;;  %v480_v62 = vpop.f32.mrb[25].mxu0  ;;  %1015 = vst.msk [vmem:[%s2687_s3 + $0xdc] sm:$0xf] %vm959_vm2, %v1537_v57  ;;  %v2235_v2 = vadd.f32 %v1639_v63, %v1842_v34  ;;  %v608_v3 = vpop.f32.mrb[25].mxu1 }
 0x10b   :  { %981 = vst.msk [vmem:[%s2687_s3 + $0x54] sm:$0xf] %vm959_vm2, %v1503_v45  ;;  %v2232_v0 = vadd.f32 %v1842_v34, %v480_v62  ;;  %v1608_v37 = vpop.f32.mrb[26].mxu0  ;;  %1013 = vst.msk [vmem:[%s2687_s3 + $0xd4] sm:$0xf] %vm959_vm2, %v1535_v47  ;;  %v2248_v10 = vadd.f32 %v1842_v34, %v608_v3  ;;  %v1640_v12 = vpop.f32.mrb[26].mxu1 }
 0x10c   :  { %1118 = vrot.lane.b32.xlu1 %v2029_v15, %s1682_s0  ;;  %v665_v4 = vmax.f32 %v2221_v61, 0.0  ;;  %v2245_v6 = vadd.f32 %v1608_v37, %v1842_v34  ;;  %v483_v8 = vpop.f32.mrb[27].mxu0  ;;  %1116 = vrot.lane.b32.xlu0 %v2005_v5, %s1682_s0  ;;  %v697_v13 = vmax.f32 %v2235_v2, 0.0  ;;  %v2258_v42 = vadd.f32 %v1640_v12, %v1842_v34  ;;  %v611_v19 = vpop.f32.mrb[27].mxu1 }
 0x10d   :  { %v663_v15 = vmax.f32 %v2232_v0, 0.0  ;;  %v2254_v52 = vadd.f32 %v1842_v34, %v483_v8  ;;  %v695_v26 = vmax.f32 %v2248_v10, 0.0  ;;  %v2263_v27 = vadd.f32 %v1842_v34, %v611_v19 }
 0x10e   :  { %v1508_v17 = vpack.c.bf16 %v665_v4, %v665_v4  ;;  %v666_v23 = vmax.f32 %v2245_v6, 0.0  ;;  %v1540_v31 = vpack.c.bf16 %v697_v13, %v697_v13  ;;  %v698_v50 = vmax.f32 %v2258_v42, 0.0 }
 0x10f   :  { %v1506_v5 = vpack.c.bf16 %v663_v15, %v663_v15  ;;  %v664_v29 = vmax.f32 %v2254_v52, 0.0  ;;  %v1538_v36 = vpack.c.bf16 %v695_v26, %v695_v26  ;;  %v696_v24 = vmax.f32 %v2263_v27, 0.0 }
 0x110   :  { %1182 = vrot.lane.b32.xlu1 %v2042_v22, %s1682_s0  ;;  %986 = vst.msk [vmem:[%s2687_s3 + $0x68] sm:$0xf] %vm959_vm2, %v1508_v17  ;;  %v1509_v33 = vpack.c.bf16 %v666_v23, %v666_v23  ;;  %1180 = vrot.lane.b32.xlu0 %v2019_v11, %s1682_s0  ;;  %1018 = vst.msk [vmem:[%s2687_s3 + $0xe8] sm:$0xf] %vm959_vm2, %v1540_v31  ;;  %v1541_v22 = vpack.c.bf16 %v698_v50, %v698_v50 }
 0x111   :  { %984 = vst.msk [vmem:[%s2687_s3 + $0x60] sm:$0xf] %vm959_vm2, %v1506_v5  ;;  %v1507_v38 = vpack.c.bf16 %v664_v29, %v664_v29  ;;  %v1611_v14 = vpop.f32.mrb[28].mxu0  ;;  %1016 = vst.msk [vmem:[%s2687_s3 + $0xe0] sm:$0xf] %vm959_vm2, %v1538_v36  ;;  %v1539_v11 = vpack.c.bf16 %v696_v24, %v696_v24  ;;  %v1643_v46 = vpop.f32.mrb[28].mxu1 }
 0x112   :  { %987 = vst.msk [vmem:[%s2687_s3 + $0x6c] sm:$0xf] %vm959_vm2, %v1509_v33  ;;  %v2293_v40 = vadd.f32 %v1611_v14, %v1842_v34  ;;  %v496_v43 = vpop.f32.mrb[29].mxu0  ;;  %1019 = vst.msk [vmem:[%s2687_s3 + $0xec] sm:$0xf] %vm959_vm2, %v1541_v22  ;;  %v2307_v54 = vadd.f32 %v1643_v46, %v1842_v34  ;;  %v624_v56 = vpop.f32.mrb[29].mxu1 }
 0x113   :  { %985 = vst.msk [vmem:[%s2687_s3 + $0x64] sm:$0xf] %vm959_vm2, %v1507_v38  ;;  %v2304_v49 = vadd.f32 %v1842_v34, %v496_v43  ;;  %v1612_v51 = vpop.f32.mrb[30].mxu0  ;;  %1017 = vst.msk [vmem:[%s2687_s3 + $0xe4] sm:$0xf] %vm959_vm2, %v1539_v11  ;;  %v2318_v47 = vadd.f32 %v1842_v34, %v624_v56  ;;  %v1644_v62 = vpop.f32.mrb[30].mxu1 }
 0x114   :  { %1114 = vrot.lane.b32.xlu1 %v2038_v20, %s1682_s0  ;;  %v669_v45 = vmax.f32 %v2293_v40, 0.0  ;;  %v508_v57 = vadd.f32 %v1612_v51, %v1842_v34  ;;  %v499_v59 = vpop.f32.mrb[31].mxu0  ;;  %1112 = vrot.lane.b32.xlu0 %v2016_v9, %s1682_s0  ;;  %v701_v37 = vmax.f32 %v2307_v54, 0.0  ;;  %v2326_v3 = vadd.f32 %v1644_v62, %v1842_v34  ;;  %v627_v4 = vpop.f32.mrb[31].mxu1 }
 0x115   :  { %v667_v63 = vmax.f32 %v2304_v49, 0.0  ;;  %v500_v20 = vadd.f32 %v1842_v34, %v499_v59  ;;  %v699_v15 = vmax.f32 %v2318_v47, 0.0  ;;  %v628_v13 = vadd.f32 %v1842_v34, %v627_v4 }
 0x116   :  { %v1512_v8 = vpack.c.bf16 %v669_v45, %v669_v45  ;;  %v670_v12 = vmax.f32 %v508_v57, 0.0  ;;  %v1544_v23 = vpack.c.bf16 %v701_v37, %v701_v37  ;;  %v702_v9 = vmax.f32 %v2326_v3, 0.0 }
 0x117   :  { %v1510_v19 = vpack.c.bf16 %v667_v63, %v667_v63  ;;  %v668_v17 = vmax.f32 %v500_v20, 0.0  ;;  %v1542_v5 = vpack.c.bf16 %v699_v15, %v699_v15  ;;  %v700_v29 = vmax.f32 %v628_v13, 0.0 }
 0x118   :  { %1178 = vrot.lane.b32.xlu1 %v2047_v28, %s1682_s0  ;;  %990 = vst.msk [vmem:[%s2687_s3 + $0x78] sm:$0xf] %vm959_vm2, %v1512_v8  ;;  %v1513_v26 = vpack.c.bf16 %v670_v12, %v670_v12  ;;  %1176 = vrot.lane.b32.xlu0 %v2032_v18, %s1682_s0  ;;  %1022 = vst.msk [vmem:[%s2687_s3 + $0xf8] sm:$0xf] %vm959_vm2, %v1544_v23  ;;  %v1545_v28 = vpack.c.bf16 %v702_v9, %v702_v9 }
 0x119   :  { %988 = vst.msk [vmem:[%s2687_s3 + $0x70] sm:$0xf] %vm959_vm2, %v1510_v19  ;;  %v1511_v34 = vpack.c.bf16 %v668_v17, %v668_v17  ;;  %1020 = vst.msk [vmem:[%s2687_s3 + $0xf0] sm:$0xf] %vm959_vm2, %v1542_v5  ;;  %v1543_v18 = vpack.c.bf16 %v700_v29, %v700_v29 }
 0x11a   :  { %991 = vst.msk [vmem:[%s2687_s3 + $0x7c] sm:$0xf] %vm959_vm2, %v1513_v26  ;;  %1023 = vst.msk [vmem:[%s2687_s3 + $0xfc] sm:$0xf] %vm959_vm2, %v1545_v28 }
 0x11b   :  { %989 = vst.msk [vmem:[%s2687_s3 + $0x74] sm:$0xf] %vm959_vm2, %v1511_v34  ;;  %1021 = vst.msk [vmem:[%s2687_s3 + $0xf4] sm:$0xf] %vm959_vm2, %v1543_v18 }
 0x11c   :  { %1126 = vrot.lane.b32.xlu1 %v2101_v53, %s1682_s0  ;;  %1124 = vrot.lane.b32.xlu0 %v2077_v39, %s1682_s0 }
 0x120   :  { %1190 = vrot.lane.b32.xlu1 %v2114_v60, %s1682_s0  ;;  %1188 = vrot.lane.b32.xlu0 %v2091_v48, %s1682_s0 }
 0x124   :  { %1122 = vrot.lane.b32.xlu1 %v2110_v58, %s1682_s0  ;;  %1120 = vrot.lane.b32.xlu0 %v2088_v44, %s1682_s0 }
 0x128   :  { %1186 = vrot.lane.b32.xlu1 %v2119_v1, %s1682_s0  ;;  %1184 = vrot.lane.b32.xlu0 %v2104_v55, %s1682_s0 }
 0x12c   :  { %1134 = vrot.lane.b32.xlu1 %v2173_v7, %s1682_s0  ;;  %1132 = vrot.lane.b32.xlu0 %v2149_v16, %s1682_s0 }
 0x130   :  { %1198 = vrot.lane.b32.xlu1 %v2186_v35, %s1682_s0  ;;  %1196 = vrot.lane.b32.xlu0 %v2163_v25, %s1682_s0 }
 0x134   :  { %1130 = vrot.lane.b32.xlu1 %v2182_v32, %s1682_s0  ;;  %1128 = vrot.lane.b32.xlu0 %v2160_v21, %s1682_s0 }
 0x138   :  { %1194 = vrot.lane.b32.xlu1 %v2191_v41, %s1682_s0  ;;  %1192 = vrot.lane.b32.xlu0 %v2176_v30, %s1682_s0 }
 0x13c   :  { %1142 = vrot.lane.b32.xlu1 %v2245_v6, %s1682_s0  ;;  %1140 = vrot.lane.b32.xlu0 %v2221_v61, %s1682_s0 }
 0x140   :  { %1206 = vrot.lane.b32.xlu1 %v2258_v42, %s1682_s0  ;;  %1204 = vrot.lane.b32.xlu0 %v2235_v2, %s1682_s0 }
 0x144   :  { %1138 = vrot.lane.b32.xlu1 %v2254_v52, %s1682_s0  ;;  %1136 = vrot.lane.b32.xlu0 %v2232_v0, %s1682_s0 }
 0x148   :  { %1202 = vrot.lane.b32.xlu1 %v2263_v27, %s1682_s0  ;;  %1200 = vrot.lane.b32.xlu0 %v2248_v10, %s1682_s0 }
 0x14c   :  { %1150 = vrot.lane.b32.xlu1 %v508_v57, %s1682_s0  ;;  %1148 = vrot.lane.b32.xlu0 %v2293_v40, %s1682_s0 }
 0x14e   :  { %v1093_v39 = vpop.permute.xlu1 %1092  ;;  %v1157_v44 = vpop.permute.xlu0 %1156 }
 0x14f   :  { %1283 = vst.msk [vmem:[%s2688_s4 + $0x10] sm:$0xff] %vm1280_vm3, %v1093_v39  ;;  %1315 = vst.msk [vmem:[%s2688_s4 + $0x110] sm:$0xff] %vm1280_vm3, %v1157_v44 }
 0x150   :  { %1146 = vrot.lane.b32.xlu1 %v500_v20, %s1682_s0  ;;  %1144 = vrot.lane.b32.xlu0 %v2304_v49, %s1682_s0 }
 0x152   :  { %v1095_v48 = vpop.permute.xlu1 %1094  ;;  %v1089_v53 = vpop.permute.xlu0 %1088 }
 0x153   :  { %1284 = vst.msk [vmem:[%s2688_s4 + $0x18] sm:$0xff] %vm1280_vm3, %v1095_v48  ;;  %1281 = vst.msk [vmem:[%s2688_s4] sm:$0xff] %vm1280_vm3, %v1089_v53 }
 0x154   :  { %1210 = vrot.lane.b32.xlu1 %v628_v13, %s1682_s0  ;;  %1208 = vrot.lane.b32.xlu0 %v2318_v47, %s1682_s0 }
 0x156   :  { %v1159_v55 = vpop.permute.xlu1 %1158  ;;  %v1153_v58 = vpop.permute.xlu0 %1152 }
 0x157   :  { %1316 = vst.msk [vmem:[%s2688_s4 + $0x118] sm:$0xff] %vm1280_vm3, %v1159_v55  ;;  %1313 = vst.msk [vmem:[%s2688_s4 + $0x100] sm:$0xff] %vm1280_vm3, %v1153_v58 }
 0x158   :  { %1214 = vrot.lane.b32.xlu1 %v2326_v3, %s1682_s0  ;;  %1212 = vrot.lane.b32.xlu0 %v2307_v54, %s1682_s0 }
 0x15a   :  { %v1155_v60 = vpop.permute.xlu1 %1154  ;;  %v1091_v1 = vpop.permute.xlu0 %1090 }
 0x15b   :  { %1314 = vst.msk [vmem:[%s2688_s4 + $0x108] sm:$0xff] %vm1280_vm3, %v1155_v60  ;;  %1282 = vst.msk [vmem:[%s2688_s4 + $0x8] sm:$0xff] %vm1280_vm3, %v1091_v1 }
 0x15e   :  { %v1103_v16 = vpop.permute.xlu1 %1102  ;;  %v1101_v21 = vpop.permute.xlu0 %1100 }
 0x15f   :  { %1288 = vst.msk [vmem:[%s2688_s4 + $0x38] sm:$0xff] %vm1280_vm3, %v1103_v16  ;;  %1287 = vst.msk [vmem:[%s2688_s4 + $0x30] sm:$0xff] %vm1280_vm3, %v1101_v21 }
 0x162   :  { %v1167_v25 = vpop.permute.xlu1 %1166  ;;  %v1165_v7 = vpop.permute.xlu0 %1164 }
 0x163   :  { %1320 = vst.msk [vmem:[%s2688_s4 + $0x138] sm:$0xff] %vm1280_vm3, %v1167_v25  ;;  %1319 = vst.msk [vmem:[%s2688_s4 + $0x130] sm:$0xff] %vm1280_vm3, %v1165_v7 }
 0x166   :  { %v1099_v30 = vpop.permute.xlu1 %1098  ;;  %v1097_v32 = vpop.permute.xlu0 %1096 }
 0x167   :  { %1286 = vst.msk [vmem:[%s2688_s4 + $0x28] sm:$0xff] %vm1280_vm3, %v1099_v30  ;;  %1285 = vst.msk [vmem:[%s2688_s4 + $0x20] sm:$0xff] %vm1280_vm3, %v1097_v32 }
 0x16a   :  { %v1163_v35 = vpop.permute.xlu1 %1162  ;;  %v1161_v41 = vpop.permute.xlu0 %1160 }
 0x16b   :  { %1318 = vst.msk [vmem:[%s2688_s4 + $0x128] sm:$0xff] %vm1280_vm3, %v1163_v35  ;;  %1317 = vst.msk [vmem:[%s2688_s4 + $0x120] sm:$0xff] %vm1280_vm3, %v1161_v41 }
 0x16e   :  { %v1111_v61 = vpop.permute.xlu1 %1110  ;;  %v1109_v0 = vpop.permute.xlu0 %1108 }
 0x16f   :  { %1292 = vst.msk [vmem:[%s2688_s4 + $0x58] sm:$0xff] %vm1280_vm3, %v1111_v61  ;;  %1291 = vst.msk [vmem:[%s2688_s4 + $0x50] sm:$0xff] %vm1280_vm3, %v1109_v0 }
 0x172   :  { %v1175_v2 = vpop.permute.xlu1 %1174  ;;  %v1173_v6 = vpop.permute.xlu0 %1172 }
 0x173   :  { %1324 = vst.msk [vmem:[%s2688_s4 + $0x158] sm:$0xff] %vm1280_vm3, %v1175_v2  ;;  %1323 = vst.msk [vmem:[%s2688_s4 + $0x150] sm:$0xff] %vm1280_vm3, %v1173_v6 }
 0x176   :  { %v1107_v10 = vpop.permute.xlu1 %1106  ;;  %v1105_v52 = vpop.permute.xlu0 %1104 }
 0x177   :  { %1290 = vst.msk [vmem:[%s2688_s4 + $0x48] sm:$0xff] %vm1280_vm3, %v1107_v10  ;;  %1289 = vst.msk [vmem:[%s2688_s4 + $0x40] sm:$0xff] %vm1280_vm3, %v1105_v52 }
 0x17a   :  { %v1171_v42 = vpop.permute.xlu1 %1170  ;;  %v1169_v27 = vpop.permute.xlu0 %1168 }
 0x17b   :  { %1322 = vst.msk [vmem:[%s2688_s4 + $0x148] sm:$0xff] %vm1280_vm3, %v1171_v42  ;;  %1321 = vst.msk [vmem:[%s2688_s4 + $0x140] sm:$0xff] %vm1280_vm3, %v1169_v27 }
 0x17e   :  { %v1119_v31 = vpop.permute.xlu1 %1118  ;;  %v1117_v50 = vpop.permute.xlu0 %1116 }
 0x17f   :  { %1296 = vst.msk [vmem:[%s2688_s4 + $0x78] sm:$0xff] %vm1280_vm3, %v1119_v31  ;;  %1295 = vst.msk [vmem:[%s2688_s4 + $0x70] sm:$0xff] %vm1280_vm3, %v1117_v50 }
 0x182   :  { %v1183_v33 = vpop.permute.xlu1 %1182  ;;  %v1181_v36 = vpop.permute.xlu0 %1180 }
 0x183   :  { %1328 = vst.msk [vmem:[%s2688_s4 + $0x178] sm:$0xff] %vm1280_vm3, %v1183_v33  ;;  %1327 = vst.msk [vmem:[%s2688_s4 + $0x170] sm:$0xff] %vm1280_vm3, %v1181_v36 }
 0x186   :  { %v1115_v24 = vpop.permute.xlu1 %1114  ;;  %v1113_v38 = vpop.permute.xlu0 %1112 }
 0x187   :  { %1294 = vst.msk [vmem:[%s2688_s4 + $0x68] sm:$0xff] %vm1280_vm3, %v1115_v24  ;;  %1293 = vst.msk [vmem:[%s2688_s4 + $0x60] sm:$0xff] %vm1280_vm3, %v1113_v38 }
 0x18a   :  { %v1179_v22 = vpop.permute.xlu1 %1178  ;;  %v1177_v14 = vpop.permute.xlu0 %1176 }
 0x18b   :  { %1326 = vst.msk [vmem:[%s2688_s4 + $0x168] sm:$0xff] %vm1280_vm3, %v1179_v22  ;;  %1325 = vst.msk [vmem:[%s2688_s4 + $0x160] sm:$0xff] %vm1280_vm3, %v1177_v14 }
 0x18e   :  { %v1127_v11 = vpop.permute.xlu1 %1126  ;;  %v1125_v40 = vpop.permute.xlu0 %1124 }
 0x18f   :  { %1300 = vst.msk [vmem:[%s2688_s4 + $0x98] sm:$0xff] %vm1280_vm3, %v1127_v11  ;;  %1299 = vst.msk [vmem:[%s2688_s4 + $0x90] sm:$0xff] %vm1280_vm3, %v1125_v40 }
 0x192   :  { %v1191_v43 = vpop.permute.xlu1 %1190  ;;  %v1189_v46 = vpop.permute.xlu0 %1188 }
 0x193   :  { %1332 = vst.msk [vmem:[%s2688_s4 + $0x198] sm:$0xff] %vm1280_vm3, %v1191_v43  ;;  %1331 = vst.msk [vmem:[%s2688_s4 + $0x190] sm:$0xff] %vm1280_vm3, %v1189_v46 }
 0x196   :  { %v1123_v49 = vpop.permute.xlu1 %1122  ;;  %v1121_v51 = vpop.permute.xlu0 %1120 }
 0x197   :  { %1298 = vst.msk [vmem:[%s2688_s4 + $0x88] sm:$0xff] %vm1280_vm3, %v1123_v49  ;;  %1297 = vst.msk [vmem:[%s2688_s4 + $0x80] sm:$0xff] %vm1280_vm3, %v1121_v51 }
 0x19a   :  { %v1187_v54 = vpop.permute.xlu1 %1186  ;;  %v1185_v56 = vpop.permute.xlu0 %1184 }
 0x19b   :  { %1330 = vst.msk [vmem:[%s2688_s4 + $0x188] sm:$0xff] %vm1280_vm3, %v1187_v54  ;;  %1329 = vst.msk [vmem:[%s2688_s4 + $0x180] sm:$0xff] %vm1280_vm3, %v1185_v56 }
 0x19e   :  { %v1135_v45 = vpop.permute.xlu1 %1134  ;;  %v1133_v57 = vpop.permute.xlu0 %1132 }
 0x19f   :  { %1304 = vst.msk [vmem:[%s2688_s4 + $0xb8] sm:$0xff] %vm1280_vm3, %v1135_v45  ;;  %1303 = vst.msk [vmem:[%s2688_s4 + $0xb0] sm:$0xff] %vm1280_vm3, %v1133_v57 }
 0x1a2   :  { %v1199_v59 = vpop.permute.xlu1 %1198  ;;  %v1197_v47 = vpop.permute.xlu0 %1196 }
 0x1a3   :  { %1336 = vst.msk [vmem:[%s2688_s4 + $0x1b8] sm:$0xff] %vm1280_vm3, %v1199_v59  ;;  %1335 = vst.msk [vmem:[%s2688_s4 + $0x1b0] sm:$0xff] %vm1280_vm3, %v1197_v47 }
 0x1a6   :  { %v1131_v62 = vpop.permute.xlu1 %1130  ;;  %v1129_v63 = vpop.permute.xlu0 %1128 }
 0x1a7   :  { %1302 = vst.msk [vmem:[%s2688_s4 + $0xa8] sm:$0xff] %vm1280_vm3, %v1131_v62  ;;  %1301 = vst.msk [vmem:[%s2688_s4 + $0xa0] sm:$0xff] %vm1280_vm3, %v1129_v63 }
 0x1aa   :  { %v1195_v20 = vpop.permute.xlu1 %1194  ;;  %v1193_v37 = vpop.permute.xlu0 %1192 }
 0x1ab   :  { %1334 = vst.msk [vmem:[%s2688_s4 + $0x1a8] sm:$0xff] %vm1280_vm3, %v1195_v20  ;;  %1333 = vst.msk [vmem:[%s2688_s4 + $0x1a0] sm:$0xff] %vm1280_vm3, %v1193_v37 }
 0x1ae   :  { %v1143_v3 = vpop.permute.xlu1 %1142  ;;  %v1141_v4 = vpop.permute.xlu0 %1140 }
 0x1af   :  { %1308 = vst.msk [vmem:[%s2688_s4 + $0xd8] sm:$0xff] %vm1280_vm3, %v1143_v3  ;;  %1307 = vst.msk [vmem:[%s2688_s4 + $0xd0] sm:$0xff] %vm1280_vm3, %v1141_v4 }
 0x1b2   :  { %v1207_v8 = vpop.permute.xlu1 %1206  ;;  %v1205_v12 = vpop.permute.xlu0 %1204 }
 0x1b3   :  { %1340 = vst.msk [vmem:[%s2688_s4 + $0x1d8] sm:$0xff] %vm1280_vm3, %v1207_v8  ;;  %1339 = vst.msk [vmem:[%s2688_s4 + $0x1d0] sm:$0xff] %vm1280_vm3, %v1205_v12 }
 0x1b6   :  { %v1139_v15 = vpop.permute.xlu1 %1138  ;;  %v1137_v13 = vpop.permute.xlu0 %1136 }
 0x1b7   :  { %1306 = vst.msk [vmem:[%s2688_s4 + $0xc8] sm:$0xff] %vm1280_vm3, %v1139_v15  ;;  %1305 = vst.msk [vmem:[%s2688_s4 + $0xc0] sm:$0xff] %vm1280_vm3, %v1137_v13 }
 0x1ba   :  { %v1203_v19 = vpop.permute.xlu1 %1202  ;;  %v1201_v17 = vpop.permute.xlu0 %1200 }
 0x1bb   :  { %1338 = vst.msk [vmem:[%s2688_s4 + $0x1c8] sm:$0xff] %vm1280_vm3, %v1203_v19  ;;  %1337 = vst.msk [vmem:[%s2688_s4 + $0x1c0] sm:$0xff] %vm1280_vm3, %v1201_v17 }
 0x1be   :  { %v1151_v23 = vpop.permute.xlu1 %1150  ;;  %v1149_v9 = vpop.permute.xlu0 %1148 }
 0x1bf   :  { %1312 = vst.msk [vmem:[%s2688_s4 + $0xf8] sm:$0xff] %vm1280_vm3, %v1151_v23  ;;  %1311 = vst.msk [vmem:[%s2688_s4 + $0xf0] sm:$0xff] %vm1280_vm3, %v1149_v9 }
 0x1c2   :  { %v1147_v26 = vpop.permute.xlu1 %1146  ;;  %v1145_v5 = vpop.permute.xlu0 %1144 }
 0x1c3   :  { %1310 = vst.msk [vmem:[%s2688_s4 + $0xe8] sm:$0xff] %vm1280_vm3, %v1147_v26  ;;  %1309 = vst.msk [vmem:[%s2688_s4 + $0xe0] sm:$0xff] %vm1280_vm3, %v1145_v5 }
 0x1c6   :  { %v1211_v29 = vpop.permute.xlu1 %1210  ;;  %v1209_v34 = vpop.permute.xlu0 %1208 }
 0x1c7   :  { %1342 = vst.msk [vmem:[%s2688_s4 + $0x1e8] sm:$0xff] %vm1280_vm3, %v1211_v29  ;;  %1341 = vst.msk [vmem:[%s2688_s4 + $0x1e0] sm:$0xff] %vm1280_vm3, %v1209_v34 }
 0x1ca   :  { %v1215_v28 = vpop.permute.xlu1 %1214  ;;  %v1213_v18 = vpop.permute.xlu0 %1212 }
 0x1cb   :  { %1344 = vst.msk [vmem:[%s2688_s4 + $0x1f8] sm:$0xff] %vm1280_vm3, %v1215_v28  ;;  %1343 = vst.msk [vmem:[%s2688_s4 + $0x1f0] sm:$0xff] %vm1280_vm3, %v1213_v18 }

// kernel: bottleneck_pallas.4
= control target key start
LH: loop header
LB: loop body
LE: loop exit
PB: predicated region body
PF: predicated region fallthrough
CT: control target
= control target key end

     0   :  { %s3995_s12 = smov 0   ;;  %s3997_s13 = smov 0   ;;  %s4839_s0 = inlined_call_operand.vmem [shape: bf16[2,18,18,4], index: 0, kind: input, shape index: {}]   ;;  %s4840_s1 = inlined_call_operand.vmem [shape: bf16[9,4,4], index: 1, kind: input, shape index: {}]   ;;  %s4841_s2 = inlined_call_operand.vmem [shape: f32[1,4], index: 2, kind: input, shape index: {}]   ;;  %s4842_s3 = inlined_call_operand.vmem [shape: bf16[2,16,16,4], index: 3, kind: output, shape index: {}]  }
   0x1   :  { %s3999_s14 = smov 0   ;;  %s4001_s15 = smov 0  }
   0x2   :  { %s4003_s16 = smov 0  }
   0x3 LB: > { %s22_s17 = sadd.s32 1, %s3965_s14  ;;  %s25_s18 = sadd.s32 1, %s3969_s15  ;;  %s3973_s16 = sphi %s4003_s16, %s13_s16   ;;  %s3969_s15 = sphi %s4001_s15, %s4850_s15   ;;  %s3965_s14 = sphi %s3999_s14, %s4849_s14   ;;  %s3961_s13 = sphi %s3997_s13, %s4848_s13   ;;  %s3957_s12 = sphi %s3995_s12, %s4847_s12  }
   0x4   : > { %p23_p0 = scmp.ge.s32.totalorder %s22_s17, 2  ;;  %p3262_p1 = scmp.ge.s32.totalorder %s3973_s16, 1 }
   0x5   : > { %p151_p2 = scmp.lt.s32.totalorder %s3973_s16, 5 }
   0x6   : > { %s4852_s17 = smov (%p23_p0, %s22_s17), 0  ;;  %s4854_s18 = smov (!%p23_p0, %s25_s18), %s3969_s15 }
   0x7   : > { %p152_p3 = pnand %p3262_p1, %p151_p2  ;;  %p27_p4 = scmp.ge.s32.totalorder %s4854_s18, 2 }
   0x8   : > { %v217_v0 = vld [vmem:[%s4840_s1] sm:$0x3] (!%p152_p3)  ;;  %vm283_vm0 = vcmask (!%p152_p3), 1041408   ;;  %p180_p5 = scmp.lt.s32.totalorder (!%p152_p3), %s3961_s13, 1  ;;  %v3287_v2 = vld [vmem:[%s4840_s1 + $0x2] sm:$0x3] (!%p152_p3) }
   0x9   : > { %s4856_s18 = smov (%p27_p4, %s4854_s18), 0  ;;  %155 = sbr.rel (%p152_p3) target bundleno = 416 (0x1a0), region = 32 }
   0xa   : > { %3861 = vmatprep.subr.msk.bf16.mxu1 (!%p152_p3), %vm283_vm0, %v217_v0  ;;  %v285_v1 = vsel (!%p152_p3), %vm283_vm0, %v217_v0, 0  ;;  %3860 = vmatprep.subr.msk.bf16.mxu0 (!%p152_p3), %vm283_vm0, %v217_v0  ;;  %v3312_v3 = vld [vmem:[%s4840_s1 + $0x4] sm:$0x3] (!%p152_p3)  ;;  %s3598_s25 = smul.u32 (!%p152_p3), 96, %s3957_s12  ;;  %vm258_vm1 = vcmask (!%p152_p3), 31744   ;;  %v670_v8 = vsel (!%p152_p3), %vm283_vm0, %v3287_v2, 0 }
   0xb   : > { %3859 = vmatpush3.bf16.msra.mxu1 (!%p152_p3), %v285_v1  ;;  %3697 = vmatpush3.bf16.msra.mxu0 (!%p152_p3), %v285_v1  ;;  %v3347_v4 = vld [vmem:[%s4840_s1 + $0x6] sm:$0x3] (!%p152_p3)  ;;  %v3388_v5 = vld [vmem:[%s4840_s1 + $0x8] sm:$0x3] (!%p152_p3)  ;;  %v4059_v6 = vld [vmem:[%s4840_s1 + $0xa] sm:$0x3] (!%p152_p3) }
   0xc   : > { %3862 = vmatprep.subr.msk.bf16.mxu1 (!%p152_p3), %vm283_vm0, %v3287_v2  ;;  %3863 = vmatprep.subr.msk.bf16.mxu0 (!%p152_p3), %vm283_vm0, %v3312_v3  ;;  %v4066_v9 = vld [vmem:[%s4840_s1 + $0xc] sm:$0x3] (!%p152_p3)  ;;  %v975_v11 = vsel (!%p152_p3), %vm283_vm0, %v3312_v3, 0  ;;  %v4073_v12 = vld [vmem:[%s4840_s1 + $0xe] sm:$0x3] (!%p152_p3)  ;;  %v4078_v14 = vsel (!%p152_p3), %vm283_vm0, %v3347_v4, 0 }
   0xd   : > { %vm865_vm2 = vcmask (!%p152_p3), 1042432   ;;  %vm866_vm3 = vcmask (!%p152_p3), 1046532   ;;  %v4083_v15 = vld [vmem:[%s4840_s1 + $0x10] sm:$0x3] (!%p152_p3)  ;;  %vm424_vm4 = vsmask.f32 (!%p152_p3), 3328 }
   0xe   : > { %vm425_vm5 = vsmask.f32 (!%p152_p3), 7440  ;;  %v4088_v17 = vsel (!%p152_p3), %vm283_vm0, %v3388_v5, 0  ;;  %v4094_v19 = vsel (!%p152_p3), %vm283_vm0, %v4059_v6, 0  ;;  %v4101_v21 = vsel (!%p152_p3), %vm283_vm0, %v4066_v9, 0  ;;  %vm4129_vm6 = vmor (!%p152_p3), %vm865_vm2, %vm866_vm3  ;;  %s3264_s23 = sshll.u32 (!%p152_p3), %s3957_s12, 3 }
   0xf   : > { %v4107_v23 = vsel (!%p152_p3), %vm283_vm0, %v4073_v12, 0  ;;  %v4113_v25 = vsel (!%p152_p3), %vm283_vm0, %v4083_v15, 0  ;;  %vm4135_vm7 = vmor (!%p152_p3), %vm424_vm4, %vm425_vm5  ;;  %p188_p6 = scmp.lt.s32.totalorder (!%p152_p3), %s3264_s23, 15  ;;  %vm3141_vm8 = vcmask (!%p152_p3), 27648  }
  0x10   : > { %s4858_s13 = smov (!%p180_p5, %s3961_s13), 1 }
  0x11   : > { %s3870_s26 = smul.u32 216, %s4858_s13  ;;  %s4860_s23 = smov (!%p188_p6, %s3264_s23), 15 }
  0x12   : > { %s3265_s12 = sshll.u32 %s4860_s23, 1  ;;  %s3266_s24 = sshll.u32 %s4858_s13, 5 }
  0x13   : > { %s184_s29 = scalar_lea.vmem %s4839_s0, %s3870_s26 }
  0x14   : > { %s4048_s30 = scalar_lea.vmem %s184_s29, %s3598_s25  ;;  %s4743_s25 = sadd.s32 %s3266_s24, %s3265_s12 }
  0x15   : > { %v3911_v7 = vld [vmem:[%s4048_s30 + $0x30] sm:$0xff]   ;;  %v3912_v10 = vld [vmem:[%s4048_s30 + $0x3c] sm:$0xff]   ;;  %v3915_v18 = vld [vmem:[%s4048_s30 + $0x48] sm:$0xff]   ;;  %s3267_s13 = sshll.u32 %s4743_s25, 2 }
  0x16   : > { %3706 = vmatprep.mubr.msk.bf16.mxu1 %vm258_vm1, %v3911_v7  ;;  %v3913_v13 = vld [vmem:[%s4048_s30] sm:$0xff]   ;;  %v3914_v16 = vld [vmem:[%s4048_s30 + $0xc] sm:$0xff]   ;;  %v3916_v20 = vld [vmem:[%s4048_s30 + $0x54] sm:$0xff]  }
  0x17   : > { %3707 = vmatmul.mubr.msk.bf16.vlgmr.msra.gmra.mrb[0].mxu1 %vm258_vm1, %v3912_v10  ;;  %3698 = vmatprep.mubr.msk.bf16.mxu0 %vm258_vm1, %v3913_v13  ;;  %v3917_v22 = vld [vmem:[%s4048_s30 + $0x18] sm:$0xff]   ;;  %v3918_v24 = vld [vmem:[%s4048_s30 + $0x24] sm:$0xff]   ;;  %v400_v26 = vld [vmem:[%s4048_s30] sm:$0xf] }
  0x18   : > { %3715 = vmatpush3.bf16.msra.mxu1 %v670_v8  ;;  %3699 = vmatmul.mubr.msk.bf16.vlgmr.msra.gmra.mrb[0].mxu0 %vm258_vm1, %v3914_v16  ;;  %v401_v27 = vld [vmem:[%s4048_s30 + $0x4] sm:$0xf]  ;;  %v402_v28 = vld [vmem:[%s4048_s30 + $0x8] sm:$0x1]  ;;  %v428_v29 = vshrl.u32 %v400_v26, 16  ;;  %v431_v30 = vshll.u32 %v400_v26, 16 }
  0x19   : > { %3864 = vmatprep.subr.msk.bf16.mxu1 %vm283_vm0, %v3347_v4  ;;  %3710 = vmatprep.mubr.msk.bf16.mxu1 %vm258_vm1, %v3915_v18  ;;  %v437_v31 = vshll.u32 %v401_v27, 16  ;;  %v441_v32 = vshrl.u32 %v401_v27, 16  ;;  %v403_v33 = vld [vmem:[%s4048_s30 + $0xc] sm:$0xf]  ;;  %v447_v34 = vshll.u32 %v402_v28, 16 }
  0x1a   : > { %3733 = vmatpush3.bf16.msra.mxu0 %v975_v11  ;;  %3702 = vmatprep.mubr.msk.bf16.mxu0 %vm258_vm1, %v3917_v22  ;;  %v404_v35 = vld [vmem:[%s4048_s30 + $0x10] sm:$0xf]  ;;  %v405_v36 = vld [vmem:[%s4048_s30 + $0x14] sm:$0x1]  ;;  %v452_v37 = vshrl.u32 %v403_v33, 16  ;;  %v430_v38 = vrot.slane %v428_v29, 4 }
  0x1b   : > { %3865 = vmatprep.subr.msk.bf16.mxu0 %vm283_vm0, %v3388_v5  ;;  %v433_v39 = vrot.slane %v431_v30, 5  ;;  %v439_v40 = vrot.slane %v437_v31, 5  ;;  %v443_v41 = vrot.slane %v441_v32, 4  ;;  %v817_v42 = vld [vmem:[%s4048_s30] sm:$0xe]  ;;  %v449_v43 = vrot.slane %v447_v34, 5 }
  0x1c   : > { %v454_v44 = vrot.slane %v452_v37, 4  ;;  %v455_v45 = vshll.u32 %v403_v33, 16  ;;  %v461_v46 = vshll.u32 %v404_v35, 16  ;;  %v818_v47 = vld [vmem:[%s4048_s30 + $0x4] sm:$0xf]  ;;  %v465_v50 = vshrl.u32 %v404_v35, 16 }
  0x1d   : > { %v434_v48 = vor.u32 %v433_v39, %v430_v38  ;;  %v444_v49 = vor.u32 %v443_v41, %v439_v40  ;;  %v471_v51 = vshll.u32 %v405_v36, 16  ;;  %v819_v52 = vld [vmem:[%s4048_s30 + $0x8] sm:$0x1]  ;;  %v3304_v57 = vrot.slane %v817_v42, 9  ;;  %v406_v59 = vld [vmem:[%s4048_s30 + $0x18] sm:$0xf] }
  0x1e   : > { %v457_v55 = vrot.slane %v455_v45, 5  ;;  %v463_v56 = vrot.slane %v461_v46, 5  ;;  %v870_v58 = vrot.slane %v818_v47, 5  ;;  %v467_v62 = vrot.slane %v465_v50, 4  ;;  %v407_v4 = vld [vmem:[%s4048_s30 + $0x1c] sm:$0xf] }
  0x1f   : > { %3711 = vmatmul.mubr.msk.bf16.gmra.mrb[4].mxu1 %vm258_vm1, %v3916_v20  ;;  %v435_v60 = vrot.slane %v434_v48, 4  ;;  %v445_v61 = vrot.slane %v444_v49, 4  ;;  %v473_v63 = vrot.slane %v471_v51, 5  ;;  %v873_v3 = vrot.slane %v819_v52, 5  ;;  %v408_v10 = vld [vmem:[%s4048_s30 + $0x20] sm:$0x1] }
  0x20   : > { %3703 = vmatmul.mubr.msk.bf16.gmra.mrb[4].mxu0 %vm258_vm1, %v3918_v24  ;;  %v458_v0 = vor.u32 %v457_v55, %v454_v44  ;;  %v871_v1 = vsel %vm4129_vm6, %v3304_v57, %v870_v58  ;;  %v872_v2 = vrot.slane %v870_v58, 4  ;;  %v468_v8 = vor.u32 %v467_v62, %v463_v56  ;;  %v820_v22 = vld [vmem:[%s4048_s30 + $0xc] sm:$0xe]  ;;  %v821_v24 = vld [vmem:[%s4048_s30 + $0x10] sm:$0xf] }
  0x21   : > { %v440_v5 = vsel %vm4135_vm7, %v435_v60, %v439_v40  ;;  %v450_v7 = vsel %vm4135_vm7, %v445_v61, %v449_v43  ;;  %v476_v11 = vshrl.u32 %v406_v59, 16  ;;  %v479_v20 = vshll.u32 %v406_v59, 16  ;;  %v822_v30 = vld [vmem:[%s4048_s30 + $0x14] sm:$0x1]  ;;  %v409_v35 = vld [vmem:[%s4048_s30 + $0x24] sm:$0xf] }
  0x22   : > { %v3288_v13 = vcombine.low %v440_v5, %v450_v7  ;;  %v459_v16 = vrot.slane %v458_v0, 4  ;;  %v874_v18 = vsel %vm4129_vm6, %v872_v2, %v873_v3  ;;  %v469_v26 = vrot.slane %v468_v8, 4  ;;  %v410_v40 = vld [vmem:[%s4048_s30 + $0x28] sm:$0xf]  ;;  %v411_v45 = vld [vmem:[%s4048_s30 + $0x2c] sm:$0x1] }
  0x23   : > { %v3313_v27 = vcombine.low %v871_v1, %v874_v18  ;;  %v478_v28 = vrot.slane %v476_v11, 4  ;;  %v485_v29 = vshll.u32 %v407_v4, 16  ;;  %v481_v32 = vrot.slane %v479_v20, 5  ;;  %v823_v50 = vld [vmem:[%s4048_s30 + $0x18] sm:$0xe] }
  0x24   : > { %3716 = vmatprep.mubr.msk.bf16.mxu1 %vm258_vm1, %v3288_v13  ;;  %v464_v31 = vsel %vm4135_vm7, %v459_v16, %v463_v56  ;;  %v489_v33 = vshrl.u32 %v407_v4, 16  ;;  %v495_v34 = vshll.u32 %v408_v10, 16  ;;  %v474_v36 = vsel %vm4135_vm7, %v469_v26, %v473_v63  ;;  %v824_v57 = vld [vmem:[%s4048_s30 + $0x1c] sm:$0xf]  ;;  %v825_v62 = vld [vmem:[%s4048_s30 + $0x20] sm:$0x1] }
  0x25   : > { %3734 = vmatprep.mubr.msk.bf16.mxu0 %vm258_vm1, %v3313_v27  ;;  %v487_v37 = vrot.slane %v485_v29, 5  ;;  %v3305_v38 = vrot.slane %v820_v22, 9  ;;  %v877_v39 = vrot.slane %v821_v24, 5  ;;  %v3289_v41 = vcombine.low %v464_v31, %v474_v36  ;;  %v412_v3 = vld [vmem:[%s4048_s30 + $0x30] sm:$0xf] }
  0x26   : > { %v482_v42 = vor.u32 %v481_v32, %v478_v28  ;;  %v491_v43 = vrot.slane %v489_v33, 4  ;;  %v497_v44 = vrot.slane %v495_v34, 5  ;;  %v880_v48 = vrot.slane %v822_v30, 5  ;;  %v413_v8 = vld [vmem:[%s4048_s30 + $0x34] sm:$0xf] }
  0x27   : > { %v878_v46 = vsel %vm4129_vm6, %v3305_v38, %v877_v39  ;;  %v879_v47 = vrot.slane %v877_v39, 4  ;;  %v500_v49 = vshrl.u32 %v409_v35, 16  ;;  %3717 = vmatmul.mubr.msk.bf16.vlgmr.msra.gmra.mrb[8].mxu1 %vm258_vm1, %v3289_v41  ;;  %v503_v55 = vshll.u32 %v409_v35, 16  ;;  %v826_v30 = vld [vmem:[%s4048_s30 + $0x24] sm:$0xe] }
  0x28   : > { %v483_v51 = vrot.slane %v482_v42, 4  ;;  %v492_v52 = vor.u32 %v491_v43, %v487_v37  ;;  %v509_v56 = vshll.u32 %v410_v40, 16  ;;  %3751 = vmatpush3.bf16.msra.mxu1 %v4078_v14  ;;  %v513_v60 = vshrl.u32 %v410_v40, 16  ;;  %v827_v34 = vld [vmem:[%s4048_s30 + $0x28] sm:$0xf] }
  0x29   : > { %v881_v58 = vsel %vm4129_vm6, %v879_v47, %v880_v48  ;;  %v502_v59 = vrot.slane %v500_v49, 4  ;;  %v519_v61 = vshll.u32 %v411_v45, 16  ;;  %v505_v2 = vrot.slane %v503_v55, 5  ;;  %3866 = vmatprep.subr.msk.bf16.mxu1 %vm283_vm0, %v4059_v6  ;;  %v414_v6 = vld [vmem:[%s4048_s30 + $0x38] sm:$0x1] }
  0x2a   : > { %v488_v63 = vsel %vm4135_vm7, %v483_v51, %v487_v37  ;;  %v493_v0 = vrot.slane %v492_v52, 4  ;;  %v3314_v1 = vcombine.low %v878_v46, %v881_v58  ;;  %v511_v14 = vrot.slane %v509_v56, 5  ;;  %v828_v39 = vld [vmem:[%s4048_s30 + $0x2c] sm:$0x1]  ;;  %v415_v40 = vld [vmem:[%s4048_s30 + $0x3c] sm:$0xf] }
  0x2b   : > { %v515_v4 = vrot.slane %v513_v60, 4  ;;  %v521_v5 = vrot.slane %v519_v61, 5  ;;  %v3306_v7 = vrot.slane %v823_v50, 9  ;;  %v506_v11 = vor.u32 %v505_v2, %v502_v59  ;;  %v417_v49 = vld [vmem:[%s4048_s30 + $0x44] sm:$0x1] }
  0x2c   : > { %v498_v10 = vsel %vm4135_vm7, %v493_v0, %v497_v44  ;;  %3735 = vmatmul.mubr.msk.bf16.vlgmr.msra.gmra.mrb[8].mxu0 %vm258_vm1, %v3314_v1  ;;  %v884_v13 = vrot.slane %v824_v57, 5  ;;  %v887_v16 = vrot.slane %v825_v62, 5  ;;  %v524_v22 = vshrl.u32 %v412_v3, 16  ;;  %v416_v44 = vld [vmem:[%s4048_s30 + $0x40] sm:$0xf] }
  0x2d   : > { %v3290_v18 = vcombine.low %v488_v63, %v498_v10  ;;  %v516_v20 = vor.u32 %v515_v4, %v511_v14  ;;  %3769 = vmatpush3.bf16.msra.mxu0 %v4088_v17  ;;  %v527_v24 = vshll.u32 %v412_v3, 16  ;;  %v507_v26 = vrot.slane %v506_v11, 4  ;;  %v829_v56 = vld [vmem:[%s4048_s30 + $0x30] sm:$0xe]  ;;  %v830_v61 = vld [vmem:[%s4048_s30 + $0x34] sm:$0xf] }
  0x2e   : > { %v885_v27 = vsel %vm4129_vm6, %v3306_v7, %v884_v13  ;;  %v886_v28 = vrot.slane %v884_v13, 4  ;;  %v533_v29 = vshll.u32 %v413_v8, 16  ;;  %3867 = vmatprep.subr.msk.bf16.mxu0 %vm283_vm0, %v4066_v9  ;;  %v526_v17 = vrot.slane %v524_v22, 4  ;;  %v831_v2 = vld [vmem:[%s4048_s30 + $0x38] sm:$0x1] }
  0x2f   : > { %3720 = vmatprep.mubr.msk.bf16.mxu1 %vm258_vm1, %v3290_v18  ;;  %v517_v31 = vrot.slane %v516_v20, 4  ;;  %v529_v32 = vrot.slane %v527_v24, 5  ;;  %v537_v33 = vshrl.u32 %v413_v8, 16  ;;  %v512_v35 = vsel %vm4135_vm7, %v507_v26, %v511_v14  ;;  %v418_v7 = vld [vmem:[%s4048_s30 + $0x48] sm:$0xf] }
  0x30   : > { %v888_v36 = vsel %vm4129_vm6, %v886_v28, %v887_v16  ;;  %v535_v37 = vrot.slane %v533_v29, 5  ;;  %v543_v38 = vshll.u32 %v414_v6, 16  ;;  %v3307_v47 = vrot.slane %v826_v30, 9  ;;  %v419_v16 = vld [vmem:[%s4048_s30 + $0x4c] sm:$0xf] }
  0x31   : > { %v522_v9 = vsel %vm4135_vm7, %v517_v31, %v521_v5  ;;  %v3315_v41 = vcombine.low %v885_v27, %v888_v36  ;;  %v530_v42 = vor.u32 %v529_v32, %v526_v17  ;;  %v539_v43 = vrot.slane %v537_v33, 4  ;;  %v420_v24 = vld [vmem:[%s4048_s30 + $0x50] sm:$0x1]  ;;  %v832_v30 = vld [vmem:[%s4048_s30 + $0x3c] sm:$0xe] }
  0x32   : > { %v3291_v45 = vcombine.low %v512_v35, %v522_v9  ;;  %v545_v46 = vrot.slane %v543_v38, 5  ;;  %v891_v48 = vrot.slane %v827_v34, 5  ;;  %v894_v52 = vrot.slane %v828_v39, 5  ;;  %v833_v31 = vld [vmem:[%s4048_s30 + $0x40] sm:$0xf] }
  0x33   : > { %3738 = vmatprep.mubr.msk.bf16.mxu0 %vm258_vm1, %v3315_v41  ;;  %v531_v50 = vrot.slane %v530_v42, 4  ;;  %v540_v51 = vor.u32 %v539_v43, %v535_v37  ;;  %v548_v55 = vshrl.u32 %v415_v40, 16  ;;  %v551_v59 = vshll.u32 %v415_v40, 16  ;;  %v834_v35 = vld [vmem:[%s4048_s30 + $0x44] sm:$0x1] }
  0x34   : > { %3721 = vmatmul.mubr.msk.bf16.gmra.mrb[12].mxu1 %vm258_vm1, %v3291_v45  ;;  %v892_v57 = vsel %vm4129_vm6, %v3307_v47, %v891_v48  ;;  %v893_v58 = vrot.slane %v891_v48, 4  ;;  %v557_v60 = vshll.u32 %v416_v44, 16  ;;  %v561_v1 = vshrl.u32 %v416_v44, 16  ;;  %v421_v43 = vld [vmem:[%s4048_s30 + $0x54] sm:$0xf] }
  0x35   : > { %v536_v62 = vsel %vm4135_vm7, %v531_v50, %v535_v37  ;;  %v541_v63 = vrot.slane %v540_v51, 4  ;;  %v550_v0 = vrot.slane %v548_v55, 4  ;;  %v553_v14 = vrot.slane %v551_v59, 5  ;;  %v422_v48 = vld [vmem:[%s4048_s30 + $0x58] sm:$0xf] }
  0x36   : > { %v895_v3 = vsel %vm4129_vm6, %v893_v58, %v894_v52  ;;  %v559_v4 = vrot.slane %v557_v60, 5  ;;  %v567_v5 = vshll.u32 %v417_v49, 16  ;;  %v563_v11 = vrot.slane %v561_v1, 4  ;;  %v423_v49 = vld [vmem:[%s4048_s30 + $0x5c] sm:$0x1] }
  0x37   : > { %v546_v8 = vsel %vm4135_vm7, %v541_v63, %v545_v46  ;;  %v3316_v10 = vcombine.low %v892_v57, %v895_v3  ;;  %v3308_v13 = vrot.slane %v829_v56, 9  ;;  %v554_v20 = vor.u32 %v553_v14, %v550_v0  ;;  %v835_v56 = vld [vmem:[%s4048_s30 + $0x48] sm:$0xe]  ;;  %v838_v3 = vld [vmem:[%s4048_s30 + $0x54] sm:$0xe] }
  0x38   : > { %v3292_v18 = vcombine.low %v536_v62, %v546_v8  ;;  %v569_v6 = vrot.slane %v567_v5, 5  ;;  %v898_v22 = vrot.slane %v830_v61, 5  ;;  %v564_v26 = vor.u32 %v563_v11, %v559_v4  ;;  %v836_v61 = vld [vmem:[%s4048_s30 + $0x4c] sm:$0xf]  ;;  %v839_v8 = vld [vmem:[%s4048_s30 + $0x58] sm:$0xf] }
  0x39   : > { %3739 = vmatmul.mubr.msk.bf16.gmra.mrb[12].mxu0 %vm258_vm1, %v3316_v10  ;;  %v901_v27 = vrot.slane %v831_v2, 5  ;;  %v572_v28 = vshrl.u32 %v418_v7, 16  ;;  %v575_v29 = vshll.u32 %v418_v7, 16  ;;  %v555_v17 = vrot.slane %v554_v20, 4  ;;  %v837_v2 = vld [vmem:[%s4048_s30 + $0x50] sm:$0x1] }
  0x3a   : > { %3724 = vmatprep.mubr.msk.bf16.mxu1 %vm258_vm1, %v3292_v18  ;;  %v899_v32 = vsel %vm4129_vm6, %v3308_v13, %v898_v22  ;;  %v900_v33 = vrot.slane %v898_v22, 4  ;;  %v581_v34 = vshll.u32 %v419_v16, 16  ;;  %v565_v36 = vrot.slane %v564_v26, 4  ;;  %v840_v18 = vld [vmem:[%s4048_s30 + $0x5c] sm:$0x1] }
  0x3b   : > { %v574_v37 = vrot.slane %v572_v28, 4  ;;  %v577_v38 = vrot.slane %v575_v29, 5  ;;  %v585_v39 = vshrl.u32 %v419_v16, 16  ;;  %v560_v40 = vsel %vm4135_vm7, %v555_v17, %v559_v4 }
  0x3c   : > { %v902_v9 = vsel %vm4129_vm6, %v900_v33, %v901_v27  ;;  %v583_v41 = vrot.slane %v581_v34, 5  ;;  %v591_v42 = vshll.u32 %v420_v24, 16  ;;  %v570_v44 = vsel %vm4135_vm7, %v565_v36, %v569_v6  ;;  %v3365_v34 = vld [vmem:[%s4048_s30 + $0x10] sm:$0xf] }
  0x3d   : > { %v3317_v45 = vcombine.low %v899_v32, %v902_v9  ;;  %v578_v46 = vor.u32 %v577_v38, %v574_v37  ;;  %v587_v47 = vrot.slane %v585_v39, 4  ;;  %v3293_v50 = vcombine.low %v560_v40, %v570_v44  ;;  %v3366_v39 = vld [vmem:[%s4048_s30 + $0x14] sm:$0x1] }
  0x3e   : > { %v593_v51 = vrot.slane %v591_v42, 5  ;;  %v3309_v52 = vrot.slane %v832_v30, 9  ;;  %v905_v55 = vrot.slane %v833_v31, 5  ;;  %v908_v59 = vrot.slane %v834_v35, 5  ;;  %v3364_v30 = vld [vmem:[%s4048_s30 + $0xc] sm:$0xf] }
  0x3f   : > { %3742 = vmatprep.mubr.msk.bf16.mxu0 %vm258_vm1, %v3317_v45  ;;  %v579_v57 = vrot.slane %v578_v46, 4  ;;  %v588_v58 = vor.u32 %v587_v47, %v583_v41  ;;  %v596_v60 = vshrl.u32 %v421_v43, 16  ;;  %3725 = vmatmul.mubr.msk.bf16.gmra.mrb[16].mxu1 %vm258_vm1, %v3293_v50  ;;  %v599_v0 = vshll.u32 %v421_v43, 16  ;;  %v3367_v47 = vld [vmem:[%s4048_s30 + $0x18] sm:$0xf] }
  0x40   : > { %v906_v62 = vsel %vm4129_vm6, %v3309_v52, %v905_v55  ;;  %v907_v63 = vrot.slane %v905_v55, 4  ;;  %v605_v1 = vshll.u32 %v422_v48, 16  ;;  %v609_v7 = vshrl.u32 %v422_v48, 16  ;;  %v3368_v48 = vld [vmem:[%s4048_s30 + $0x1c] sm:$0xf]  ;;  %v3919_v52 = vld [vmem:[%s4048_s30 + $0xc] sm:$0xff]  }
  0x41   : > { %v584_v14 = vsel %vm4135_vm7, %v579_v57, %v583_v41  ;;  %v589_v4 = vrot.slane %v588_v58, 4  ;;  %v598_v5 = vrot.slane %v596_v60, 4  ;;  %v601_v11 = vrot.slane %v599_v0, 5 }
  0x42   : > { %v909_v10 = vsel %vm4129_vm6, %v907_v63, %v908_v59  ;;  %v607_v13 = vrot.slane %v605_v1, 5  ;;  %v615_v16 = vshll.u32 %v423_v49, 16  ;;  %v611_v22 = vrot.slane %v609_v7, 4  ;;  %v3370_v1 = vld [vmem:[%s4048_s30 + $0x24] sm:$0xf] }
  0x43   : > { %v594_v20 = vsel %vm4135_vm7, %v589_v4, %v593_v51  ;;  %v3318_v6 = vcombine.low %v906_v62, %v909_v10  ;;  %v3310_v24 = vrot.slane %v835_v56, 9  ;;  %v602_v27 = vor.u32 %v601_v11, %v598_v5  ;;  %v3369_v56 = vld [vmem:[%s4048_s30 + $0x20] sm:$0x1]  ;;  %v3371_v5 = vld [vmem:[%s4048_s30 + $0x28] sm:$0xf] }
  0x44   : > { %v3294_v26 = vcombine.low %v584_v14, %v594_v20  ;;  %v617_v28 = vrot.slane %v615_v16, 5  ;;  %v912_v29 = vrot.slane %v836_v61, 5  ;;  %v612_v31 = vor.u32 %v611_v22, %v607_v13 }
  0x45   : > { %3743 = vmatmul.mubr.msk.bf16.gmra.mrb[16].mxu0 %vm258_vm1, %v3318_v6  ;;  %v915_v17 = vrot.slane %v837_v2, 5  ;;  %v3311_v32 = vrot.slane %v838_v3, 9  ;;  %v919_v33 = vrot.slane %v839_v8, 5  ;;  %v603_v35 = vrot.slane %v602_v27, 4  ;;  %v3920_v6 = vld [vmem:[%s4048_s30 + $0x18] sm:$0xff]  }
  0x46   : > { %3728 = vmatprep.mubr.msk.bf16.mxu1 %vm258_vm1, %v3294_v26  ;;  %v913_v36 = vsel %vm4129_vm6, %v3310_v24, %v912_v29  ;;  %v914_v37 = vrot.slane %v912_v29, 4  ;;  %v922_v38 = vrot.slane %v840_v18, 5  ;;  %v613_v40 = vrot.slane %v612_v31, 4  ;;  %v3921_v24 = vld [vmem:[%s4048_s30 + $0x24] sm:$0xff]   ;;  %v3372_v27 = vld [vmem:[%s4048_s30 + $0x2c] sm:$0x1] }
  0x47   : > { %v920_v9 = vsel %vm4129_vm6, %v3311_v32, %v919_v33  ;;  %v921_v41 = vrot.slane %v919_v33, 4  ;;  %v1381_v42 = vshrl.u32 %v3364_v30, 16  ;;  %v608_v43 = vsel %vm4135_vm7, %v603_v35, %v607_v13  ;;  %v3373_v33 = vld [vmem:[%s4048_s30 + $0x30] sm:$0xf] }
  0x48   : > { %v916_v44 = vsel %vm4129_vm6, %v914_v37, %v915_v17  ;;  %v1384_v45 = vshll.u32 %v3364_v30, 16  ;;  %v1390_v46 = vshll.u32 %v3365_v34, 16  ;;  %v618_v49 = vsel %vm4135_vm7, %v613_v40, %v617_v28 }
  0x49   : > { %v3319_v50 = vcombine.low %v913_v36, %v916_v44  ;;  %v923_v51 = vsel %vm4129_vm6, %v921_v41, %v922_v38  ;;  %v1383_v55 = vrot.slane %v1381_v42, 4  ;;  %v3295_v57 = vcombine.low %v608_v43, %v618_v49  ;;  %v3374_v44 = vld [vmem:[%s4048_s30 + $0x34] sm:$0xf] }
  0x4a   : > { %v3320_v58 = vcombine.low %v920_v9, %v923_v51  ;;  %v1386_v59 = vrot.slane %v1384_v45, 5  ;;  %v1392_v60 = vrot.slane %v1390_v46, 5  ;;  %v1394_v61 = vshrl.u32 %v3365_v34, 16  ;;  %v3375_v45 = vld [vmem:[%s4048_s30 + $0x38] sm:$0x1] }
  0x4b   : > { %3746 = vmatprep.mubr.msk.bf16.mxu0 %vm258_vm1, %v3319_v50  ;;  %v1400_v62 = vshll.u32 %v3366_v39, 16  ;;  %v1405_v63 = vshrl.u32 %v3367_v47, 16  ;;  %v1408_v0 = vshll.u32 %v3367_v47, 16  ;;  %3729 = vmatmul.mubr.msk.bf16.gmra.mrb[20].mxu1 %vm258_vm1, %v3295_v57  ;;  %v1414_v3 = vshll.u32 %v3368_v48, 16  ;;  %v3376_v51 = vld [vmem:[%s4048_s30 + $0x3c] sm:$0xf] }
  0x4c   : > { %v1387_v2 = vor.u32 %v1386_v59, %v1383_v55  ;;  %v1418_v14 = vshrl.u32 %v3368_v48, 16  ;;  %v1424_v4 = vshll.u32 %v3369_v56, 16  ;;  %3752 = vmatprep.mubr.msk.bf16.mxu1 %vm258_vm1, %v3919_v52  ;;  %v1396_v7 = vrot.slane %v1394_v61, 4 }
  0x4d   : > { %3747 = vmatmul.mubr.msk.bf16.gmra.mrb[20].mxu0 %vm258_vm1, %v3320_v58  ;;  %v1402_v8 = vrot.slane %v1400_v62, 5  ;;  %v1407_v10 = vrot.slane %v1405_v63, 4  ;;  %v1410_v11 = vrot.slane %v1408_v0, 5  ;;  %v1416_v16 = vrot.slane %v1414_v3, 5  ;;  %v3377_v62 = vld [vmem:[%s4048_s30 + $0x40] sm:$0xf] }
  0x4e   : > { %v1388_v13 = vrot.slane %v1387_v2, 4  ;;  %v1420_v18 = vrot.slane %v1418_v14, 4  ;;  %v1426_v20 = vrot.slane %v1424_v4, 5  ;;  %v1397_v22 = vor.u32 %v1396_v7, %v1392_v60  ;;  %v3378_v0 = vld [vmem:[%s4048_s30 + $0x44] sm:$0x1]  ;;  %v3922_v3 = vld [vmem:[%s4048_s30 + $0x30] sm:$0xff]  }
  0x4f   : > { %v1411_v26 = vor.u32 %v1410_v11, %v1407_v10  ;;  %v1429_v28 = vshrl.u32 %v3370_v1, 16  ;;  %v1432_v29 = vshll.u32 %v3370_v1, 16  ;;  %v1438_v17 = vshll.u32 %v3371_v5, 16  ;;  %v3379_v7 = vld [vmem:[%s4048_s30 + $0x48] sm:$0xf]  ;;  %v3923_v10 = vld [vmem:[%s4048_s30 + $0x3c] sm:$0xff]  }
  0x50   : > { %v1393_v30 = vsel %vm4135_vm7, %v1388_v13, %v1392_v60  ;;  %v1421_v31 = vor.u32 %v1420_v18, %v1416_v16  ;;  %v1442_v32 = vshrl.u32 %v3371_v5, 16  ;;  %v1398_v34 = vrot.slane %v1397_v22, 4  ;;  %v3380_v18 = vld [vmem:[%s4048_s30 + $0x4c] sm:$0xf] }
  0x51   : > { %v1412_v35 = vrot.slane %v1411_v26, 4  ;;  %v1431_v36 = vrot.slane %v1429_v28, 4  ;;  %v1434_v37 = vrot.slane %v1432_v29, 5  ;;  %v1440_v39 = vrot.slane %v1438_v17, 5 }
  0x52   : > { %v1422_v38 = vrot.slane %v1421_v31, 4  ;;  %v1444_v40 = vrot.slane %v1442_v32, 4  ;;  %v1448_v9 = vshll.u32 %v3372_v27, 16  ;;  %v1403_v41 = vsel %vm4135_vm7, %v1398_v34, %v1402_v8 }
  0x53   : > { %v1417_v42 = vsel %vm4135_vm7, %v1412_v35, %v1416_v16  ;;  %v1435_v43 = vor.u32 %v1434_v37, %v1431_v36  ;;  %v1453_v46 = vshrl.u32 %v3373_v33, 16  ;;  %3753 = vmatmul.mubr.msk.bf16.vlgmr.msra.gmra.mrb[24].mxu1 %vm258_vm1, %v3920_v6  ;;  %v3389_v47 = vcombine.low %v1393_v30, %v1403_v41  ;;  %v3382_v36 = vld [vmem:[%s4048_s30 + $0x54] sm:$0xf]  ;;  %v3383_v41 = vld [vmem:[%s4048_s30 + $0x58] sm:$0xf] }
  0x54   : > { %v1427_v48 = vsel %vm4135_vm7, %v1422_v38, %v1426_v20  ;;  %v1445_v49 = vor.u32 %v1444_v40, %v1440_v39  ;;  %v1450_v50 = vrot.slane %v1448_v9, 5  ;;  %3787 = vmatpush3.bf16.msra.mxu1 %v4094_v19  ;;  %3756 = vmatprep.mubr.msk.bf16.mxu1 %vm258_vm1, %v3921_v24  ;;  %v1456_v57 = vshll.u32 %v3373_v33, 16  ;;  %v3381_v24 = vld [vmem:[%s4048_s30 + $0x50] sm:$0x1]  ;;  %v3924_v38 = vld [vmem:[%s4048_s30 + $0x48] sm:$0xff]  }
  0x55   : > { %v3390_v52 = vcombine.low %v1417_v42, %v1427_v48  ;;  %v1436_v55 = vrot.slane %v1435_v43, 4  ;;  %v1455_v56 = vrot.slane %v1453_v46, 4  ;;  %3770 = vmatprep.mubr.msk.bf16.mxu0 %vm258_vm1, %v3389_v47  ;;  %v1462_v59 = vshll.u32 %v3374_v44, 16  ;;  %3868 = vmatprep.subr.msk.bf16.mxu1 %vm283_vm0, %v4073_v12 }
  0x56   : > { %v1446_v58 = vrot.slane %v1445_v49, 4  ;;  %v1466_v60 = vshrl.u32 %v3374_v44, 16  ;;  %v1472_v61 = vshll.u32 %v3375_v45, 16  ;;  %v1458_v63 = vrot.slane %v1456_v57, 5  ;;  %v3925_v44 = vld [vmem:[%s4048_s30 + $0x54] sm:$0xff]  }
  0x57   : > { %3771 = vmatmul.mubr.msk.bf16.vlgmr.msra.gmra.mrb[24].mxu0 %vm258_vm1, %v3390_v52  ;;  %v1441_v19 = vsel %vm4135_vm7, %v1436_v55, %v1440_v39  ;;  %v1477_v1 = vshrl.u32 %v3376_v51, 16  ;;  %v1480_v2 = vshll.u32 %v3376_v51, 16  ;;  %v1464_v4 = vrot.slane %v1462_v59, 5 }
  0x58   : > { %3805 = vmatpush3.bf16.msra.mxu0 %v4101_v21  ;;  %v1451_v14 = vsel %vm4135_vm7, %v1446_v58, %v1450_v50  ;;  %v1468_v5 = vrot.slane %v1466_v60, 4  ;;  %v1474_v12 = vrot.slane %v1472_v61, 5  ;;  %v1459_v11 = vor.u32 %v1458_v63, %v1455_v56  ;;  %v3384_v50 = vld [vmem:[%s4048_s30 + $0x5c] sm:$0x1]  ;;  %v3385_v58 = vld [vmem:[%s4048_s30 + $0x60] sm:$0xf] }
  0x59   : > { %v3391_v8 = vcombine.low %v1441_v19, %v1451_v14  ;;  %v1479_v13 = vrot.slane %v1477_v1, 4  ;;  %v1482_v16 = vrot.slane %v1480_v2, 5  ;;  %3869 = vmatprep.subr.msk.bf16.mxu0 %vm283_vm0, %v4083_v15  ;;  %v1486_v6 = vshll.u32 %v3377_v62, 16  ;;  %v3386_v19 = vld [vmem:[%s4048_s30 + $0x64] sm:$0xf] }
  0x5a   : > { %v1469_v20 = vor.u32 %v1468_v5, %v1464_v4  ;;  %v1490_v21 = vshrl.u32 %v3377_v62, 16  ;;  %v1496_v22 = vshll.u32 %v3378_v0, 16  ;;  %v1460_v26 = vrot.slane %v1459_v11, 4  ;;  %v3405_v14 = vld [vmem:[%s4048_s30 + $0xc] sm:$0xe] }
  0x5b   : > { %3774 = vmatprep.mubr.msk.bf16.mxu0 %vm258_vm1, %v3391_v8  ;;  %v1483_v27 = vor.u32 %v1482_v16, %v1479_v13  ;;  %v1501_v28 = vshrl.u32 %v3379_v7, 16  ;;  %v1504_v29 = vshll.u32 %v3379_v7, 16  ;;  %3757 = vmatmul.mubr.msk.bf16.gmra.mrb[28].mxu1 %vm258_vm1, %v3922_v3  ;;  %v1488_v31 = vrot.slane %v1486_v6, 5  ;;  %v3387_v3 = vld [vmem:[%s4048_s30 + $0x68] sm:$0x1] }
  0x5c   : > { %v1470_v30 = vrot.slane %v1469_v20, 4  ;;  %v1492_v17 = vrot.slane %v1490_v21, 4  ;;  %v1498_v15 = vrot.slane %v1496_v22, 5  ;;  %3760 = vmatprep.mubr.msk.bf16.mxu1 %vm258_vm1, %v3923_v10  ;;  %v1465_v32 = vsel %vm4135_vm7, %v1460_v26, %v1464_v4  ;;  %v3406_v8 = vld [vmem:[%s4048_s30 + $0x10] sm:$0xf] }
  0x5d   : > { %v1484_v33 = vrot.slane %v1483_v27, 4  ;;  %v1503_v34 = vrot.slane %v1501_v28, 4  ;;  %v1506_v35 = vrot.slane %v1504_v29, 5  ;;  %v1510_v40 = vshll.u32 %v3380_v18, 16  ;;  %v3407_v10 = vld [vmem:[%s4048_s30 + $0x14] sm:$0x1] }
  0x5e   : > { %v1475_v37 = vsel %vm4135_vm7, %v1470_v30, %v1474_v12  ;;  %v1493_v39 = vor.u32 %v1492_v17, %v1488_v31  ;;  %v1514_v9 = vshrl.u32 %v3380_v18, 16  ;;  %v1520_v46 = vshll.u32 %v3381_v24, 16  ;;  %v3408_v20 = vld [vmem:[%s4048_s30 + $0x18] sm:$0xe]  ;;  %v3926_v27 = vld [vmem:[%s4048_s30 + $0x60] sm:$0xff]  }
  0x5f   : > { %v3392_v42 = vcombine.low %v1465_v32, %v1475_v37  ;;  %v1489_v43 = vsel %vm4135_vm7, %v1484_v33, %v1488_v31  ;;  %v1507_v45 = vor.u32 %v1506_v35, %v1503_v34  ;;  %v1512_v48 = vrot.slane %v1510_v40, 5  ;;  %v3409_v31 = vld [vmem:[%s4048_s30 + $0x1c] sm:$0xf]  ;;  %v3410_v17 = vld [vmem:[%s4048_s30 + $0x20] sm:$0x1] }
  0x60   : > { %v1494_v47 = vrot.slane %v1493_v39, 4  ;;  %v1516_v49 = vrot.slane %v1514_v9, 4  ;;  %v1525_v51 = vshrl.u32 %v3382_v36, 16  ;;  %v1522_v55 = vrot.slane %v1520_v46, 5  ;;  %v3413_v9 = vld [vmem:[%s4048_s30 + $0x2c] sm:$0x1] }
  0x61   : > { %3775 = vmatmul.mubr.msk.bf16.gmra.mrb[28].mxu0 %vm258_vm1, %v3392_v42  ;;  %v1508_v52 = vrot.slane %v1507_v45, 4  ;;  %v1528_v56 = vshll.u32 %v3382_v36, 16  ;;  %v1534_v57 = vshll.u32 %v3383_v41, 16  ;;  %v1538_v62 = vshrl.u32 %v3383_v41, 16  ;;  %v3412_v36 = vld [vmem:[%s4048_s30 + $0x28] sm:$0xf] }
  0x62   : > { %v1499_v59 = vsel %vm4135_vm7, %v1494_v47, %v1498_v15  ;;  %v1517_v60 = vor.u32 %v1516_v49, %v1512_v48  ;;  %v1527_v61 = vrot.slane %v1525_v51, 4  ;;  %v1544_v12 = vshll.u32 %v3384_v50, 16  ;;  %v3411_v15 = vld [vmem:[%s4048_s30 + $0x24] sm:$0xe]  ;;  %v3414_v45 = vld [vmem:[%s4048_s30 + $0x30] sm:$0xe] }
  0x63   : > { %v3393_v63 = vcombine.low %v1489_v43, %v1499_v59  ;;  %v1513_v0 = vsel %vm4135_vm7, %v1508_v52, %v1512_v48  ;;  %v1530_v1 = vrot.slane %v1528_v56, 5  ;;  %v1536_v2 = vrot.slane %v1534_v57, 5  ;;  %3761 = vmatmul.mubr.msk.bf16.gmra.mrb[32].mxu1 %vm258_vm1, %v3924_v38  ;;  %v3415_v50 = vld [vmem:[%s4048_s30 + $0x34] sm:$0xf]  ;;  %v3416_v51 = vld [vmem:[%s4048_s30 + $0x38] sm:$0x1] }
  0x64   : > { %v1518_v4 = vrot.slane %v1517_v60, 4  ;;  %v1540_v5 = vrot.slane %v1538_v62, 4  ;;  %v1549_v7 = vshrl.u32 %v3385_v58, 16  ;;  %3764 = vmatprep.mubr.msk.bf16.mxu1 %vm258_vm1, %v3925_v44  ;;  %v1552_v13 = vshll.u32 %v3385_v58, 16  ;;  %v3417_v52 = vld [vmem:[%s4048_s30 + $0x3c] sm:$0xe] }
  0x65   : > { %3778 = vmatprep.mubr.msk.bf16.mxu0 %vm258_vm1, %v3393_v63  ;;  %v1531_v11 = vor.u32 %v1530_v1, %v1527_v61  ;;  %v1558_v16 = vshll.u32 %v3386_v19, 16  ;;  %v1562_v18 = vshrl.u32 %v3386_v19, 16  ;;  %v1546_v22 = vrot.slane %v1544_v12, 5  ;;  %v3418_v59 = vld [vmem:[%s4048_s30 + $0x40] sm:$0xf] }
  0x66   : > { %v1523_v6 = vsel %vm4135_vm7, %v1518_v4, %v1522_v55  ;;  %v1541_v21 = vor.u32 %v1540_v5, %v1536_v2  ;;  %v1551_v24 = vrot.slane %v1549_v7, 4  ;;  %v1554_v29 = vrot.slane %v1552_v13, 5  ;;  %v3419_v60 = vld [vmem:[%s4048_s30 + $0x44] sm:$0x1]  ;;  %v3927_v4 = vld [vmem:[%s4048_s30 + $0x18] sm:$0xff]  }
  0x67   : > { %v3394_v26 = vcombine.low %v1513_v0, %v1523_v6  ;;  %v1532_v28 = vrot.slane %v1531_v11, 4  ;;  %v1560_v30 = vrot.slane %v1558_v16, 5  ;;  %v1564_v33 = vrot.slane %v1562_v18, 4  ;;  %v3420_v0 = vld [vmem:[%s4048_s30 + $0x48] sm:$0xe] }
  0x68   : > { %v1542_v32 = vrot.slane %v1541_v21, 4  ;;  %v1568_v34 = vshll.u32 %v3387_v3, 16  ;;  %v3429_v35 = vrot.slane %v3405_v14, 9  ;;  %v1555_v38 = vor.u32 %v1554_v29, %v1551_v24  ;;  %v3421_v5 = vld [vmem:[%s4048_s30 + $0x4c] sm:$0xf] }
  0x69   : > { %3779 = vmatmul.mubr.msk.bf16.gmra.mrb[32].mxu0 %vm258_vm1, %v3394_v26  ;;  %v1537_v37 = vsel %vm4135_vm7, %v1532_v28, %v1536_v2  ;;  %v1820_v39 = vrot.slane %v3406_v8, 5  ;;  %v1823_v40 = vrot.slane %v3407_v10, 5  ;;  %v1565_v42 = vor.u32 %v1564_v33, %v1560_v30  ;;  %v3422_v12 = vld [vmem:[%s4048_s30 + $0x50] sm:$0x1]  ;;  %v3423_v13 = vld [vmem:[%s4048_s30 + $0x54] sm:$0xe] }
  0x6a   : > { %v1547_v41 = vsel %vm4135_vm7, %v1542_v32, %v1546_v22  ;;  %v1570_v43 = vrot.slane %v1568_v34, 5  ;;  %v3430_v44 = vrot.slane %v3408_v20, 9  ;;  %v1556_v47 = vrot.slane %v1555_v38, 4  ;;  %v3424_v16 = vld [vmem:[%s4048_s30 + $0x58] sm:$0xf] }
  0x6b   : > { %v3395_v46 = vcombine.low %v1537_v37, %v1547_v41  ;;  %v1821_v48 = vsel %vm4129_vm6, %v3429_v35, %v1820_v39  ;;  %v1822_v49 = vrot.slane %v1820_v39, 4  ;;  %3765 = vmatmul.mubr.msk.bf16.gmra.mrb[36].mxu1 %vm258_vm1, %v3926_v27  ;;  %v1566_v55 = vrot.slane %v1565_v42, 4  ;;  %v3425_v28 = vld [vmem:[%s4048_s30 + $0x5c] sm:$0x1]  ;;  %v3427_v32 = vld [vmem:[%s4048_s30 + $0x64] sm:$0xf] }
  0x6c   : > { %v1827_v56 = vrot.slane %v3409_v31, 5  ;;  %v1830_v57 = vrot.slane %v3410_v17, 5  ;;  %v3431_v58 = vrot.slane %v3411_v15, 9  ;;  %v1561_v61 = vsel %vm4135_vm7, %v1556_v47, %v1560_v30  ;;  %v3426_v15 = vld [vmem:[%s4048_s30 + $0x60] sm:$0xe]  ;;  %v3928_v42 = vld [vmem:[%s4048_s30 + $0x24] sm:$0xff]  }
  0x6d   : > { %3782 = vmatprep.mubr.msk.bf16.mxu0 %vm258_vm1, %v3395_v46  ;;  %v1824_v62 = vsel %vm4129_vm6, %v1822_v49, %v1823_v40  ;;  %v1834_v19 = vrot.slane %v3412_v36, 5  ;;  %v1837_v63 = vrot.slane %v3413_v9, 5  ;;  %v1571_v1 = vsel %vm4135_vm7, %v1566_v55, %v1570_v43  ;;  %v3428_v37 = vld [vmem:[%s4048_s30 + $0x68] sm:$0x1]  ;;  %v3489_v41 = vld [vmem:[%s4048_s30 + $0x18] sm:$0xf] }
  0x6e   : > { %v3438_v2 = vcombine.low %v1821_v48, %v1824_v62  ;;  %v1828_v3 = vsel %vm4129_vm6, %v3430_v44, %v1827_v56  ;;  %v1829_v14 = vrot.slane %v1827_v56, 4  ;;  %v3396_v7 = vcombine.low %v1561_v61, %v1571_v1  ;;  %v3490_v47 = vld [vmem:[%s4048_s30 + $0x1c] sm:$0xf]  ;;  %v3929_v48 = vld [vmem:[%s4048_s30 + $0x30] sm:$0xff]  }
  0x6f   : > { %v1835_v8 = vsel %vm4129_vm6, %v3431_v58, %v1834_v19  ;;  %v1836_v10 = vrot.slane %v1834_v19, 4  ;;  %v3432_v11 = vrot.slane %v3414_v45, 9  ;;  %v1841_v20 = vrot.slane %v3415_v50, 5  ;;  %v3492_v19 = vld [vmem:[%s4048_s30 + $0x24] sm:$0xf] }
  0x70   : > { %3788 = vmatprep.mubr.msk.bf16.mxu1 %vm258_vm1, %v3438_v2  ;;  %v1831_v18 = vsel %vm4129_vm6, %v1829_v14, %v1830_v57  ;;  %v1844_v6 = vrot.slane %v3416_v51, 5  ;;  %v3433_v21 = vrot.slane %v3417_v52, 9  ;;  %v1848_v26 = vrot.slane %v3418_v59, 5  ;;  %v3491_v57 = vld [vmem:[%s4048_s30 + $0x20] sm:$0x1] }
  0x71   : > { %3783 = vmatmul.mubr.msk.bf16.gmra.mrb[36].mxu0 %vm258_vm1, %v3396_v7  ;;  %v3439_v22 = vcombine.low %v1828_v3, %v1831_v18  ;;  %v1838_v24 = vsel %vm4129_vm6, %v1836_v10, %v1837_v63  ;;  %v1851_v27 = vrot.slane %v3419_v60, 5  ;;  %v1842_v30 = vsel %vm4129_vm6, %v3432_v11, %v1841_v20  ;;  %v3493_v63 = vld [vmem:[%s4048_s30 + $0x28] sm:$0xf]  ;;  %v3494_v7 = vld [vmem:[%s4048_s30 + $0x2c] sm:$0x1] }
  0x72   : > { %3806 = vmatprep.mubr.msk.bf16.mxu0 %vm258_vm1, %v3927_v4  ;;  %v3440_v29 = vcombine.low %v1835_v8, %v1838_v24  ;;  %v1843_v31 = vrot.slane %v1841_v20, 4  ;;  %v3434_v17 = vrot.slane %v3420_v0, 9  ;;  %v1849_v33 = vsel %vm4129_vm6, %v3433_v21, %v1848_v26  ;;  %v3930_v8 = vld [vmem:[%s4048_s30 + $0x3c] sm:$0xff]  }
  0x73   : > { %v1850_v34 = vrot.slane %v1848_v26, 4  ;;  %v1855_v35 = vrot.slane %v3421_v5, 5  ;;  %v1858_v36 = vrot.slane %v3422_v12, 5  ;;  %3789 = vmatmul.mubr.msk.bf16.vlgmr.msra.gmra.mrb[40].mxu1 %vm258_vm1, %v3439_v22  ;;  %v3435_v39 = vrot.slane %v3423_v13, 9  ;;  %v3531_v22 = vld [vmem:[%s4048_s30 + $0x1c] sm:$0xf] }
  0x74   : > { %v1845_v38 = vsel %vm4129_vm6, %v1843_v31, %v1844_v6  ;;  %v1862_v40 = vrot.slane %v3424_v16, 5  ;;  %v1865_v9 = vrot.slane %v3425_v28, 5  ;;  %3823 = vmatpush3.bf16.msra.mxu1 %v4107_v23  ;;  %3792 = vmatprep.mubr.msk.bf16.mxu1 %vm258_vm1, %v3440_v29  ;;  %v3436_v51 = vrot.slane %v3426_v15, 9  ;;  %v3532_v24 = vld [vmem:[%s4048_s30 + $0x20] sm:$0x1]  ;;  %v3931_v31 = vld [vmem:[%s4048_s30 + $0x48] sm:$0xff]  }
  0x75   : > { %v3441_v43 = vcombine.low %v1842_v30, %v1845_v38  ;;  %v1852_v44 = vsel %vm4129_vm6, %v1850_v34, %v1851_v27  ;;  %v4404_v45 = vsel %vm4129_vm6, %v3434_v17, %v1855_v35  ;;  %v1857_v46 = vrot.slane %v1855_v35, 4  ;;  %v3495_v30 = vld [vmem:[%s4048_s30 + $0x30] sm:$0xf]  ;;  %v3496_v38 = vld [vmem:[%s4048_s30 + $0x34] sm:$0xf] }
  0x76   : > { %v3442_v49 = vcombine.low %v1849_v33, %v1852_v44  ;;  %v4410_v23 = vsel %vm4129_vm6, %v3435_v39, %v1862_v40  ;;  %v1864_v50 = vrot.slane %v1862_v40, 4  ;;  %v1869_v55 = vrot.slane %v3427_v32, 5 }
  0x77   : > { %v4414_v52 = vsel %vm4129_vm6, %v1857_v46, %v1858_v36  ;;  %v1872_v56 = vrot.slane %v3428_v37, 5  ;;  %v2331_v58 = vshrl.u32 %v3489_v41, 16  ;;  %v2334_v61 = vshll.u32 %v3489_v41, 16 }
  0x78   : > { %v3443_v59 = vcombine.low %v4404_v45, %v4414_v52  ;;  %v4421_v60 = vsel %vm4129_vm6, %v1864_v50, %v1865_v9  ;;  %v2340_v62 = vshll.u32 %v3490_v47, 16  ;;  %v4430_v1 = vsel %vm4129_vm6, %v3436_v51, %v1869_v55 }
  0x79   : > { %3807 = vmatmul.mubr.msk.bf16.vlgmr.msra.gmra.mrb[40].mxu0 %vm258_vm1, %v3928_v42  ;;  %v3444_v0 = vcombine.low %v4410_v23, %v4421_v60  ;;  %v1871_v2 = vrot.slane %v1869_v55, 4  ;;  %v2333_v3 = vrot.slane %v2331_v58, 4  ;;  %v2336_v14 = vrot.slane %v2334_v61, 5 }
  0x7a   : > { %3841 = vmatpush3.bf16.msra.mxu0 %v4113_v25  ;;  %3810 = vmatprep.mubr.msk.bf16.mxu0 %vm258_vm1, %v3929_v48  ;;  %v2342_v4 = vrot.slane %v2340_v62, 5  ;;  %v2344_v5 = vshrl.u32 %v3490_v47, 16  ;;  %v2350_v12 = vshll.u32 %v3491_v57, 16  ;;  %v2355_v11 = vshrl.u32 %v3492_v19, 16  ;;  %v3530_v25 = vld [vmem:[%s4048_s30 + $0x18] sm:$0xe] }
  0x7b   : > { %v4438_v10 = vsel %vm4129_vm6, %v1871_v2, %v1872_v56  ;;  %v2358_v13 = vshll.u32 %v3492_v19, 16  ;;  %v2364_v16 = vshll.u32 %v3493_v63, 16  ;;  %3793 = vmatmul.mubr.msk.bf16.gmra.mrb[44].mxu1 %vm258_vm1, %v3441_v43  ;;  %v2337_v20 = vor.u32 %v2336_v14, %v2333_v3  ;;  %v3497_v47 = vld [vmem:[%s4048_s30 + $0x38] sm:$0x1]  ;;  %v3533_v48 = vld [vmem:[%s4048_s30 + $0x24] sm:$0xe] }
  0x7c   : > { %v3445_v18 = vcombine.low %v4430_v1, %v4438_v10  ;;  %v2346_v6 = vrot.slane %v2344_v5, 4  ;;  %v2352_v21 = vrot.slane %v2350_v12, 5  ;;  %3796 = vmatprep.mubr.msk.bf16.mxu1 %vm258_vm1, %v3442_v49  ;;  %v2357_v26 = vrot.slane %v2355_v11, 4  ;;  %v3534_v56 = vld [vmem:[%s4048_s30 + $0x28] sm:$0xf]  ;;  %v3932_v5 = vld [vmem:[%s4048_s30 + $0x54] sm:$0xff]  }
  0x7d   : > { %v2360_v27 = vrot.slane %v2358_v13, 5  ;;  %v2366_v28 = vrot.slane %v2364_v16, 5  ;;  %v2368_v29 = vshrl.u32 %v3493_v63, 16  ;;  %v2338_v17 = vrot.slane %v2337_v20, 4  ;;  %v3535_v19 = vld [vmem:[%s4048_s30 + $0x2c] sm:$0x1] }
  0x7e   : > { %v2347_v15 = vor.u32 %v2346_v6, %v2342_v4  ;;  %v2374_v32 = vshll.u32 %v3494_v7, 16  ;;  %v3554_v33 = vrot.slane %v3530_v25, 9  ;;  %v2770_v36 = vrot.slane %v3531_v22, 5  ;;  %v3499_v7 = vld [vmem:[%s4048_s30 + $0x40] sm:$0xf] }
  0x7f   : > { %v2361_v34 = vor.u32 %v2360_v27, %v2357_v26  ;;  %v2370_v35 = vrot.slane %v2368_v29, 4  ;;  %v2773_v37 = vrot.slane %v3532_v24, 5  ;;  %v2343_v39 = vsel %vm4135_vm7, %v2338_v17, %v2342_v4  ;;  %v3498_v4 = vld [vmem:[%s4048_s30 + $0x3c] sm:$0xf]  ;;  %v3500_v20 = vld [vmem:[%s4048_s30 + $0x44] sm:$0x1] }
  0x80   : > { %v2348_v40 = vrot.slane %v2347_v15, 4  ;;  %v2376_v9 = vrot.slane %v2374_v32, 5  ;;  %v2379_v41 = vshrl.u32 %v3495_v30, 16  ;;  %v4455_v44 = vsel %vm4129_vm6, %v3554_v33, %v2770_v36  ;;  %v3538_v15 = vld [vmem:[%s4048_s30 + $0x38] sm:$0x1] }
  0x81   : > { %3811 = vmatmul.mubr.msk.bf16.gmra.mrb[44].mxu0 %vm258_vm1, %v3930_v8  ;;  %v2362_v42 = vrot.slane %v2361_v34, 4  ;;  %v2371_v43 = vor.u32 %v2370_v35, %v2366_v28  ;;  %v2772_v46 = vrot.slane %v2770_v36, 4  ;;  %v2382_v51 = vshll.u32 %v3495_v30, 16  ;;  %v3933_v8 = vld [vmem:[%s4048_s30 + $0x60] sm:$0xff]   ;;  %v3501_v36 = vld [vmem:[%s4048_s30 + $0x48] sm:$0xf] }
  0x82   : > { %3814 = vmatprep.mubr.msk.bf16.mxu0 %vm258_vm1, %v3931_v31  ;;  %v2353_v49 = vsel %vm4135_vm7, %v2348_v40, %v2352_v21  ;;  %v2381_v50 = vrot.slane %v2379_v41, 4  ;;  %v2388_v55 = vshll.u32 %v3496_v38, 16  ;;  %v2392_v14 = vshrl.u32 %v3496_v38, 16  ;;  %v3536_v21 = vld [vmem:[%s4048_s30 + $0x30] sm:$0xe] }
  0x83   : > { %v3514_v57 = vcombine.low %v2343_v39, %v2353_v49  ;;  %v2367_v58 = vsel %vm4135_vm7, %v2362_v42, %v2366_v28  ;;  %v2372_v61 = vrot.slane %v2371_v43, 4  ;;  %v4467_v62 = vsel %vm4129_vm6, %v2772_v46, %v2773_v37  ;;  %3797 = vmatmul.mubr.msk.bf16.gmra.mrb[48].mxu1 %vm258_vm1, %v3443_v59  ;;  %v3537_v28 = vld [vmem:[%s4048_s30 + $0x34] sm:$0xf] }
  0x84   : > { %v3563_v63 = vcombine.low %v4455_v44, %v4467_v62  ;;  %v2384_v2 = vrot.slane %v2382_v51, 5  ;;  %v2390_v3 = vrot.slane %v2388_v55, 5  ;;  %3800 = vmatprep.mubr.msk.bf16.mxu1 %vm258_vm1, %v3444_v0  ;;  %v2398_v52 = vshll.u32 %v3497_v47, 16  ;;  %v3934_v47 = vld [vmem:[%s4048_s30 + $0x6c] sm:$0xff]  }
  0x85   : > { %v2377_v45 = vsel %vm4135_vm7, %v2372_v61, %v2376_v9  ;;  %v3555_v59 = vrot.slane %v3533_v48, 9  ;;  %v2777_v12 = vrot.slane %v3534_v56, 5  ;;  %v2394_v16 = vrot.slane %v2392_v14, 4  ;;  %v3502_v9 = vld [vmem:[%s4048_s30 + $0x4c] sm:$0xf] }
  0x86   : > { %v4486_v11 = vcombine.low %v2367_v58, %v2377_v45  ;;  %v2385_v13 = vor.u32 %v2384_v2, %v2381_v50  ;;  %v2780_v25 = vrot.slane %v3535_v19, 5  ;;  %v2400_v23 = vrot.slane %v2398_v52, 5  ;;  %v3503_v50 = vld [vmem:[%s4048_s30 + $0x50] sm:$0x1]  ;;  %v3539_v58 = vld [vmem:[%s4048_s30 + $0x3c] sm:$0xe] }
  0x87   : > { %v4491_v60 = vsel %vm4129_vm6, %v3555_v59, %v2777_v12  ;;  %v2779_v0 = vrot.slane %v2777_v12, 4  ;;  %v2403_v6 = vshrl.u32 %v3498_v4, 16  ;;  %v2395_v24 = vor.u32 %v2394_v16, %v2390_v3  ;;  %v3541_v52 = vld [vmem:[%s4048_s30 + $0x44] sm:$0x1]  ;;  %v3504_v59 = vld [vmem:[%s4048_s30 + $0x54] sm:$0xf] }
  0x88   : > { %v2386_v22 = vrot.slane %v2385_v13, 4  ;;  %v2406_v26 = vshll.u32 %v3498_v4, 16  ;;  %v2412_v27 = vshll.u32 %v3499_v7, 16  ;;  %v2416_v31 = vshrl.u32 %v3499_v7, 16  ;;  %v3505_v16 = vld [vmem:[%s4048_s30 + $0x58] sm:$0xf] }
  0x89   : > { %3815 = vmatmul.mubr.msk.bf16.gmra.mrb[48].mxu0 %vm258_vm1, %v3932_v5  ;;  %v4498_v29 = vsel %vm4129_vm6, %v2779_v0, %v2780_v25  ;;  %v2405_v30 = vrot.slane %v2403_v6, 4  ;;  %v2422_v17 = vshll.u32 %v3500_v20, 16  ;;  %v2396_v33 = vrot.slane %v2395_v24, 4  ;;  %v3506_v6 = vld [vmem:[%s4048_s30 + $0x5c] sm:$0x1] }
  0x8a   : > { %3818 = vmatprep.mubr.msk.bf16.mxu0 %vm258_vm1, %v3933_v8  ;;  %v2391_v32 = vsel %vm4135_vm7, %v2386_v22, %v2390_v3  ;;  %v3564_v34 = vcombine.low %v4491_v60, %v4498_v29  ;;  %v2408_v35 = vrot.slane %v2406_v26, 5  ;;  %v2414_v37 = vrot.slane %v2412_v27, 5  ;;  %v3540_v3 = vld [vmem:[%s4048_s30 + $0x40] sm:$0xf]  ;;  %v3542_v27 = vld [vmem:[%s4048_s30 + $0x48] sm:$0xe] }
  0x8b   : > { %v2418_v38 = vrot.slane %v2416_v31, 4  ;;  %v2424_v39 = vrot.slane %v2422_v17, 5  ;;  %v3556_v40 = vrot.slane %v3536_v21, 9  ;;  %3801 = vmatmul.mubr.msk.bf16.gmra.mrb[52].mxu1 %vm258_vm1, %v3445_v18  ;;  %v2401_v41 = vsel %vm4135_vm7, %v2396_v33, %v2400_v23  ;;  %v3544_v33 = vld [vmem:[%s4048_s30 + $0x50] sm:$0x1] }
  0x8c   : > { %v2409_v42 = vor.u32 %v2408_v35, %v2405_v30  ;;  %v2784_v43 = vrot.slane %v3537_v28, 5  ;;  %v2787_v46 = vrot.slane %v3538_v15, 5  ;;  %3824 = vmatprep.mubr.msk.bf16.mxu1 %vm258_vm1, %v3514_v57  ;;  %v3516_v48 = vcombine.low %v2391_v32, %v2401_v41  ;;  %v3543_v30 = vld [vmem:[%s4048_s30 + $0x4c] sm:$0xf] }
  0x8d   : > { %v2419_v49 = vor.u32 %v2418_v38, %v2414_v37  ;;  %v2427_v51 = vshrl.u32 %v3501_v36, 16  ;;  %v2430_v55 = vshll.u32 %v3501_v36, 16  ;;  %v2436_v56 = vshll.u32 %v3502_v9, 16  ;;  %v3507_v38 = vld [vmem:[%s4048_s30 + $0x60] sm:$0xf] }
  0x8e   : > { %v2410_v1 = vrot.slane %v2409_v42, 4  ;;  %v4519_v10 = vsel %vm4129_vm6, %v3556_v40, %v2784_v43  ;;  %v2786_v18 = vrot.slane %v2784_v43, 4  ;;  %v2440_v57 = vshrl.u32 %v3502_v9, 16  ;;  %v3508_v42 = vld [vmem:[%s4048_s30 + $0x64] sm:$0xf] }
  0x8f   : > { %v2420_v61 = vrot.slane %v2419_v49, 4  ;;  %v2429_v19 = vrot.slane %v2427_v51, 4  ;;  %v2432_v2 = vrot.slane %v2430_v55, 5  ;;  %v2438_v5 = vrot.slane %v2436_v56, 5  ;;  %v3509_v51 = vld [vmem:[%s4048_s30 + $0x68] sm:$0x1] }
  0x90   : > { %v2415_v14 = vsel %vm4135_vm7, %v2410_v1, %v2414_v37  ;;  %v2788_v4 = vsel %vm4129_vm6, %v2786_v18, %v2787_v46  ;;  %v2446_v45 = vshll.u32 %v3503_v50, 16  ;;  %v2442_v13 = vrot.slane %v2440_v57, 4 }
  0x91   : > { %3819 = vmatmul.mubr.msk.bf16.gmra.mrb[52].mxu0 %vm258_vm1, %v3934_v47  ;;  %v2425_v12 = vsel %vm4135_vm7, %v2420_v61, %v2424_v39  ;;  %v3565_v7 = vcombine.low %v4519_v10, %v2788_v4  ;;  %v2433_v8 = vor.u32 %v2432_v2, %v2429_v19  ;;  %v3557_v23 = vrot.slane %v3539_v58, 9  ;;  %v3545_v61 = vld [vmem:[%s4048_s30 + $0x54] sm:$0xe]  ;;  %v3546_v2 = vld [vmem:[%s4048_s30 + $0x58] sm:$0xf] }
  0x92   : > { %3842 = vmatprep.mubr.msk.bf16.mxu0 %vm258_vm1, %v3563_v63  ;;  %v3517_v25 = vcombine.low %v2415_v14, %v2425_v12  ;;  %v2448_v20 = vrot.slane %v2446_v45, 5  ;;  %v2791_v0 = vrot.slane %v3540_v3, 5  ;;  %v2443_v22 = vor.u32 %v2442_v13, %v2438_v5  ;;  %v3510_v45 = vld [vmem:[%s4048_s30 + $0x6c] sm:$0xf]  ;;  %v3512_v13 = vld [vmem:[%s4048_s30 + $0x74] sm:$0x1] }
  0x93   : > { %v2434_v21 = vrot.slane %v2433_v8, 4  ;;  %v2794_v24 = vrot.slane %v3541_v52, 5  ;;  %v2451_v26 = vshrl.u32 %v3504_v59, 16  ;;  %3825 = vmatmul.mubr.msk.bf16.vlgmr.msra.gmra.mrb[56].mxu1 %vm258_vm1, %v4486_v11  ;;  %v2454_v63 = vshll.u32 %v3504_v59, 16  ;;  %v3511_v8 = vld [vmem:[%s4048_s30 + $0x70] sm:$0xf] }
  0x94   : > { %v4544_v44 = vsel %vm4129_vm6, %v3557_v23, %v2791_v0  ;;  %v2793_v62 = vrot.slane %v2791_v0, 4  ;;  %v2460_v28 = vshll.u32 %v3505_v16, 16  ;;  %3828 = vmatprep.mubr.msk.bf16.mxu1 %vm258_vm1, %v3516_v48  ;;  %v2444_v17 = vrot.slane %v2443_v22, 4  ;;  %v3548_v0 = vld [vmem:[%s4048_s30 + $0x60] sm:$0xe] }
  0x95   : > { %v2439_v31 = vsel %vm4135_vm7, %v2434_v21, %v2438_v5  ;;  %v2453_v15 = vrot.slane %v2451_v26, 4  ;;  %v2464_v32 = vshrl.u32 %v3505_v16, 16  ;;  %v2456_v35 = vrot.slane %v2454_v63, 5  ;;  %v3547_v5 = vld [vmem:[%s4048_s30 + $0x5c] sm:$0x1] }
  0x96   : > { %v2795_v11 = vsel %vm4129_vm6, %v2793_v62, %v2794_v24  ;;  %v2462_v36 = vrot.slane %v2460_v28, 5  ;;  %v2470_v37 = vshll.u32 %v3506_v6, 16  ;;  %v2449_v39 = vsel %vm4135_vm7, %v2444_v17, %v2448_v20  ;;  %v3549_v26 = vld [vmem:[%s4048_s30 + $0x64] sm:$0xf]  ;;  %v3550_v28 = vld [vmem:[%s4048_s30 + $0x68] sm:$0x1] }
  0x97   : > { %v3566_v40 = vcombine.low %v4544_v44, %v2795_v11  ;;  %v2466_v9 = vrot.slane %v2464_v32, 4  ;;  %v3558_v41 = vrot.slane %v3542_v27, 9  ;;  %v3518_v43 = vcombine.low %v2439_v31, %v2449_v39  ;;  %v3551_v32 = vld [vmem:[%s4048_s30 + $0x6c] sm:$0xe] }
  0x98   : > { %v2457_v46 = vor.u32 %v2456_v35, %v2453_v15  ;;  %v2472_v47 = vrot.slane %v2470_v37, 5  ;;  %v2798_v48 = vrot.slane %v3543_v30, 5  ;;  %v2801_v50 = vrot.slane %v3544_v33, 5  ;;  %v3552_v37 = vld [vmem:[%s4048_s30 + $0x70] sm:$0xf] }
  0x99   : > { %3843 = vmatmul.mubr.msk.bf16.vlgmr.msra.gmra.mrb[56].mxu0 %vm258_vm1, %v3564_v34  ;;  %v2467_v49 = vor.u32 %v2466_v9, %v2462_v36  ;;  %v2475_v55 = vshrl.u32 %v3507_v38, 16  ;;  %v2478_v1 = vshll.u32 %v3507_v38, 16  ;;  %v2484_v58 = vshll.u32 %v3508_v42, 16 }
  0x9a   : > { %3846 = vmatprep.mubr.msk.bf16.mxu0 %vm258_vm1, %v3565_v7  ;;  %v2458_v10 = vrot.slane %v2457_v46, 4  ;;  %v2799_v18 = vsel %vm4129_vm6, %v3558_v41, %v2798_v48  ;;  %v2800_v56 = vrot.slane %v2798_v48, 4  ;;  %v2488_v19 = vshrl.u32 %v3508_v42, 16  ;;  %v3553_v41 = vld [vmem:[%s4048_s30 + $0x74] sm:$0x1]  ;;  %s4764_s30 = scalar_lea.vmem %s4842_s3, %s3267_s13 }
  0x9b   : > { %v2468_v60 = vrot.slane %v2467_v49, 4  ;;  %v2477_v29 = vrot.slane %v2475_v55, 4  ;;  %v2480_v34 = vrot.slane %v2478_v1, 5  ;;  %3829 = vmatmul.mubr.msk.bf16.gmra.mrb[60].mxu1 %vm258_vm1, %v3517_v25  ;;  %v2486_v14 = vrot.slane %v2484_v58, 5 }
  0x9c   : > { %v2463_v57 = vsel %vm4135_vm7, %v2458_v10, %v2462_v36  ;;  %v2802_v3 = vsel %vm4129_vm6, %v2800_v56, %v2801_v50  ;;  %v2494_v4 = vshll.u32 %v3509_v51, 16  ;;  %3832 = vmatprep.mubr.msk.bf16.mxu1 %vm258_vm1, %v3518_v43  ;;  %v2490_v7 = vrot.slane %v2488_v19, 4 }
  0x9d   : > { %v2473_v52 = vsel %vm4135_vm7, %v2468_v60, %v2472_v47  ;;  %v3567_v59 = vcombine.low %v2799_v18, %v2802_v3  ;;  %v2481_v12 = vor.u32 %v2480_v34, %v2477_v29  ;;  %v3559_v20 = vrot.slane %v3545_v61, 9 }
  0x9e   : > { %v3519_v16 = vcombine.low %v2463_v57, %v2473_v52  ;;  %v2496_v25 = vrot.slane %v2494_v4, 5  ;;  %v2805_v23 = vrot.slane %v3546_v2, 5  ;;  %v2491_v21 = vor.u32 %v2490_v7, %v2486_v14 }
  0x9f   : > { %v2482_v6 = vrot.slane %v2481_v12, 4  ;;  %v2808_v22 = vrot.slane %v3547_v5, 5  ;;  %v2499_v24 = vshrl.u32 %v3510_v45, 16  ;;  %v2502_v62 = vshll.u32 %v3510_v45, 16 }
  0xa0   : > { %v2806_v27 = vsel %vm4129_vm6, %v3559_v20, %v2805_v23  ;;  %v2807_v44 = vrot.slane %v2805_v23, 4  ;;  %v2508_v63 = vshll.u32 %v3511_v8, 16  ;;  %v2492_v31 = vrot.slane %v2491_v21, 4 }
  0xa1   : > { %3847 = vmatmul.mubr.msk.bf16.gmra.mrb[60].mxu0 %vm258_vm1, %v3566_v40  ;;  %v2487_v30 = vsel %vm4135_vm7, %v2482_v6, %v2486_v14  ;;  %v2501_v17 = vrot.slane %v2499_v24, 4  ;;  %v2512_v15 = vshrl.u32 %v3511_v8, 16  ;;  %v2504_v11 = vrot.slane %v2502_v62, 5 }
  0xa2   : > { %3850 = vmatprep.mubr.msk.bf16.mxu0 %vm258_vm1, %v3567_v59  ;;  %v2809_v33 = vsel %vm4129_vm6, %v2807_v44, %v2808_v22  ;;  %v2510_v35 = vrot.slane %v2508_v63, 5  ;;  %v2518_v36 = vshll.u32 %v3512_v13, 16  ;;  %v2497_v38 = vsel %vm4135_vm7, %v2492_v31, %v2496_v25 }
  0xa3   : > { %v3568_v39 = vcombine.low %v2806_v27, %v2809_v33  ;;  %v2514_v40 = vrot.slane %v2512_v15, 4  ;;  %v3560_v9 = vrot.slane %v3548_v0, 9  ;;  %3833 = vmatmul.mubr.msk.bf16.gmra.mrb[64].mxu1 %vm258_vm1, %v3519_v16  ;;  %v3520_v42 = vcombine.low %v2487_v30, %v2497_v38 }
  0xa4   : > { %v2505_v43 = vor.u32 %v2504_v11, %v2501_v17  ;;  %v2520_v46 = vrot.slane %v2518_v36, 5  ;;  %v2812_v47 = vrot.slane %v3549_v26, 5  ;;  %v2815_v49 = vrot.slane %v3550_v28, 5 }
  0xa5   : > { %v2515_v48 = vor.u32 %v2514_v40, %v2510_v35  ;;  %v3561_v50 = vrot.slane %v3551_v32, 9  ;;  %v2819_v51 = vrot.slane %v3552_v37, 5  ;;  %3836 = vmatprep.mubr.msk.bf16.mxu1 %vm258_vm1, %v3520_v42  ;;  %v2822_v18 = vrot.slane %v3553_v41, 5 }
  0xa6   : > { %v2506_v55 = vrot.slane %v2505_v43, 4  ;;  %v2813_v1 = vsel %vm4129_vm6, %v3560_v9, %v2812_v47  ;;  %v2814_v10 = vrot.slane %v2812_v47, 4 }
  0xa7   : > { %v2516_v56 = vrot.slane %v2515_v48, 4  ;;  %v2821_v58 = vrot.slane %v2819_v51, 4  ;;  %v2820_v2 = vsel %vm4129_vm6, %v3561_v50, %v2819_v51 }
  0xa8   : > { %v2511_v61 = vsel %vm4135_vm7, %v2506_v55, %v2510_v35  ;;  %v2816_v60 = vsel %vm4129_vm6, %v2814_v10, %v2815_v49 }
  0xa9   : > { %3851 = vmatmul.mubr.msk.bf16.gmra.mrb[64].mxu0 %vm258_vm1, %v3568_v39  ;;  %v2521_v29 = vsel %vm4135_vm7, %v2516_v56, %v2520_v46  ;;  %v3569_v34 = vcombine.low %v2813_v1, %v2816_v60  ;;  %v2823_v57 = vsel %vm4129_vm6, %v2821_v58, %v2822_v18 }
  0xaa   : > { %v3521_v19 = vcombine.low %v2511_v61, %v2521_v29  ;;  %v3570_v3 = vcombine.low %v2820_v2, %v2823_v57 }
  0xab   : > { %3854 = vmatprep.mubr.msk.bf16.mxu0 %vm258_vm1, %v3569_v34 }
  0xac   : > { %3837 = vmatmul.mubr.msk.bf16.gmra.mrb[68].mxu1 %vm258_vm1, %v3521_v19 }
  0xb1   : > { %3855 = vmatmul.mubr.msk.bf16.gmra.mrb[68].mxu0 %vm258_vm1, %v3570_v3 }
  0xea   : > { %v3708_v14 = vpop.f32.mrb[0].mxu1 }
  0xeb   : > { %394 = vst.msk [vmem:[#allocation2 + $0x50] sm:$0xff] %vm258_vm1, %v3708_v14  ;;  %v353_v54 = vpop.f32.mrb[1].mxu1  ;;  %v3700_v5 = vpop.f32.mrb[0].mxu0 }
  0xec   : > { %392 = vst.msk [vmem:[#allocation2 + $0x40] sm:$0xff] %vm258_vm1, %v353_v54  ;;  %v3709_v4 = vpop.f32.mrb[2].mxu1  ;;  %386 = vst.msk [vmem:[#allocation2 + $0x10] sm:$0xff] %vm258_vm1, %v3700_v5  ;;  %v321_v53 = vpop.f32.mrb[1].mxu0 }
  0xed   : > { %395 = vst.msk [vmem:[#allocation2 + $0x58] sm:$0xff] %vm258_vm1, %v3709_v4  ;;  %v356_v45 = vpop.f32.mrb[3].mxu1  ;;  %384 = vst.msk [vmem:[#allocation2] sm:$0xff] %vm258_vm1, %v321_v53  ;;  %v3701_v52 = vpop.f32.mrb[2].mxu0 }
  0xee   : > { %393 = vst.msk [vmem:[#allocation2 + $0x48] sm:$0xff] %vm258_vm1, %v356_v45  ;;  %387 = vst.msk [vmem:[#allocation2 + $0x18] sm:$0xff] %vm258_vm1, %v3701_v52  ;;  %v324_v59 = vpop.f32.mrb[3].mxu0 }
  0xef   : > { %385 = vst.msk [vmem:[#allocation2 + $0x8] sm:$0xff] %vm258_vm1, %v324_v59 }
  0xf2   : > { %v3712_v12 = vpop.f32.mrb[4].mxu1  ;;  %v779_v19 = vld [vmem:[#allocation2 + $0x50] sm:$0xff] }
  0xf3   : > { %398 = vst.msk [vmem:[#allocation2 + $0x70] sm:$0xff] %vm258_vm1, %v3712_v12  ;;  %v369_v7 = vpop.f32.mrb[5].mxu1  ;;  %v3704_v13 = vpop.f32.mrb[4].mxu0  ;;  %v771_v0 = vld [vmem:[#allocation2 + $0x10] sm:$0xff]  ;;  %v777_v54 = vld [vmem:[#allocation2 + $0x40] sm:$0xff] }
  0xf4   : > { %396 = vst.msk [vmem:[#allocation2 + $0x60] sm:$0xff] %vm258_vm1, %v369_v7  ;;  %v3713_v8 = vpop.f32.mrb[6].mxu1  ;;  %390 = vst.msk [vmem:[#allocation2 + $0x30] sm:$0xff] %vm258_vm1, %v3704_v13  ;;  %v337_v25 = vpop.f32.mrb[5].mxu0  ;;  %v769_v6 = vld [vmem:[#allocation2] sm:$0xff]  ;;  %v780_v52 = vld [vmem:[#allocation2 + $0x58] sm:$0xff] }
  0xf5   : > { %399 = vst.msk [vmem:[#allocation2 + $0x78] sm:$0xff] %vm258_vm1, %v3713_v8  ;;  %v372_v16 = vpop.f32.mrb[7].mxu1  ;;  %388 = vst.msk [vmem:[#allocation2 + $0x20] sm:$0xff] %vm258_vm1, %v337_v25  ;;  %v3705_v20 = vpop.f32.mrb[6].mxu0  ;;  %v772_v22 = vld [vmem:[#allocation2 + $0x18] sm:$0xff]  ;;  %v778_v8 = vld [vmem:[#allocation2 + $0x48] sm:$0xff] }
  0xf6   : > { %397 = vst.msk [vmem:[#allocation2 + $0x68] sm:$0xff] %vm258_vm1, %v372_v16  ;;  %391 = vst.msk [vmem:[#allocation2 + $0x38] sm:$0xff] %vm258_vm1, %v3705_v20  ;;  %v340_v23 = vpop.f32.mrb[7].mxu0  ;;  %v770_v27 = vld [vmem:[#allocation2 + $0x8] sm:$0xff] }
  0xf7   : > { %389 = vst.msk [vmem:[#allocation2 + $0x28] sm:$0xff] %vm258_vm1, %v340_v23 }
  0xfa   : > { %v3718_v21 = vpop.f32.mrb[8].mxu1 }
  0xfb   : > { %v787_v24 = vadd.f32 %v3718_v21, %v771_v0  ;;  %v706_v26 = vpop.f32.mrb[9].mxu1  ;;  %v775_v11 = vld [vmem:[#allocation2 + $0x30] sm:$0xff] }
  0xfc   : > { %v785_v44 = vadd.f32 %v769_v6, %v706_v26  ;;  %v3719_v62 = vpop.f32.mrb[10].mxu1  ;;  %v773_v37 = vld [vmem:[#allocation2 + $0x20] sm:$0xff] }
  0xfd   : > { %803 = vst.msk [vmem:[#allocation2 + $0x10] sm:$0xff] %vm258_vm1, %v787_v24  ;;  %v788_v63 = vadd.f32 %v3719_v62, %v772_v22  ;;  %v709_v28 = vpop.f32.mrb[11].mxu1  ;;  %v776_v9 = vld [vmem:[#allocation2 + $0x38] sm:$0xff]  ;;  %v783_v24 = vld [vmem:[#allocation2 + $0x70] sm:$0xff] }
  0xfe   : > { %801 = vst.msk [vmem:[#allocation2] sm:$0xff] %vm258_vm1, %v785_v44  ;;  %v786_v30 = vadd.f32 %v770_v27, %v709_v28  ;;  %v774_v47 = vld [vmem:[#allocation2 + $0x28] sm:$0xff] }
  0xff   : > { %v3736_v31 = vpop.f32.mrb[8].mxu0  ;;  %804 = vst.msk [vmem:[#allocation2 + $0x18] sm:$0xff] %vm258_vm1, %v788_v63  ;;  %v781_v63 = vld [vmem:[#allocation2 + $0x60] sm:$0xff] }
 0x100   : > { %v1011_v17 = vpop.f32.mrb[9].mxu0  ;;  %802 = vst.msk [vmem:[#allocation2 + $0x8] sm:$0xff] %vm258_vm1, %v786_v30 }
 0x101   : > { %v3737_v15 = vpop.f32.mrb[10].mxu0 }
 0x102   : > { %v1014_v32 = vpop.f32.mrb[11].mxu0 }
 0x104   : > { %v1076_v33 = vld [vmem:[#allocation2 + $0x10] sm:$0xff] }
 0x105   : > { %v1092_v35 = vadd.f32 %v3736_v31, %v1076_v33  ;;  %v1074_v36 = vld [vmem:[#allocation2] sm:$0xff] }
 0x106   : > { %v1090_v39 = vadd.f32 %v1074_v36, %v1011_v17  ;;  %v1077_v40 = vld [vmem:[#allocation2 + $0x18] sm:$0xff] }
 0x107   : > { %v3722_v38 = vpop.f32.mrb[12].mxu1  ;;  %1108 = vst.msk [vmem:[#allocation2 + $0x10] sm:$0xff] %vm258_vm1, %v1092_v35  ;;  %v1093_v43 = vadd.f32 %v3737_v15, %v1077_v40  ;;  %v1075_v46 = vld [vmem:[#allocation2 + $0x8] sm:$0xff] }
 0x108   : > { %v791_v41 = vadd.f32 %v3722_v38, %v775_v11  ;;  %v722_v42 = vpop.f32.mrb[13].mxu1  ;;  %1106 = vst.msk [vmem:[#allocation2] sm:$0xff] %vm258_vm1, %v1090_v39  ;;  %v1091_v50 = vadd.f32 %v1075_v46, %v1014_v32  ;;  %v784_v32 = vld [vmem:[#allocation2 + $0x78] sm:$0xff] }
 0x109   : > { %v789_v48 = vadd.f32 %v773_v37, %v722_v42  ;;  %v3723_v49 = vpop.f32.mrb[14].mxu1  ;;  %1109 = vst.msk [vmem:[#allocation2 + $0x18] sm:$0xff] %vm258_vm1, %v1093_v43  ;;  %v782_v37 = vld [vmem:[#allocation2 + $0x68] sm:$0xff] }
 0x10a   : > { %807 = vst.msk [vmem:[#allocation2 + $0x30] sm:$0xff] %vm258_vm1, %v791_v41  ;;  %v792_v51 = vadd.f32 %v3723_v49, %v776_v9  ;;  %v725_v55 = vpop.f32.mrb[15].mxu1  ;;  %1107 = vst.msk [vmem:[#allocation2 + $0x8] sm:$0xff] %vm258_vm1, %v1091_v50 }
 0x10b   : > { %805 = vst.msk [vmem:[#allocation2 + $0x20] sm:$0xff] %vm258_vm1, %v789_v48  ;;  %v790_v1 = vadd.f32 %v774_v47, %v725_v55 }
 0x10c   : > { %808 = vst.msk [vmem:[#allocation2 + $0x38] sm:$0xff] %vm258_vm1, %v792_v51  ;;  %v3740_v10 = vpop.f32.mrb[12].mxu0 }
 0x10d   : > { %806 = vst.msk [vmem:[#allocation2 + $0x28] sm:$0xff] %vm258_vm1, %v790_v1  ;;  %v1027_v18 = vpop.f32.mrb[13].mxu0 }
 0x10e   : > { %v3741_v56 = vpop.f32.mrb[14].mxu0  ;;  %v1310_v41 = vld [vmem:[#allocation2 + $0x10] sm:$0xff] }
 0x10f   : > { %v1030_v58 = vpop.f32.mrb[15].mxu0  ;;  %v1308_v46 = vld [vmem:[#allocation2] sm:$0xff] }
 0x110   : > { %v1311_v50 = vld [vmem:[#allocation2 + $0x18] sm:$0xff] }
 0x111   : > { %v1080_v61 = vld [vmem:[#allocation2 + $0x30] sm:$0xff] }
 0x112   : > { %v1096_v60 = vadd.f32 %v3740_v10, %v1080_v61  ;;  %v1078_v29 = vld [vmem:[#allocation2 + $0x20] sm:$0xff]  ;;  %v3726_v34 = vpop.f32.mrb[16].mxu1 }
 0x113   : > { %v1094_v2 = vadd.f32 %v1078_v29, %v1027_v18  ;;  %v1081_v57 = vld [vmem:[#allocation2 + $0x38] sm:$0xff]  ;;  %v795_v3 = vadd.f32 %v3726_v34, %v779_v19  ;;  %v738_v14 = vpop.f32.mrb[17].mxu1  ;;  %v1309_v18 = vld [vmem:[#allocation2 + $0x8] sm:$0xff] }
 0x114   : > { %1112 = vst.msk [vmem:[#allocation2 + $0x30] sm:$0xff] %vm258_vm1, %v1096_v60  ;;  %v1097_v4 = vadd.f32 %v3741_v56, %v1081_v57  ;;  %v1079_v5 = vld [vmem:[#allocation2 + $0x28] sm:$0xff]  ;;  %v793_v45 = vadd.f32 %v777_v54, %v738_v14  ;;  %v3727_v53 = vpop.f32.mrb[18].mxu1 }
 0x115   : > { %1110 = vst.msk [vmem:[#allocation2 + $0x20] sm:$0xff] %vm258_vm1, %v1094_v2  ;;  %v1095_v59 = vadd.f32 %v1079_v5, %v1030_v58  ;;  %811 = vst.msk [vmem:[#allocation2 + $0x50] sm:$0xff] %vm258_vm1, %v795_v3  ;;  %v796_v12 = vadd.f32 %v3727_v53, %v780_v52  ;;  %v741_v7 = vpop.f32.mrb[19].mxu1 }
 0x116   : > { %1113 = vst.msk [vmem:[#allocation2 + $0x38] sm:$0xff] %vm258_vm1, %v1097_v4  ;;  %809 = vst.msk [vmem:[#allocation2 + $0x40] sm:$0xff] %vm258_vm1, %v793_v45  ;;  %v794_v13 = vadd.f32 %v778_v8, %v741_v7 }
 0x117   : > { %1111 = vst.msk [vmem:[#allocation2 + $0x28] sm:$0xff] %vm258_vm1, %v1095_v59  ;;  %812 = vst.msk [vmem:[#allocation2 + $0x58] sm:$0xff] %vm258_vm1, %v796_v12 }
 0x118   : > { %v3744_v16 = vpop.f32.mrb[16].mxu0  ;;  %810 = vst.msk [vmem:[#allocation2 + $0x48] sm:$0xff] %vm258_vm1, %v794_v13 }
 0x119   : > { %v1043_v25 = vpop.f32.mrb[17].mxu0 }
 0x11a   : > { %v3745_v20 = vpop.f32.mrb[18].mxu0 }
 0x11b   : > { %v1046_v23 = vpop.f32.mrb[19].mxu0  ;;  %v1314_v54 = vld [vmem:[#allocation2 + $0x30] sm:$0xff] }
 0x11c   : > { %v1084_v0 = vld [vmem:[#allocation2 + $0x50] sm:$0xff]  ;;  %v1312_v45 = vld [vmem:[#allocation2 + $0x20] sm:$0xff] }
 0x11d   : > { %v1100_v6 = vadd.f32 %v3744_v16, %v1084_v0  ;;  %v1082_v21 = vld [vmem:[#allocation2 + $0x40] sm:$0xff]  ;;  %v1315_v12 = vld [vmem:[#allocation2 + $0x38] sm:$0xff] }
 0x11e   : > { %v3730_v22 = vpop.f32.mrb[20].mxu1  ;;  %v1098_v26 = vadd.f32 %v1082_v21, %v1043_v25  ;;  %v1085_v27 = vld [vmem:[#allocation2 + $0x58] sm:$0xff]  ;;  %v1313_v25 = vld [vmem:[#allocation2 + $0x28] sm:$0xff] }
 0x11f   : > { %1116 = vst.msk [vmem:[#allocation2 + $0x50] sm:$0xff] %vm258_vm1, %v1100_v6  ;;  %v799_v44 = vadd.f32 %v3730_v22, %v783_v24  ;;  %v754_v62 = vpop.f32.mrb[21].mxu1  ;;  %v1101_v28 = vadd.f32 %v3745_v20, %v1085_v27  ;;  %v1083_v30 = vld [vmem:[#allocation2 + $0x48] sm:$0xff] }
 0x120   : > { %v3748_v31 = vpop.f32.mrb[20].mxu0  ;;  %1114 = vst.msk [vmem:[#allocation2 + $0x40] sm:$0xff] %vm258_vm1, %v1098_v26  ;;  %v797_v17 = vadd.f32 %v781_v63, %v754_v62  ;;  %v3731_v15 = vpop.f32.mrb[22].mxu1  ;;  %v1099_v33 = vadd.f32 %v1083_v30, %v1046_v23 }
 0x121   : > { %v1059_v11 = vpop.f32.mrb[21].mxu0  ;;  %815 = vst.msk [vmem:[#allocation2 + $0x70] sm:$0xff] %vm258_vm1, %v799_v44  ;;  %1117 = vst.msk [vmem:[#allocation2 + $0x58] sm:$0xff] %vm258_vm1, %v1101_v28  ;;  %v800_v35 = vadd.f32 %v3731_v15, %v784_v32  ;;  %v757_v36 = vpop.f32.mrb[23].mxu1 }
 0x122   : > { %v3749_v38 = vpop.f32.mrb[22].mxu0  ;;  %813 = vst.msk [vmem:[#allocation2 + $0x60] sm:$0xff] %vm258_vm1, %v797_v17  ;;  %1115 = vst.msk [vmem:[#allocation2 + $0x48] sm:$0xff] %vm258_vm1, %v1099_v33  ;;  %v798_v39 = vadd.f32 %v782_v37, %v757_v36 }
 0x123   : > { %v1062_v40 = vpop.f32.mrb[23].mxu0  ;;  %816 = vst.msk [vmem:[#allocation2 + $0x78] sm:$0xff] %vm258_vm1, %v800_v35 }
 0x124   : > { %814 = vst.msk [vmem:[#allocation2 + $0x68] sm:$0xff] %vm258_vm1, %v798_v39 }
 0x126   : > { %v3754_v9 = vpop.f32.mrb[24].mxu1  ;;  %v1318_v62 = vld [vmem:[#allocation2 + $0x50] sm:$0xff] }
 0x127   : > { %v1326_v42 = vadd.f32 %v3754_v9, %v1310_v41  ;;  %v1245_v43 = vpop.f32.mrb[25].mxu1 }
 0x128   : > { %v1088_v47 = vld [vmem:[#allocation2 + $0x70] sm:$0xff]  ;;  %v1324_v48 = vadd.f32 %v1308_v46, %v1245_v43  ;;  %v3755_v49 = vpop.f32.mrb[26].mxu1  ;;  %v1319_v33 = vld [vmem:[#allocation2 + $0x58] sm:$0xff] }
 0x129   : > { %v1104_v51 = vadd.f32 %v3748_v31, %v1088_v47  ;;  %v1086_v55 = vld [vmem:[#allocation2 + $0x60] sm:$0xff]  ;;  %1342 = vst.msk [vmem:[#allocation2 + $0x10] sm:$0xff] %vm258_vm1, %v1326_v42  ;;  %v1327_v1 = vadd.f32 %v3755_v49, %v1311_v50  ;;  %v1248_v10 = vpop.f32.mrb[27].mxu1 }
 0x12a   : > { %v3772_v56 = vpop.f32.mrb[24].mxu0  ;;  %v1102_v58 = vadd.f32 %v1086_v55, %v1059_v11  ;;  %v1089_v61 = vld [vmem:[#allocation2 + $0x78] sm:$0xff]  ;;  %1340 = vst.msk [vmem:[#allocation2] sm:$0xff] %vm258_vm1, %v1324_v48  ;;  %v1325_v60 = vadd.f32 %v1309_v18, %v1248_v10  ;;  %v1316_v31 = vld [vmem:[#allocation2 + $0x40] sm:$0xff] }
 0x12b   : > { %v1659_v29 = vpop.f32.mrb[25].mxu0  ;;  %1120 = vst.msk [vmem:[#allocation2 + $0x70] sm:$0xff] %vm258_vm1, %v1104_v51  ;;  %v1105_v34 = vadd.f32 %v3749_v38, %v1089_v61  ;;  %v1087_v19 = vld [vmem:[#allocation2 + $0x68] sm:$0xff]  ;;  %1343 = vst.msk [vmem:[#allocation2 + $0x18] sm:$0xff] %vm258_vm1, %v1327_v1 }
 0x12c   : > { %v3773_v2 = vpop.f32.mrb[26].mxu0  ;;  %1118 = vst.msk [vmem:[#allocation2 + $0x60] sm:$0xff] %vm258_vm1, %v1102_v58  ;;  %v1103_v57 = vadd.f32 %v1087_v19, %v1062_v40  ;;  %1341 = vst.msk [vmem:[#allocation2 + $0x8] sm:$0xff] %vm258_vm1, %v1325_v60  ;;  %v1317_v38 = vld [vmem:[#allocation2 + $0x48] sm:$0xff] }
 0x12d   : > { %v1662_v3 = vpop.f32.mrb[27].mxu0  ;;  %1121 = vst.msk [vmem:[#allocation2 + $0x78] sm:$0xff] %vm258_vm1, %v1105_v34 }
 0x12e   : > { %1119 = vst.msk [vmem:[#allocation2 + $0x68] sm:$0xff] %vm258_vm1, %v1103_v57  ;;  %v3758_v14 = vpop.f32.mrb[28].mxu1 }
 0x12f   : > { %v1330_v4 = vadd.f32 %v3758_v14, %v1314_v54  ;;  %v1261_v5 = vpop.f32.mrb[29].mxu1 }
 0x130   : > { %v1724_v53 = vld [vmem:[#allocation2 + $0x10] sm:$0xff]  ;;  %v1328_v52 = vadd.f32 %v1312_v45, %v1261_v5  ;;  %v3759_v59 = vpop.f32.mrb[30].mxu1 }
 0x131   : > { %v1740_v7 = vadd.f32 %v3772_v56, %v1724_v53  ;;  %1346 = vst.msk [vmem:[#allocation2 + $0x30] sm:$0xff] %vm258_vm1, %v1330_v4  ;;  %v1722_v8 = vld [vmem:[#allocation2] sm:$0xff]  ;;  %v1331_v13 = vadd.f32 %v3759_v59, %v1315_v12  ;;  %v1264_v16 = vpop.f32.mrb[31].mxu1 }
 0x132   : > { %v1738_v20 = vadd.f32 %v1722_v8, %v1659_v29  ;;  %1344 = vst.msk [vmem:[#allocation2 + $0x20] sm:$0xff] %vm258_vm1, %v1328_v52  ;;  %v1725_v23 = vld [vmem:[#allocation2 + $0x18] sm:$0xff]  ;;  %v1329_v0 = vadd.f32 %v1313_v25, %v1264_v16  ;;  %v1322_v50 = vld [vmem:[#allocation2 + $0x70] sm:$0xff] }
 0x133   : > { %1756 = vst.msk [vmem:[#allocation2 + $0x10] sm:$0xff] %vm258_vm1, %v1740_v7  ;;  %v1741_v6 = vadd.f32 %v3773_v2, %v1725_v23  ;;  %1347 = vst.msk [vmem:[#allocation2 + $0x38] sm:$0xff] %vm258_vm1, %v1331_v13  ;;  %v1723_v21 = vld [vmem:[#allocation2 + $0x8] sm:$0xff]  ;;  %v1320_v10 = vld [vmem:[#allocation2 + $0x60] sm:$0xff] }
 0x134   : > { %v3776_v22 = vpop.f32.mrb[28].mxu0  ;;  %1754 = vst.msk [vmem:[#allocation2] sm:$0xff] %vm258_vm1, %v1738_v20  ;;  %v1739_v24 = vadd.f32 %v1723_v21, %v1662_v3  ;;  %1345 = vst.msk [vmem:[#allocation2 + $0x28] sm:$0xff] %vm258_vm1, %v1329_v0  ;;  %v1323_v61 = vld [vmem:[#allocation2 + $0x78] sm:$0xff] }
 0x135   : > { %v1675_v26 = vpop.f32.mrb[29].mxu0  ;;  %1757 = vst.msk [vmem:[#allocation2 + $0x18] sm:$0xff] %vm258_vm1, %v1741_v6  ;;  %v1321_v2 = vld [vmem:[#allocation2 + $0x68] sm:$0xff] }
 0x136   : > { %v3777_v27 = vpop.f32.mrb[30].mxu0  ;;  %1755 = vst.msk [vmem:[#allocation2 + $0x8] sm:$0xff] %vm258_vm1, %v1739_v24  ;;  %v3762_v44 = vpop.f32.mrb[32].mxu1 }
 0x137   : > { %v1678_v63 = vpop.f32.mrb[31].mxu0  ;;  %v1334_v28 = vadd.f32 %v3762_v44, %v1318_v62  ;;  %v1277_v30 = vpop.f32.mrb[33].mxu1 }
 0x138   : > { %v1728_v17 = vld [vmem:[#allocation2 + $0x30] sm:$0xff]  ;;  %v1332_v15 = vadd.f32 %v1316_v31, %v1277_v30  ;;  %v3763_v32 = vpop.f32.mrb[34].mxu1 }
 0x139   : > { %v1744_v11 = vadd.f32 %v3776_v22, %v1728_v17  ;;  %1350 = vst.msk [vmem:[#allocation2 + $0x50] sm:$0xff] %vm258_vm1, %v1334_v28  ;;  %v1726_v35 = vld [vmem:[#allocation2 + $0x20] sm:$0xff]  ;;  %v1335_v36 = vadd.f32 %v3763_v32, %v1319_v33  ;;  %v1280_v37 = vpop.f32.mrb[35].mxu1 }
 0x13a   : > { %v1742_v39 = vadd.f32 %v1726_v35, %v1675_v26  ;;  %1348 = vst.msk [vmem:[#allocation2 + $0x40] sm:$0xff] %vm258_vm1, %v1332_v15  ;;  %v1729_v40 = vld [vmem:[#allocation2 + $0x38] sm:$0xff]  ;;  %v1333_v9 = vadd.f32 %v1317_v38, %v1280_v37  ;;  %v2026_v12 = vld [vmem:[#allocation2 + $0x10] sm:$0xff] }
 0x13b   : > { %1760 = vst.msk [vmem:[#allocation2 + $0x30] sm:$0xff] %vm258_vm1, %v1744_v11  ;;  %v1745_v41 = vadd.f32 %v3777_v27, %v1729_v40  ;;  %1351 = vst.msk [vmem:[#allocation2 + $0x58] sm:$0xff] %vm258_vm1, %v1335_v36  ;;  %v1727_v42 = vld [vmem:[#allocation2 + $0x28] sm:$0xff]  ;;  %v2024_v16 = vld [vmem:[#allocation2] sm:$0xff] }
 0x13c   : > { %v3780_v43 = vpop.f32.mrb[32].mxu0  ;;  %1758 = vst.msk [vmem:[#allocation2 + $0x20] sm:$0xff] %vm258_vm1, %v1742_v39  ;;  %v1743_v46 = vadd.f32 %v1727_v42, %v1678_v63  ;;  %1349 = vst.msk [vmem:[#allocation2 + $0x48] sm:$0xff] %vm258_vm1, %v1333_v9  ;;  %v2027_v0 = vld [vmem:[#allocation2 + $0x18] sm:$0xff] }
 0x13d   : > { %v1691_v47 = vpop.f32.mrb[33].mxu0  ;;  %1761 = vst.msk [vmem:[#allocation2 + $0x38] sm:$0xff] %vm258_vm1, %v1745_v41  ;;  %v2025_v26 = vld [vmem:[#allocation2 + $0x8] sm:$0xff] }
 0x13e   : > { %v3781_v48 = vpop.f32.mrb[34].mxu0  ;;  %1759 = vst.msk [vmem:[#allocation2 + $0x28] sm:$0xff] %vm258_vm1, %v1743_v46  ;;  %v3766_v49 = vpop.f32.mrb[36].mxu1 }
 0x13f   : > { %v1694_v51 = vpop.f32.mrb[35].mxu0  ;;  %v1338_v55 = vadd.f32 %v3766_v49, %v1322_v50  ;;  %v1293_v1 = vpop.f32.mrb[37].mxu1 }
 0x140   : > { %v1732_v18 = vld [vmem:[#allocation2 + $0x50] sm:$0xff]  ;;  %v1336_v56 = vadd.f32 %v1320_v10, %v1293_v1  ;;  %v3767_v58 = vpop.f32.mrb[38].mxu1 }
 0x141   : > { %v1748_v60 = vadd.f32 %v3780_v43, %v1732_v18  ;;  %1354 = vst.msk [vmem:[#allocation2 + $0x70] sm:$0xff] %vm258_vm1, %v1338_v55  ;;  %v1730_v29 = vld [vmem:[#allocation2 + $0x40] sm:$0xff]  ;;  %v1339_v34 = vadd.f32 %v3767_v58, %v1323_v61  ;;  %v1296_v19 = vpop.f32.mrb[39].mxu1 }
 0x142   : > { %v1746_v57 = vadd.f32 %v1730_v29, %v1691_v47  ;;  %1352 = vst.msk [vmem:[#allocation2 + $0x60] sm:$0xff] %vm258_vm1, %v1336_v56  ;;  %v1733_v3 = vld [vmem:[#allocation2 + $0x58] sm:$0xff]  ;;  %v1337_v14 = vadd.f32 %v1321_v2, %v1296_v19  ;;  %v2030_v33 = vld [vmem:[#allocation2 + $0x30] sm:$0xff] }
 0x143   : > { %1764 = vst.msk [vmem:[#allocation2 + $0x50] sm:$0xff] %vm258_vm1, %v1748_v60  ;;  %v1749_v54 = vadd.f32 %v3781_v48, %v1733_v3  ;;  %1355 = vst.msk [vmem:[#allocation2 + $0x78] sm:$0xff] %vm258_vm1, %v1339_v34  ;;  %v1731_v4 = vld [vmem:[#allocation2 + $0x48] sm:$0xff]  ;;  %v2028_v37 = vld [vmem:[#allocation2 + $0x20] sm:$0xff] }
 0x144   : > { %v3784_v5 = vpop.f32.mrb[36].mxu0  ;;  %1762 = vst.msk [vmem:[#allocation2 + $0x40] sm:$0xff] %vm258_vm1, %v1746_v57  ;;  %v1747_v45 = vadd.f32 %v1731_v4, %v1694_v51  ;;  %1353 = vst.msk [vmem:[#allocation2 + $0x68] sm:$0xff] %vm258_vm1, %v1337_v14  ;;  %v2031_v9 = vld [vmem:[#allocation2 + $0x38] sm:$0xff] }
 0x145   : > { %v1707_v53 = vpop.f32.mrb[37].mxu0  ;;  %1765 = vst.msk [vmem:[#allocation2 + $0x58] sm:$0xff] %vm258_vm1, %v1749_v54  ;;  %v2029_v47 = vld [vmem:[#allocation2 + $0x28] sm:$0xff] }
 0x146   : > { %v3785_v52 = vpop.f32.mrb[38].mxu0  ;;  %1763 = vst.msk [vmem:[#allocation2 + $0x48] sm:$0xff] %vm258_vm1, %v1747_v45  ;;  %v3790_v59 = vpop.f32.mrb[40].mxu1 }
 0x147   : > { %v1710_v7 = vpop.f32.mrb[39].mxu0  ;;  %v2042_v8 = vadd.f32 %v3790_v59, %v2026_v12  ;;  %v1961_v13 = vpop.f32.mrb[41].mxu1 }
 0x148   : > { %v1736_v25 = vld [vmem:[#allocation2 + $0x70] sm:$0xff]  ;;  %v2040_v20 = vadd.f32 %v2024_v16, %v1961_v13  ;;  %v3791_v23 = vpop.f32.mrb[42].mxu1 }
 0x149   : > { %v1752_v6 = vadd.f32 %v3784_v5, %v1736_v25  ;;  %v1734_v21 = vld [vmem:[#allocation2 + $0x60] sm:$0xff]  ;;  %2058 = vst.msk [vmem:[#allocation2 + $0x10] sm:$0xff] %vm258_vm1, %v2042_v8  ;;  %v2043_v22 = vadd.f32 %v3791_v23, %v2027_v0  ;;  %v1964_v24 = vpop.f32.mrb[43].mxu1 }
 0x14a   : > { %v1750_v27 = vadd.f32 %v1734_v21, %v1707_v53  ;;  %v1737_v44 = vld [vmem:[#allocation2 + $0x78] sm:$0xff]  ;;  %2056 = vst.msk [vmem:[#allocation2] sm:$0xff] %vm258_vm1, %v2040_v20  ;;  %v2041_v62 = vadd.f32 %v2025_v26, %v1964_v24  ;;  %v2034_v61 = vld [vmem:[#allocation2 + $0x50] sm:$0xff] }
 0x14b   : > { %1768 = vst.msk [vmem:[#allocation2 + $0x70] sm:$0xff] %vm258_vm1, %v1752_v6  ;;  %v1753_v63 = vadd.f32 %v3785_v52, %v1737_v44  ;;  %v1735_v28 = vld [vmem:[#allocation2 + $0x68] sm:$0xff]  ;;  %2059 = vst.msk [vmem:[#allocation2 + $0x18] sm:$0xff] %vm258_vm1, %v2043_v22  ;;  %v2032_v19 = vld [vmem:[#allocation2 + $0x40] sm:$0xff] }
 0x14c   : > { %v3808_v30 = vpop.f32.mrb[40].mxu0  ;;  %1766 = vst.msk [vmem:[#allocation2 + $0x60] sm:$0xff] %vm258_vm1, %v1750_v27  ;;  %v1751_v31 = vadd.f32 %v1735_v28, %v1710_v7  ;;  %2057 = vst.msk [vmem:[#allocation2 + $0x8] sm:$0xff] %vm258_vm1, %v2041_v62  ;;  %v2035_v14 = vld [vmem:[#allocation2 + $0x58] sm:$0xff] }
 0x14d   : > { %v2195_v17 = vpop.f32.mrb[41].mxu0  ;;  %1769 = vst.msk [vmem:[#allocation2 + $0x78] sm:$0xff] %vm258_vm1, %v1753_v63  ;;  %v2033_v53 = vld [vmem:[#allocation2 + $0x48] sm:$0xff] }
 0x14e   : > { %v3809_v15 = vpop.f32.mrb[42].mxu0  ;;  %1767 = vst.msk [vmem:[#allocation2 + $0x68] sm:$0xff] %vm258_vm1, %v1751_v31  ;;  %v3794_v32 = vpop.f32.mrb[44].mxu1 }
 0x14f   : > { %v2198_v11 = vpop.f32.mrb[43].mxu0  ;;  %v2046_v35 = vadd.f32 %v3794_v32, %v2030_v33  ;;  %v1977_v36 = vpop.f32.mrb[45].mxu1 }
 0x150   : > { %v2260_v38 = vld [vmem:[#allocation2 + $0x10] sm:$0xff]  ;;  %v2044_v39 = vadd.f32 %v2028_v37, %v1977_v36  ;;  %v3795_v40 = vpop.f32.mrb[46].mxu1 }
 0x151   : > { %v2276_v41 = vadd.f32 %v3808_v30, %v2260_v38  ;;  %2062 = vst.msk [vmem:[#allocation2 + $0x30] sm:$0xff] %vm258_vm1, %v2046_v35  ;;  %v2258_v42 = vld [vmem:[#allocation2] sm:$0xff]  ;;  %v2047_v43 = vadd.f32 %v3795_v40, %v2031_v9  ;;  %v1980_v46 = vpop.f32.mrb[47].mxu1 }
 0x152   : > { %v2274_v48 = vadd.f32 %v2258_v42, %v2195_v17  ;;  %2060 = vst.msk [vmem:[#allocation2 + $0x20] sm:$0xff] %vm258_vm1, %v2044_v39  ;;  %v2261_v49 = vld [vmem:[#allocation2 + $0x18] sm:$0xff]  ;;  %v2045_v50 = vadd.f32 %v2029_v47, %v1980_v46  ;;  %v2038_v0 = vld [vmem:[#allocation2 + $0x70] sm:$0xff] }
 0x153   : > { %2292 = vst.msk [vmem:[#allocation2 + $0x10] sm:$0xff] %vm258_vm1, %v2276_v41  ;;  %v2277_v51 = vadd.f32 %v3809_v15, %v2261_v49  ;;  %2063 = vst.msk [vmem:[#allocation2 + $0x38] sm:$0xff] %vm258_vm1, %v2047_v43  ;;  %v2259_v55 = vld [vmem:[#allocation2 + $0x8] sm:$0xff]  ;;  %v2036_v24 = vld [vmem:[#allocation2 + $0x60] sm:$0xff] }
 0x154   : > { %v3812_v1 = vpop.f32.mrb[44].mxu0  ;;  %2290 = vst.msk [vmem:[#allocation2] sm:$0xff] %vm258_vm1, %v2274_v48  ;;  %v2275_v10 = vadd.f32 %v2259_v55, %v2198_v11  ;;  %2061 = vst.msk [vmem:[#allocation2 + $0x28] sm:$0xff] %vm258_vm1, %v2045_v50  ;;  %v2039_v62 = vld [vmem:[#allocation2 + $0x78] sm:$0xff] }
 0x155   : > { %v2211_v18 = vpop.f32.mrb[45].mxu0  ;;  %2293 = vst.msk [vmem:[#allocation2 + $0x18] sm:$0xff] %vm258_vm1, %v2277_v51  ;;  %v2037_v17 = vld [vmem:[#allocation2 + $0x68] sm:$0xff] }
 0x156   : > { %v3813_v56 = vpop.f32.mrb[46].mxu0  ;;  %2291 = vst.msk [vmem:[#allocation2 + $0x8] sm:$0xff] %vm258_vm1, %v2275_v10  ;;  %v3798_v58 = vpop.f32.mrb[48].mxu1 }
 0x157   : > { %v2214_v60 = vpop.f32.mrb[47].mxu0  ;;  %v2050_v29 = vadd.f32 %v3798_v58, %v2034_v61  ;;  %v1993_v34 = vpop.f32.mrb[49].mxu1 }
 0x158   : > { %v2264_v2 = vld [vmem:[#allocation2 + $0x30] sm:$0xff]  ;;  %v2048_v57 = vadd.f32 %v2032_v19, %v1993_v34  ;;  %v3799_v3 = vpop.f32.mrb[50].mxu1 }
 0x159   : > { %v2280_v54 = vadd.f32 %v3812_v1, %v2264_v2  ;;  %2066 = vst.msk [vmem:[#allocation2 + $0x50] sm:$0xff] %vm258_vm1, %v2050_v29  ;;  %v2262_v4 = vld [vmem:[#allocation2 + $0x20] sm:$0xff]  ;;  %v2051_v5 = vadd.f32 %v3799_v3, %v2035_v14  ;;  %v1996_v45 = vpop.f32.mrb[51].mxu1 }
 0x15a   : > { %v2278_v52 = vadd.f32 %v2262_v4, %v2211_v18  ;;  %2064 = vst.msk [vmem:[#allocation2 + $0x40] sm:$0xff] %vm258_vm1, %v2048_v57  ;;  %v2265_v59 = vld [vmem:[#allocation2 + $0x38] sm:$0xff]  ;;  %v2049_v12 = vadd.f32 %v2033_v53, %v1996_v45  ;;  %v2674_v9 = vld [vmem:[#allocation2 + $0x10] sm:$0xff] }
 0x15b   : > { %2296 = vst.msk [vmem:[#allocation2 + $0x30] sm:$0xff] %vm258_vm1, %v2280_v54  ;;  %v2281_v7 = vadd.f32 %v3813_v56, %v2265_v59  ;;  %2067 = vst.msk [vmem:[#allocation2 + $0x58] sm:$0xff] %vm258_vm1, %v2051_v5  ;;  %v2263_v8 = vld [vmem:[#allocation2 + $0x28] sm:$0xff]  ;;  %v2672_v46 = vld [vmem:[#allocation2] sm:$0xff] }
 0x15c   : > { %v3816_v13 = vpop.f32.mrb[48].mxu0  ;;  %2294 = vst.msk [vmem:[#allocation2 + $0x20] sm:$0xff] %vm258_vm1, %v2278_v52  ;;  %v2279_v16 = vadd.f32 %v2263_v8, %v2214_v60  ;;  %2065 = vst.msk [vmem:[#allocation2 + $0x48] sm:$0xff] %vm258_vm1, %v2049_v12  ;;  %v2675_v50 = vld [vmem:[#allocation2 + $0x18] sm:$0xff] }
 0x15d   : > { %v2227_v25 = vpop.f32.mrb[49].mxu0  ;;  %2297 = vst.msk [vmem:[#allocation2 + $0x38] sm:$0xff] %vm258_vm1, %v2281_v7  ;;  %v2673_v18 = vld [vmem:[#allocation2 + $0x8] sm:$0xff] }
 0x15e   : > { %v3817_v20 = vpop.f32.mrb[50].mxu0  ;;  %2295 = vst.msk [vmem:[#allocation2 + $0x28] sm:$0xff] %vm258_vm1, %v2279_v16  ;;  %v3802_v23 = vpop.f32.mrb[52].mxu1 }
 0x15f   : > { %v2230_v6 = vpop.f32.mrb[51].mxu0  ;;  %v2054_v21 = vadd.f32 %v3802_v23, %v2038_v0  ;;  %v2009_v22 = vpop.f32.mrb[53].mxu1 }
 0x160   : > { %v2268_v26 = vld [vmem:[#allocation2 + $0x50] sm:$0xff]  ;;  %v2052_v27 = vadd.f32 %v2036_v24, %v2009_v22  ;;  %v3803_v44 = vpop.f32.mrb[54].mxu1 }
 0x161   : > { %v2284_v63 = vadd.f32 %v3816_v13, %v2268_v26  ;;  %2070 = vst.msk [vmem:[#allocation2 + $0x70] sm:$0xff] %vm258_vm1, %v2054_v21  ;;  %v2266_v28 = vld [vmem:[#allocation2 + $0x40] sm:$0xff]  ;;  %v2055_v30 = vadd.f32 %v3803_v44, %v2039_v62  ;;  %v2012_v31 = vpop.f32.mrb[55].mxu1 }
 0x162   : > { %v2282_v15 = vadd.f32 %v2266_v28, %v2227_v25  ;;  %2068 = vst.msk [vmem:[#allocation2 + $0x60] sm:$0xff] %vm258_vm1, %v2052_v27  ;;  %v2269_v32 = vld [vmem:[#allocation2 + $0x58] sm:$0xff]  ;;  %v2053_v33 = vadd.f32 %v2037_v17, %v2012_v31  ;;  %v2678_v14 = vld [vmem:[#allocation2 + $0x30] sm:$0xff]  ;;  %v4748_v17 = vld [vmem:[%s4841_s2] ss:$0 sm:$0xff] }
 0x163   : > { %2300 = vst.msk [vmem:[#allocation2 + $0x50] sm:$0xff] %vm258_vm1, %v2284_v63  ;;  %v2285_v11 = vadd.f32 %v3817_v20, %v2269_v32  ;;  %2071 = vst.msk [vmem:[#allocation2 + $0x78] sm:$0xff] %vm258_vm1, %v2055_v30  ;;  %v2267_v35 = vld [vmem:[#allocation2 + $0x48] sm:$0xff]  ;;  %v2676_v45 = vld [vmem:[#allocation2 + $0x20] sm:$0xff] }
 0x164   : > { %v3820_v36 = vpop.f32.mrb[52].mxu0  ;;  %2298 = vst.msk [vmem:[#allocation2 + $0x40] sm:$0xff] %vm258_vm1, %v2282_v15  ;;  %v2283_v37 = vadd.f32 %v2267_v35, %v2230_v6  ;;  %2069 = vst.msk [vmem:[#allocation2 + $0x68] sm:$0xff] %vm258_vm1, %v2053_v33  ;;  %v2679_v12 = vld [vmem:[#allocation2 + $0x38] sm:$0xff] }
 0x165   : > { %v2243_v38 = vpop.f32.mrb[53].mxu0  ;;  %2301 = vst.msk [vmem:[#allocation2 + $0x58] sm:$0xff] %vm258_vm1, %v2285_v11  ;;  %v2677_v25 = vld [vmem:[#allocation2 + $0x28] sm:$0xff] }
 0x166   : > { %v3821_v39 = vpop.f32.mrb[54].mxu0  ;;  %2299 = vst.msk [vmem:[#allocation2 + $0x48] sm:$0xff] %vm258_vm1, %v2283_v37  ;;  %v3826_v40 = vpop.f32.mrb[56].mxu1 }
 0x167   : > { %v2246_v41 = vpop.f32.mrb[55].mxu0  ;;  %v2690_v42 = vadd.f32 %v3826_v40, %v2674_v9  ;;  %v2609_v43 = vpop.f32.mrb[57].mxu1 }
 0x168   : > { %v2272_v47 = vld [vmem:[#allocation2 + $0x70] sm:$0xff]  ;;  %v2688_v48 = vadd.f32 %v2672_v46, %v2609_v43  ;;  %v3827_v49 = vpop.f32.mrb[58].mxu1 }
 0x169   : > { %v2288_v51 = vadd.f32 %v3820_v36, %v2272_v47  ;;  %v2270_v55 = vld [vmem:[#allocation2 + $0x60] sm:$0xff]  ;;  %2706 = vst.msk [vmem:[#allocation2 + $0x10] sm:$0xff] %vm258_vm1, %v2690_v42  ;;  %v2691_v1 = vadd.f32 %v3827_v49, %v2675_v50  ;;  %v2612_v10 = vpop.f32.mrb[59].mxu1 }
 0x16a   : > { %v2286_v56 = vadd.f32 %v2270_v55, %v2243_v38  ;;  %v2273_v58 = vld [vmem:[#allocation2 + $0x78] sm:$0xff]  ;;  %2704 = vst.msk [vmem:[#allocation2] sm:$0xff] %vm258_vm1, %v2688_v48  ;;  %v2689_v61 = vadd.f32 %v2673_v18, %v2612_v10  ;;  %v2682_v62 = vld [vmem:[#allocation2 + $0x50] sm:$0xff] }
 0x16b   : > { %2304 = vst.msk [vmem:[#allocation2 + $0x70] sm:$0xff] %vm258_vm1, %v2288_v51  ;;  %v2289_v60 = vadd.f32 %v3821_v39, %v2273_v58  ;;  %v2271_v29 = vld [vmem:[#allocation2 + $0x68] sm:$0xff]  ;;  %2707 = vst.msk [vmem:[#allocation2 + $0x18] sm:$0xff] %vm258_vm1, %v2691_v1  ;;  %v2680_v31 = vld [vmem:[#allocation2 + $0x40] sm:$0xff] }
 0x16c   : > { %v3844_v34 = vpop.f32.mrb[56].mxu0  ;;  %2302 = vst.msk [vmem:[#allocation2 + $0x60] sm:$0xff] %vm258_vm1, %v2286_v56  ;;  %v2287_v19 = vadd.f32 %v2271_v29, %v2246_v41  ;;  %2705 = vst.msk [vmem:[#allocation2 + $0x8] sm:$0xff] %vm258_vm1, %v2689_v61  ;;  %v2683_v11 = vld [vmem:[#allocation2 + $0x58] sm:$0xff] }
 0x16d   : > { %v2911_v2 = vpop.f32.mrb[57].mxu0  ;;  %2305 = vst.msk [vmem:[#allocation2 + $0x78] sm:$0xff] %vm258_vm1, %v2289_v60  ;;  %v2681_v39 = vld [vmem:[#allocation2 + $0x48] sm:$0xff] }
 0x16e   : > { %v3845_v57 = vpop.f32.mrb[58].mxu0  ;;  %2303 = vst.msk [vmem:[#allocation2 + $0x68] sm:$0xff] %vm258_vm1, %v2287_v19  ;;  %v3830_v3 = vpop.f32.mrb[60].mxu1 }
 0x16f   : > { %v2914_v54 = vpop.f32.mrb[59].mxu0  ;;  %v2694_v4 = vadd.f32 %v3830_v3, %v2678_v14  ;;  %v2625_v5 = vpop.f32.mrb[61].mxu1 }
 0x170   : > { %v2976_v53 = vld [vmem:[#allocation2 + $0x10] sm:$0xff]  ;;  %v2692_v52 = vadd.f32 %v2676_v45, %v2625_v5  ;;  %v3831_v59 = vpop.f32.mrb[62].mxu1 }
 0x171   : > { %v2992_v7 = vadd.f32 %v3844_v34, %v2976_v53  ;;  %2710 = vst.msk [vmem:[#allocation2 + $0x30] sm:$0xff] %vm258_vm1, %v2694_v4  ;;  %v2974_v8 = vld [vmem:[#allocation2] sm:$0xff]  ;;  %v2695_v13 = vadd.f32 %v3831_v59, %v2679_v12  ;;  %v2628_v16 = vpop.f32.mrb[63].mxu1 }
 0x172   : > { %v2990_v20 = vadd.f32 %v2974_v8, %v2911_v2  ;;  %2708 = vst.msk [vmem:[#allocation2 + $0x20] sm:$0xff] %vm258_vm1, %v2692_v52  ;;  %v2977_v23 = vld [vmem:[#allocation2 + $0x18] sm:$0xff]  ;;  %v2693_v0 = vadd.f32 %v2677_v25, %v2628_v16  ;;  %v2686_v34 = vld [vmem:[#allocation2 + $0x70] sm:$0xff] }
 0x173   : > { %3008 = vst.msk [vmem:[#allocation2 + $0x10] sm:$0xff] %vm258_vm1, %v2992_v7  ;;  %v2993_v6 = vadd.f32 %v3845_v57, %v2977_v23  ;;  %2711 = vst.msk [vmem:[#allocation2 + $0x38] sm:$0xff] %vm258_vm1, %v2695_v13  ;;  %v2975_v21 = vld [vmem:[#allocation2 + $0x8] sm:$0xff] }
 0x174   : > { %v3848_v22 = vpop.f32.mrb[60].mxu0  ;;  %3006 = vst.msk [vmem:[#allocation2] sm:$0xff] %vm258_vm1, %v2990_v20  ;;  %v2991_v24 = vadd.f32 %v2975_v21, %v2914_v54  ;;  %2709 = vst.msk [vmem:[#allocation2 + $0x28] sm:$0xff] %vm258_vm1, %v2693_v0  ;;  %v2684_v54 = vld [vmem:[#allocation2 + $0x60] sm:$0xff]  ;;  %v2687_v59 = vld [vmem:[#allocation2 + $0x78] sm:$0xff] }
 0x175   : > { %v2927_v26 = vpop.f32.mrb[61].mxu0  ;;  %3009 = vst.msk [vmem:[#allocation2 + $0x18] sm:$0xff] %vm258_vm1, %v2993_v6  ;;  %v2685_v25 = vld [vmem:[#allocation2 + $0x68] sm:$0xff] }
 0x176   : > { %v3849_v27 = vpop.f32.mrb[62].mxu0  ;;  %3007 = vst.msk [vmem:[#allocation2 + $0x8] sm:$0xff] %vm258_vm1, %v2991_v24  ;;  %v3834_v44 = vpop.f32.mrb[64].mxu1 }
 0x177   : > { %v2930_v63 = vpop.f32.mrb[63].mxu0  ;;  %v2698_v28 = vadd.f32 %v3834_v44, %v2682_v62  ;;  %v2641_v30 = vpop.f32.mrb[65].mxu1 }
 0x178   : > { %v2980_v15 = vld [vmem:[#allocation2 + $0x30] sm:$0xff]  ;;  %v2696_v32 = vadd.f32 %v2680_v31, %v2641_v30  ;;  %v3835_v33 = vpop.f32.mrb[66].mxu1 }
 0x179   : > { %v2996_v35 = vadd.f32 %v3848_v22, %v2980_v15  ;;  %2714 = vst.msk [vmem:[#allocation2 + $0x50] sm:$0xff] %vm258_vm1, %v2698_v28  ;;  %v2978_v36 = vld [vmem:[#allocation2 + $0x20] sm:$0xff]  ;;  %v2699_v37 = vadd.f32 %v3835_v33, %v2683_v11  ;;  %v2644_v38 = vpop.f32.mrb[67].mxu1 }
 0x17a   : > { %v3024_v40 = vld [vmem:[#allocation2 + $0x10] sm:$0xff]  ;;  %v2994_v9 = vadd.f32 %v2978_v36, %v2927_v26  ;;  %2712 = vst.msk [vmem:[#allocation2 + $0x40] sm:$0xff] %vm258_vm1, %v2696_v32  ;;  %v2981_v41 = vld [vmem:[#allocation2 + $0x38] sm:$0xff]  ;;  %v2697_v42 = vadd.f32 %v2681_v39, %v2644_v38 }
 0x17b   : > { %v3047_v43 = vadd.f32 %v4748_v17, %v3024_v40  ;;  %v3022_v46 = vld [vmem:[#allocation2] sm:$0xff]  ;;  %3012 = vst.msk [vmem:[#allocation2 + $0x30] sm:$0xff] %vm258_vm1, %v2996_v35  ;;  %v2997_v47 = vadd.f32 %v3849_v27, %v2981_v41  ;;  %2715 = vst.msk [vmem:[#allocation2 + $0x58] sm:$0xff] %vm258_vm1, %v2699_v37  ;;  %v2979_v48 = vld [vmem:[#allocation2 + $0x28] sm:$0xff] }
 0x17c   : > { %v3852_v49 = vpop.f32.mrb[64].mxu0  ;;  %v3045_v50 = vadd.f32 %v4748_v17, %v3022_v46  ;;  %v3025_v51 = vld [vmem:[#allocation2 + $0x18] sm:$0xff]  ;;  %3010 = vst.msk [vmem:[#allocation2 + $0x20] sm:$0xff] %vm258_vm1, %v2994_v9  ;;  %v2995_v55 = vadd.f32 %v2979_v48, %v2930_v63  ;;  %2713 = vst.msk [vmem:[#allocation2 + $0x48] sm:$0xff] %vm258_vm1, %v2697_v42 }
 0x17d   : > { %v2943_v1 = vpop.f32.mrb[65].mxu0  ;;  %v3063_v10 = vmax.f32 %v3047_v43, 0.0  ;;  %v3048_v18 = vadd.f32 %v4748_v17, %v3025_v51  ;;  %v3023_v56 = vld [vmem:[#allocation2 + $0x8] sm:$0xff]  ;;  %3013 = vst.msk [vmem:[#allocation2 + $0x38] sm:$0xff] %vm258_vm1, %v2997_v47 }
 0x17e   : > { %v3853_v58 = vpop.f32.mrb[66].mxu0  ;;  %v3061_v61 = vmax.f32 %v3045_v50, 0.0  ;;  %v3046_v60 = vadd.f32 %v4748_v17, %v3023_v56  ;;  %3011 = vst.msk [vmem:[#allocation2 + $0x28] sm:$0xff] %vm258_vm1, %v2995_v55 }
 0x17f   : > { %v3838_v29 = vpop.f32.mrb[68].mxu1  ;;  %v2946_v19 = vpop.f32.mrb[67].mxu0  ;;  %v3601_v2 = vpack.c.bf16 %v3063_v10, %v3063_v10  ;;  %v3064_v57 = vmax.f32 %v3048_v18, 0.0 }
 0x180   : > { %v2702_v3 = vadd.f32 %v3838_v29, %v2686_v34  ;;  %v2657_v14 = vpop.f32.mrb[69].mxu1  ;;  %v3599_v4 = vpack.c.bf16 %v3061_v61, %v3061_v61  ;;  %v3062_v5 = vmax.f32 %v3046_v60, 0.0  ;;  %v2984_v45 = vld [vmem:[#allocation2 + $0x50] sm:$0xff] }
 0x181   : > { %v2700_v53 = vadd.f32 %v2684_v54, %v2657_v14  ;;  %v3839_v52 = vpop.f32.mrb[70].mxu1  ;;  %3144 = vst.msk [vmem:[%s4764_s30 + $0x8] sm:$0xf] %vm3141_vm8, %v3601_v2  ;;  %v3602_v12 = vpack.c.bf16 %v3064_v57, %v3064_v57  ;;  %v3000_v7 = vadd.f32 %v3852_v49, %v2984_v45  ;;  %v2982_v8 = vld [vmem:[#allocation2 + $0x40] sm:$0xff] }
 0x182   : > { %2718 = vst.msk [vmem:[#allocation2 + $0x70] sm:$0xff] %vm258_vm1, %v2702_v3  ;;  %v2703_v13 = vadd.f32 %v3839_v52, %v2687_v59  ;;  %v2660_v16 = vpop.f32.mrb[71].mxu1  ;;  %v3600_v20 = vpack.c.bf16 %v3062_v5, %v3062_v5  ;;  %v3028_v23 = vld [vmem:[#allocation2 + $0x30] sm:$0xff]  ;;  %v2998_v0 = vadd.f32 %v2982_v8, %v2943_v1  ;;  %v2985_v6 = vld [vmem:[#allocation2 + $0x58] sm:$0xff] }
 0x183   : > { %3142 = vst.msk [vmem:[%s4764_s30] sm:$0xf] %vm3141_vm8, %v3599_v4  ;;  %v2701_v21 = vadd.f32 %v2685_v25, %v2660_v16  ;;  %3145 = vst.msk [vmem:[%s4764_s30 + $0xc] sm:$0xf] %vm3141_vm8, %v3602_v12  ;;  %v3051_v22 = vadd.f32 %v4748_v17, %v3028_v23  ;;  %v3026_v24 = vld [vmem:[#allocation2 + $0x20] sm:$0xff]  ;;  %v3001_v26 = vadd.f32 %v3853_v58, %v2985_v6  ;;  %v2983_v27 = vld [vmem:[#allocation2 + $0x48] sm:$0xff] }
 0x184   : > { %2716 = vst.msk [vmem:[#allocation2 + $0x60] sm:$0xff] %vm258_vm1, %v2700_v53  ;;  %3016 = vst.msk [vmem:[#allocation2 + $0x50] sm:$0xff] %vm258_vm1, %v3000_v7  ;;  %v3856_v44 = vpop.f32.mrb[68].mxu0  ;;  %v3049_v62 = vadd.f32 %v4748_v17, %v3026_v24  ;;  %v3029_v63 = vld [vmem:[#allocation2 + $0x38] sm:$0xff]  ;;  %v2999_v28 = vadd.f32 %v2983_v27, %v2946_v19 }
 0x185   : > { %2719 = vst.msk [vmem:[#allocation2 + $0x78] sm:$0xff] %vm258_vm1, %v2703_v13  ;;  %3014 = vst.msk [vmem:[#allocation2 + $0x40] sm:$0xff] %vm258_vm1, %v2998_v0  ;;  %v2959_v30 = vpop.f32.mrb[69].mxu0  ;;  %v3067_v31 = vmax.f32 %v3051_v22, 0.0  ;;  %v3052_v15 = vadd.f32 %v4748_v17, %v3029_v63  ;;  %v3027_v32 = vld [vmem:[#allocation2 + $0x28] sm:$0xff] }
 0x186   : > { %3143 = vst.msk [vmem:[%s4764_s30 + $0x4] sm:$0xf] %vm3141_vm8, %v3600_v20  ;;  %v3857_v33 = vpop.f32.mrb[70].mxu0  ;;  %v3065_v11 = vmax.f32 %v3049_v62, 0.0  ;;  %v3050_v35 = vadd.f32 %v4748_v17, %v3027_v32 }
 0x187   : > { %2717 = vst.msk [vmem:[#allocation2 + $0x68] sm:$0xff] %vm258_vm1, %v2701_v21  ;;  %3017 = vst.msk [vmem:[#allocation2 + $0x58] sm:$0xff] %vm258_vm1, %v3001_v26  ;;  %v2962_v36 = vpop.f32.mrb[71].mxu0  ;;  %v3605_v37 = vpack.c.bf16 %v3067_v31, %v3067_v31  ;;  %v3068_v38 = vmax.f32 %v3052_v15, 0.0 }
 0x188   : > { %3015 = vst.msk [vmem:[#allocation2 + $0x48] sm:$0xff] %vm258_vm1, %v2999_v28  ;;  %v3603_v39 = vpack.c.bf16 %v3065_v11, %v3065_v11  ;;  %v3066_v40 = vmax.f32 %v3050_v35, 0.0 }
 0x189   : > { %v2988_v9 = vld [vmem:[#allocation2 + $0x70] sm:$0xff]  ;;  %3148 = vst.msk [vmem:[%s4764_s30 + $0x18] sm:$0xf] %vm3141_vm8, %v3605_v37  ;;  %v3606_v41 = vpack.c.bf16 %v3068_v38, %v3068_v38 }
 0x18a   : > { %v3004_v42 = vadd.f32 %v3856_v44, %v2988_v9  ;;  %3146 = vst.msk [vmem:[%s4764_s30 + $0x10] sm:$0xf] %vm3141_vm8, %v3603_v39  ;;  %v3604_v46 = vpack.c.bf16 %v3066_v40, %v3066_v40 }
 0x18b   : > { %v2986_v43 = vld [vmem:[#allocation2 + $0x60] sm:$0xff]  ;;  %v3032_v47 = vld [vmem:[#allocation2 + $0x50] sm:$0xff]  ;;  %3149 = vst.msk [vmem:[%s4764_s30 + $0x1c] sm:$0xf] %vm3141_vm8, %v3606_v41 }
 0x18c   : > { %v3002_v48 = vadd.f32 %v2986_v43, %v2959_v30  ;;  %v2989_v49 = vld [vmem:[#allocation2 + $0x78] sm:$0xff]  ;;  %v3055_v50 = vadd.f32 %v4748_v17, %v3032_v47  ;;  %v3030_v51 = vld [vmem:[#allocation2 + $0x40] sm:$0xff]  ;;  %3020 = vst.msk [vmem:[#allocation2 + $0x70] sm:$0xff] %vm258_vm1, %v3004_v42 }
 0x18d   : > { %v3005_v55 = vadd.f32 %v3857_v33, %v2989_v49  ;;  %3147 = vst.msk [vmem:[%s4764_s30 + $0x14] sm:$0xf] %vm3141_vm8, %v3604_v46  ;;  %v3053_v10 = vadd.f32 %v4748_v17, %v3030_v51 }
 0x18e   : > { %v2987_v1 = vld [vmem:[#allocation2 + $0x68] sm:$0xff]  ;;  %v3033_v18 = vld [vmem:[#allocation2 + $0x58] sm:$0xff]  ;;  %3018 = vst.msk [vmem:[#allocation2 + $0x60] sm:$0xff] %vm258_vm1, %v3002_v48  ;;  %v3071_v58 = vmax.f32 %v3055_v50, 0.0 }
 0x18f   : > { %v3003_v56 = vadd.f32 %v2987_v1, %v2962_v36  ;;  %v3056_v61 = vadd.f32 %v4748_v17, %v3033_v18  ;;  %v3031_v60 = vld [vmem:[#allocation2 + $0x48] sm:$0xff]  ;;  %3021 = vst.msk [vmem:[#allocation2 + $0x78] sm:$0xff] %vm258_vm1, %v3005_v55  ;;  %v3069_v29 = vmax.f32 %v3053_v10, 0.0 }
 0x190   : > { %v3054_v34 = vadd.f32 %v4748_v17, %v3031_v60  ;;  %v3609_v19 = vpack.c.bf16 %v3071_v58, %v3071_v58 }
 0x191   : > { %3019 = vst.msk [vmem:[#allocation2 + $0x68] sm:$0xff] %vm258_vm1, %v3003_v56  ;;  %v3072_v2 = vmax.f32 %v3056_v61, 0.0  ;;  %v3607_v57 = vpack.c.bf16 %v3069_v29, %v3069_v29 }
 0x192   : > { %v3070_v3 = vmax.f32 %v3054_v34, 0.0  ;;  %3152 = vst.msk [vmem:[%s4764_s30 + $0x28] sm:$0xf] %vm3141_vm8, %v3609_v19 }
 0x193   : > { %v3610_v14 = vpack.c.bf16 %v3072_v2, %v3072_v2  ;;  %3150 = vst.msk [vmem:[%s4764_s30 + $0x20] sm:$0xf] %vm3141_vm8, %v3607_v57  ;;  %v3036_v4 = vld [vmem:[#allocation2 + $0x70] sm:$0xff] }
 0x194   : > { %v3608_v54 = vpack.c.bf16 %v3070_v3, %v3070_v3  ;;  %v3059_v5 = vadd.f32 %v4748_v17, %v3036_v4 }
 0x195   : > { %3153 = vst.msk [vmem:[%s4764_s30 + $0x2c] sm:$0xf] %vm3141_vm8, %v3610_v14  ;;  %v3034_v45 = vld [vmem:[#allocation2 + $0x60] sm:$0xff] }
 0x196   : > { %3151 = vst.msk [vmem:[%s4764_s30 + $0x24] sm:$0xf] %vm3141_vm8, %v3608_v54  ;;  %v3057_v53 = vadd.f32 %v4748_v17, %v3034_v45  ;;  %v3037_v52 = vld [vmem:[#allocation2 + $0x78] sm:$0xff]  ;;  %v3075_v59 = vmax.f32 %v3059_v5, 0.0 }
 0x197   : > { %v3060_v12 = vadd.f32 %v4748_v17, %v3037_v52 }
 0x198   : > { %v3035_v7 = vld [vmem:[#allocation2 + $0x68] sm:$0xff]  ;;  %v3073_v8 = vmax.f32 %v3057_v53, 0.0  ;;  %v3613_v16 = vpack.c.bf16 %v3075_v59, %v3075_v59 }
 0x199   : > { %v3058_v13 = vadd.f32 %v4748_v17, %v3035_v7  ;;  %v3076_v25 = vmax.f32 %v3060_v12, 0.0 }
 0x19a   : > { %v3611_v20 = vpack.c.bf16 %v3073_v8, %v3073_v8  ;;  %3156 = vst.msk [vmem:[%s4764_s30 + $0x38] sm:$0xf] %vm3141_vm8, %v3613_v16 }
 0x19b   : > { %v3074_v23 = vmax.f32 %v3058_v13, 0.0  ;;  %v3614_v0 = vpack.c.bf16 %v3076_v25, %v3076_v25 }
 0x19c   : > { %3154 = vst.msk [vmem:[%s4764_s30 + $0x30] sm:$0xf] %vm3141_vm8, %v3611_v20 }
 0x19d   : > { %v3612_v6 = vpack.c.bf16 %v3074_v23, %v3074_v23  ;;  %3157 = vst.msk [vmem:[%s4764_s30 + $0x3c] sm:$0xf] %vm3141_vm8, %v3614_v0 }
 0x19f   : > { %3155 = vst.msk [vmem:[%s4764_s30 + $0x34] sm:$0xf] %vm3141_vm8, %v3612_v6 }
 0x1a0 PF: > { %s13_s16 = sadd.s32 1, %s3973_s16   ;;  %s4847_s12 = smov %s3965_s14 }
 0x1a1   : > { %p10_p7 = scmp.ge.s32.totalorder %s13_s16, 6   ;;  %s4848_s13 = smov %s3969_s15 }
 0x1a2   : > { %s4849_s14 = smov %s4852_s17  ;;  %s4850_s15 = smov %s4856_s18 }
 0x1a3   :  { %12 = sbr.rel (!%p10_p7) target bundleno = 3 (0x3), region = 73 }

</bundles_post_ra>
